<compile_context>
chip_gen: v7x
topology: tpu7x:2x2x1
jax: 0.10.0
libtpu: 0.0.40
codegen_flags: <defaults>
</compile_context>

<pallas_src>
import functools

import jax
import jax.numpy as jnp
from jax.experimental import pallas as pl
from jax.experimental.pallas import tpu as pltpu


# --------------------------------------------------------------------------
# capability probe: is pipeline_mode=pl.Buffered(1) accepted on this JAX?
# (AOT lower+compile only — never staged into an outer trace.)
# --------------------------------------------------------------------------
_BUFFERED1_OK = None


def _buffered_one_supported():
    global _BUFFERED1_OK
    if _BUFFERED1_OK is None:
        try:
            def probe_kernel(x_ref, o_ref):
                o_ref[...] = x_ref[...]

            def probe(x):
                return pl.pallas_call(
                    probe_kernel,
                    out_shape=jax.ShapeDtypeStruct((8, 128), jnp.float32),
                    grid=(1,),
                    in_specs=[pl.BlockSpec((8, 128), lambda i: (0, 0),
                                           pipeline_mode=pl.Buffered(1))],
                    out_specs=pl.BlockSpec((8, 128), lambda i: (0, 0)),
                )(x)

            jax.jit(probe).lower(
                jax.ShapeDtypeStruct((8, 128), jnp.float32)).compile()
            _BUFFERED1_OK = True
        except Exception:
            _BUFFERED1_OK = False
    return _BUFFERED1_OK


# ----------------------------- fused block kernel -----------------------------

def _cross_block_kernel(q_ref, k_ref, v_ref,
                        ln1_g_ref, ln1_b_ref,
                        qw_ref, qb_ref, kw_ref, kb_ref, vw_ref, vb_ref,
                        cw_ref, cb_ref,
                        ln2_g_ref, ln2_b_ref,
                        fcw_ref, fcb_ref, prw_ref, prb_ref,
                        o_ref, *rest,
                        num_heads, eps, need_weights):
    if need_weights:
        w_ref, qp_scr, kp_scr, vp_scr, attn_scr, probs_scr = rest
    else:
        qp_scr, kp_scr, vp_scr, attn_scr = rest

    H = num_heads

    def ln(x, g_ref, b_ref):
        # f32 LayerNorm statistics
        g = g_ref[...].astype(jnp.float32)                      # (1, E)
        b = b_ref[...].astype(jnp.float32)                      # (1, E)
        mean = jnp.mean(x, axis=-1, keepdims=True)
        xc = x - mean
        var = jnp.mean(xc * xc, axis=-1, keepdims=True)
        return xc * jax.lax.rsqrt(var + eps) * g + b

    def mm(x, w_ref, b_ref):
        # x: (M, K) -> bf16 ; w_ref: (K, N) bf16 pre-transposed ; b: (1, N) f32
        y = jnp.dot(x.astype(jnp.bfloat16), w_ref[...],
                    preferred_element_type=jnp.float32)
        return y + b_ref[...].astype(jnp.float32)

    q_in = q_ref[0].astype(jnp.float32)                         # (Tq, E)
    k_in = k_ref[0].astype(jnp.float32)                         # (Lk, E)
    v_in = v_ref[0].astype(jnp.float32)                         # (Lk, E)

    Tq, E = q_in.shape
    Dh = E // H

    # --- ln_1 + separate q/k/v projections, staged in bf16 VMEM scratch ---
    # (1/sqrt(Dh) is already folded into q_wt / q_b at init time.)
    qp_scr[...] = mm(ln(q_in, ln1_g_ref, ln1_b_ref), qw_ref, qb_ref).astype(jnp.bfloat16)
    kp_scr[...] = mm(ln(k_in, ln1_g_ref, ln1_b_ref), kw_ref, kb_ref).astype(jnp.bfloat16)
    vp_scr[...] = mm(ln(v_in, ln1_g_ref, ln1_b_ref), vw_ref, vb_ref).astype(jnp.bfloat16)

    if need_weights:
        probs_scr[...] = jnp.zeros_like(probs_scr)

    # --- per-head attention; head slabs read/written via static ref slices ---
    for h in range(H):
        sl = slice(h * Dh, (h + 1) * Dh)
        qh = qp_scr[:, sl]                                      # (Tq, Dh) bf16
        kh = kp_scr[:, sl]                                      # (Lk, Dh) bf16
        vh = vp_scr[:, sl]                                      # (Lk, Dh) bf16

        # Q @ K^T without materializing a transpose (contract dim 1 with dim 1)
        s = jax.lax.dot_general(qh, kh, (((1,), (1,)), ((), ())),
                                preferred_element_type=jnp.float32)   # (Tq, Lk)
        m = jnp.max(s, axis=-1, keepdims=True)
        e = jnp.exp(s - m)
        denom = jnp.sum(e, axis=-1, keepdims=True)
        if need_weights:
            p = e / denom                       # exact: returned weights sum to 1
        else:
            p = e * pl.reciprocal(denom, approx=True)           # EUP slot

        oh = jnp.dot(p.astype(jnp.bfloat16), vh,
                     preferred_element_type=jnp.float32)        # (Tq, Dh)
        attn_scr[:, sl] = oh                                    # static lane-slice store
        if need_weights:
            probs_scr[...] += p                                 # VMEM accumulator

    # out projection + residual 1 (f32)
    attn = mm(attn_scr[...], cw_ref, cb_ref)                    # (Tq, E)
    x = q_in + attn

    # --- ln_2 -> MLP (c_fc + QuickGELU + c_proj) -> residual 2, fused ---
    hmid = mm(ln(x, ln2_g_ref, ln2_b_ref), fcw_ref, fcb_ref)    # (Tq, 4E)
    hmid = hmid * jax.nn.sigmoid(1.702 * hmid)                  # QuickGELU, f32
    x = x + mm(hmid, prw_ref, prb_ref)                          # (Tq, E)

    o_ref[0] = x.astype(o_ref.dtype)
    if need_weights:
        w_ref[0] = (probs_scr[...] * (1.0 / H)).astype(w_ref.dtype)   # head-averaged


# ----------------------------- wrappers -----------------------------

def _pick_q_tile(Lq):
    if Lq <= 256:
        return Lq
    for t in (256, 128):
        if Lq % t == 0:
            return t
    # TODO(synk): pad ragged Lq to a multiple of 128 instead of falling back to full
    return Lq


def _vmem_limit_bytes(tile_q, Lk, E, q_bytes, kv_bytes, out_bytes, need_weights):
    weights = 12 * E * E * 2 + 20 * E * 4                 # bf16 matrices + f32 biases/LN
    act = 2 * (tile_q * E * q_bytes                       # double-buffered blocks
               + 2 * Lk * E * kv_bytes
               + tile_q * E * out_bytes
               + (tile_q * Lk * 4 if need_weights else 0))
    scratch = (tile_q * E * 2 + 2 * Lk * E * 2 + tile_q * E * 4
               + (tile_q * Lk * 4 if need_weights else 0))
    interm = tile_q * 4 * E * 4 * 2 + tile_q * Lk * 4 * 4 + tile_q * E * 4 * 4
    est = weights + act + scratch + interm
    return int(min(max(est * 1.4 + (4 << 20), 32 << 20), 64 << 20))


def cross_block(q, k, v, p, num_heads, need_weights, out_dtype):
    """One fused CrossResidualAttentionBlock. q: (N, Lq, E); k/v: (N, Lk, E)."""
    N, Lq, E = q.shape
    Lk = k.shape[1]
    assert E % num_heads == 0, "embed_dim must be divisible by num_heads"
    # (no attn_mask / dropout in this module's forward path)

    tile_q = _pick_q_tile(Lq)
    n_q_tiles = Lq // tile_q

    kernel = functools.partial(
        _cross_block_kernel, num_heads=num_heads, eps=1e-5,
        need_weights=need_weights)

    use_b1 = _buffered_one_supported()

    def const2d(r, c):
        # constant-index weight/bias block: single-buffer it when supported
        if use_b1:
            return pl.BlockSpec((r, c), lambda i, j: (0, 0),
                                pipeline_mode=pl.Buffered(1))
        return pl.BlockSpec((r, c), lambda i, j: (0, 0))

    in_specs = [
        pl.BlockSpec((1, tile_q, E), lambda i, j: (i, j, 0)),   # q  (tiled over Lq)
        pl.BlockSpec((1, Lk, E), lambda i, j: (i, 0, 0)),       # k
        pl.BlockSpec((1, Lk, E), lambda i, j: (i, 0, 0)),       # v
        const2d(1, E), const2d(1, E),                           # ln1_g, ln1_b
        const2d(E, E), const2d(1, E),                           # q_wt (scale folded), q_b
        const2d(E, E), const2d(1, E),                           # k_wt, k_b
        const2d(E, E), const2d(1, E),                           # v_wt, v_b
        const2d(E, E), const2d(1, E),                           # c_wt, c_b
        const2d(1, E), const2d(1, E),                           # ln2_g, ln2_b
        const2d(E, 4 * E), const2d(1, 4 * E),                   # fc_wt, fc_b
        const2d(4 * E, E), const2d(1, E),                       # pr_wt, pr_b
    ]

    args = (q, k, v,
            p["ln1_g"], p["ln1_b"],
            p["q_wt"], p["q_b"], p["k_wt"], p["k_b"], p["v_wt"], p["v_b"],
            p["c_wt"], p["c_b"],
            p["ln2_g"], p["ln2_b"],
            p["fc_wt"], p["fc_b"], p["pr_wt"], p["pr_b"])

    scratch_shapes = [
        pltpu.VMEM((tile_q, E), jnp.bfloat16),   # qp
        pltpu.VMEM((Lk, E), jnp.bfloat16),       # kp
        pltpu.VMEM((Lk, E), jnp.bfloat16),       # vp
        pltpu.VMEM((tile_q, E), jnp.float32),    # per-head output staging
    ]
    if need_weights:
        scratch_shapes.append(pltpu.VMEM((tile_q, Lk), jnp.float32))  # probs acc

    vmem_limit = _vmem_limit_bytes(
        tile_q, Lk, E, q.dtype.itemsize, k.dtype.itemsize,
        jnp.dtype(out_dtype).itemsize, need_weights)
    cparams = pltpu.CompilerParams(
        dimension_semantics=("parallel", "parallel"),
        vmem_limit_bytes=vmem_limit)

    grid = (N, n_q_tiles)

    if need_weights:
        out_shape = (jax.ShapeDtypeStruct((N, Lq, E), out_dtype),
                     jax.ShapeDtypeStruct((N, Lq, Lk), jnp.float32))
        out_specs = (pl.BlockSpec((1, tile_q, E), lambda i, j: (i, j, 0)),
                     pl.BlockSpec((1, tile_q, Lk), lambda i, j: (i, j, 0)))
        q_out, w = pl.pallas_call(
            kernel, out_shape=out_shape, grid=grid,
            in_specs=in_specs, out_specs=out_specs,
            scratch_shapes=scratch_shapes, compiler_params=cparams,
        )(*args)
        return q_out, w
    else:
        out_shape = jax.ShapeDtypeStruct((N, Lq, E), out_dtype)
        out_specs = pl.BlockSpec((1, tile_q, E), lambda i, j: (i, j, 0))
        q_out = pl.pallas_call(
            kernel, out_shape=out_shape, grid=grid,
            in_specs=in_specs, out_specs=out_specs,
            scratch_shapes=scratch_shapes, compiler_params=cparams,
        )(*args)
        return q_out, None


def cross_transformer(q, k, v, params, num_heads):
    """q, k, v in torch layout (L, N, E). Returns ((N, Lq, E), (N, Lq, Lk))."""
    qb = jnp.transpose(q, (1, 0, 2))                       # (N, Lq, E), once
    kb = jnp.transpose(k, (1, 0, 2)).astype(jnp.bfloat16)  # k/v re-read every layer -> bf16
    vb = jnp.transpose(v, (1, 0, 2)).astype(jnp.bfloat16)

    attn_weights = None
    n_layers = len(params)
    for li, p in enumerate(params):
        last = (li == n_layers - 1)
        # bf16 activations between layers; final layer output (and weights) f32
        out_dtype = jnp.float32 if last else jnp.bfloat16
        qb, w = cross_block(qb, kb, vb, p, num_heads,
                            need_weights=last, out_dtype=out_dtype)
        if w is not None:
            attn_weights = w
    # qb is already (N, Lq, E): the module's final permute(1, 0, 2) is free.
    return qb, attn_weights


# ----------------------------- params -----------------------------

def init_params(key, width, layers, heads):
    E = width
    Dh = E // heads
    scale = 1.0 / float(Dh) ** 0.5
    params = []
    for _ in range(layers):
        key, *ks = jax.random.split(key, 7)

        def wf32(kk, shape):
            return jax.random.normal(kk, shape, jnp.float32) * 0.02

        layer = {
            "ln1_g": jnp.ones((1, E), jnp.float32),
            "ln1_b": jnp.zeros((1, E), jnp.float32),
            # weights stored pre-transposed (in_features, out_features), bf16.
            # 1/sqrt(Dh) folded into q projection (weight + bias) at init time.
            "q_wt": (wf32(ks[0], (E, E)) * scale).astype(jnp.bfloat16),
            "q_b": jnp.zeros((1, E), jnp.float32) * scale,
            "k_wt": wf32(ks[1], (E, E)).astype(jnp.bfloat16),
            "k_b": jnp.zeros((1, E), jnp.float32),
            "v_wt": wf32(ks[2], (E, E)).astype(jnp.bfloat16),
            "v_b": jnp.zeros((1, E), jnp.float32),
            "c_wt": wf32(ks[3], (E, E)).astype(jnp.bfloat16),
            "c_b": jnp.zeros((1, E), jnp.float32),
            "ln2_g": jnp.ones((1, E), jnp.float32),
            "ln2_b": jnp.zeros((1, E), jnp.float32),
            "fc_wt": wf32(ks[4], (E, 4 * E)).astype(jnp.bfloat16),
            "fc_b": jnp.zeros((1, 4 * E), jnp.float32),
            "pr_wt": wf32(ks[5], (4 * E, E)).astype(jnp.bfloat16),
            "pr_b": jnp.zeros((1, E), jnp.float32),
        }
        params.append(layer)
    return params


# ----------------------------- main -----------------------------

if __name__ == "__main__":
    width = 32     # d_model  (production shapes: keep E, Lk multiples of 128)
    heads = 4      # num_heads -> head_dim = 8
    layers = 2
    Lq, Lk, N = 8, 8, 2

    # resolve the Buffered(1) capability probe OUTSIDE any trace
    _buffered_one_supported()

    key = jax.random.PRNGKey(0)
    k_params, k_q, k_k, k_v = jax.random.split(key, 4)

    params = init_params(k_params, width, layers, heads)

    # sequence-first inputs, like torch's multi_head_attention_forward
    q = jax.random.normal(k_q, (Lq, N, width), jnp.float32)
    k = jax.random.normal(k_k, (Lk, N, width), jnp.float32)
    v = jax.random.normal(k_v, (Lk, N, width), jnp.float32)

    fn = jax.jit(functools.partial(cross_transformer, num_heads=heads))
    out, attn_w = fn(q, k, v, params)
    jax.block_until_ready((out, attn_w))

    assert out.shape == (N, Lq, width)
    assert attn_w.shape == (N, Lq, Lk)
    assert bool(jnp.all(jnp.isfinite(out)))
    # last-layer softmax uses an exact divide -> head-averaged rows sum to ~1
    assert bool(jnp.allclose(attn_w.sum(-1), 1.0, atol=1e-3))

    print("KERNEL_OK")
</pallas_src>

<mosaic_0001>
module attributes {stable_mosaic.version = 11 : i64} {
  func.func @_cross_block_kernel(%arg0: i32, %arg1: i32, %arg2: memref<1x8x32xf32, #tpu.memory_space<vmem>>, %arg3: memref<1x8x32xbf16, #tpu.memory_space<vmem>>, %arg4: memref<1x8x32xbf16, #tpu.memory_space<vmem>>, %arg5: memref<1x32xf32, #tpu.memory_space<vmem>>, %arg6: memref<1x32xf32, #tpu.memory_space<vmem>>, %arg7: memref<32x32xbf16, #tpu.memory_space<vmem>>, %arg8: memref<1x32xf32, #tpu.memory_space<vmem>>, %arg9: memref<32x32xbf16, #tpu.memory_space<vmem>>, %arg10: memref<1x32xf32, #tpu.memory_space<vmem>>, %arg11: memref<32x32xbf16, #tpu.memory_space<vmem>>, %arg12: memref<1x32xf32, #tpu.memory_space<vmem>>, %arg13: memref<32x32xbf16, #tpu.memory_space<vmem>>, %arg14: memref<1x32xf32, #tpu.memory_space<vmem>>, %arg15: memref<1x32xf32, #tpu.memory_space<vmem>>, %arg16: memref<1x32xf32, #tpu.memory_space<vmem>>, %arg17: memref<32x128xbf16, #tpu.memory_space<vmem>>, %arg18: memref<1x128xf32, #tpu.memory_space<vmem>>, %arg19: memref<128x32xbf16, #tpu.memory_space<vmem>>, %arg20: memref<1x32xf32, #tpu.memory_space<vmem>>, %arg21: memref<1x8x32xbf16, #tpu.memory_space<vmem>>, %arg22: memref<8x32xbf16, #tpu.memory_space<vmem>>, %arg23: memref<8x32xbf16, #tpu.memory_space<vmem>>, %arg24: memref<8x32xbf16, #tpu.memory_space<vmem>>, %arg25: memref<8x32xf32, #tpu.memory_space<vmem>>) attributes {dimension_semantics = [#tpu.dimension_semantics<parallel>, #tpu.dimension_semantics<parallel>], iteration_bounds = array<i64: 2, 1>, scalar_prefetch = 0 : i64, scratch_operands = 4 : i64, tpu.core_type = #tpu.core_type<tc>, window_params = [{transform_indices = @transform_0, window_bounds = array<i64: 1, 8, 32>}, {transform_indices = @transform_1, window_bounds = array<i64: 1, 8, 32>}, {transform_indices = @transform_2, window_bounds = array<i64: 1, 8, 32>}, {pipeline_mode = #tpu.pipeline_mode<synchronous>, transform_indices = @transform_3, window_bounds = array<i64: 1, 32>}, {pipeline_mode = #tpu.pipeline_mode<synchronous>, transform_indices = @transform_4, window_bounds = array<i64: 1, 32>}, {pipeline_mode = #tpu.pipeline_mode<synchronous>, transform_indices = @transform_5, window_bounds = array<i64: 32, 32>}, {pipeline_mode = #tpu.pipeline_mode<synchronous>, transform_indices = @transform_6, window_bounds = array<i64: 1, 32>}, {pipeline_mode = #tpu.pipeline_mode<synchronous>, transform_indices = @transform_7, window_bounds = array<i64: 32, 32>}, {pipeline_mode = #tpu.pipeline_mode<synchronous>, transform_indices = @transform_8, window_bounds = array<i64: 1, 32>}, {pipeline_mode = #tpu.pipeline_mode<synchronous>, transform_indices = @transform_9, window_bounds = array<i64: 32, 32>}, {pipeline_mode = #tpu.pipeline_mode<synchronous>, transform_indices = @transform_10, window_bounds = array<i64: 1, 32>}, {pipeline_mode = #tpu.pipeline_mode<synchronous>, transform_indices = @transform_11, window_bounds = array<i64: 32, 32>}, {pipeline_mode = #tpu.pipeline_mode<synchronous>, transform_indices = @transform_12, window_bounds = array<i64: 1, 32>}, {pipeline_mode = #tpu.pipeline_mode<synchronous>, transform_indices = @transform_13, window_bounds = array<i64: 1, 32>}, {pipeline_mode = #tpu.pipeline_mode<synchronous>, transform_indices = @transform_14, window_bounds = array<i64: 1, 32>}, {pipeline_mode = #tpu.pipeline_mode<synchronous>, transform_indices = @transform_15, window_bounds = array<i64: 32, 128>}, {pipeline_mode = #tpu.pipeline_mode<synchronous>, transform_indices = @transform_16, window_bounds = array<i64: 1, 128>}, {pipeline_mode = #tpu.pipeline_mode<synchronous>, transform_indices = @transform_17, window_bounds = array<i64: 128, 32>}, {pipeline_mode = #tpu.pipeline_mode<synchronous>, transform_indices = @transform_18, window_bounds = array<i64: 1, 32>}, {transform_indices = @transform_19, window_bounds = array<i64: 1, 8, 32>}]} {
    %c0 = arith.constant 0 : index
    %c0_0 = arith.constant 0 : index
    %c0_1 = arith.constant 0 : index
    %0 = vector.load %arg2[%c0, %c0_0, %c0_1] : memref<1x8x32xf32, #tpu.memory_space<vmem>>, vector<1x8x32xf32>
    %1 = vector.shape_cast %0 : vector<1x8x32xf32> to vector<8x32xf32>
    %c0_2 = arith.constant 0 : index
    %c0_3 = arith.constant 0 : index
    %c0_4 = arith.constant 0 : index
    %2 = vector.load %arg3[%c0_2, %c0_3, %c0_4] : memref<1x8x32xbf16, #tpu.memory_space<vmem>>, vector<1x8x32xbf16>
    %3 = vector.shape_cast %2 : vector<1x8x32xbf16> to vector<8x32xbf16>
    %4 = arith.extf %3 : vector<8x32xbf16> to vector<8x32xf32>
    %c0_5 = arith.constant 0 : index
    %c0_6 = arith.constant 0 : index
    %c0_7 = arith.constant 0 : index
    %5 = vector.load %arg4[%c0_5, %c0_6, %c0_7] : memref<1x8x32xbf16, #tpu.memory_space<vmem>>, vector<1x8x32xbf16>
    %6 = vector.shape_cast %5 : vector<1x8x32xbf16> to vector<8x32xbf16>
    %7 = arith.extf %6 : vector<8x32xbf16> to vector<8x32xf32>
    %c0_8 = arith.constant 0 : index
    %c0_9 = arith.constant 0 : index
    %8 = vector.load %arg5[%c0_8, %c0_9] : memref<1x32xf32, #tpu.memory_space<vmem>>, vector<1x32xf32>
    %c0_10 = arith.constant 0 : index
    %c0_11 = arith.constant 0 : index
    %9 = vector.load %arg6[%c0_10, %c0_11] : memref<1x32xf32, #tpu.memory_space<vmem>>, vector<1x32xf32>
    %cst = arith.constant dense<0.000000e+00> : vector<8xf32>
    %10 = vector.multi_reduction <add>, %1, %cst [1] : vector<8x32xf32> to vector<8xf32>
    %11 = vector.shape_cast %10 : vector<8xf32> to vector<8x1xf32>
    %cst_12 = arith.constant 3.200000e+01 : f32
    %12 = vector.broadcast %cst_12 : f32 to vector<8x1xf32>
    %13 = arith.divf %11, %12 : vector<8x1xf32>
    %14 = vector.broadcast %13 : vector<8x1xf32> to vector<8x32xf32>
    %15 = arith.subf %1, %14 : vector<8x32xf32>
    %16 = arith.mulf %15, %15 : vector<8x32xf32>
    %cst_13 = arith.constant dense<0.000000e+00> : vector<8xf32>
    %17 = vector.multi_reduction <add>, %16, %cst_13 [1] : vector<8x32xf32> to vector<8xf32>
    %18 = vector.shape_cast %17 : vector<8xf32> to vector<8x1xf32>
    %cst_14 = arith.constant 3.200000e+01 : f32
    %19 = vector.broadcast %cst_14 : f32 to vector<8x1xf32>
    %20 = arith.divf %18, %19 : vector<8x1xf32>
    %cst_15 = arith.constant 9.99999974E-6 : f32
    %21 = vector.broadcast %cst_15 : f32 to vector<8x1xf32>
    %22 = arith.addf %20, %21 : vector<8x1xf32>
    %23 = math.rsqrt %22 : vector<8x1xf32>
    %24 = vector.broadcast %23 : vector<8x1xf32> to vector<8x32xf32>
    %25 = arith.mulf %15, %24 : vector<8x32xf32>
    %26 = vector.broadcast %8 : vector<1x32xf32> to vector<8x32xf32>
    %27 = arith.mulf %25, %26 : vector<8x32xf32>
    %28 = vector.broadcast %9 : vector<1x32xf32> to vector<8x32xf32>
    %29 = arith.addf %27, %28 : vector<8x32xf32>
    %30 = arith.truncf %29 : vector<8x32xf32> to vector<8x32xbf16>
    %c0_16 = arith.constant 0 : index
    %c0_17 = arith.constant 0 : index
    %31 = vector.load %arg7[%c0_16, %c0_17] : memref<32x32xbf16, #tpu.memory_space<vmem>>, vector<32x32xbf16>
    %cst_18 = arith.constant dense<0.000000e+00> : vector<8x32xf32>
    %32 = tpu.matmul %30, %31, %cst_18 {dimension_numbers = #tpu.dot_dimension_numbers<[1], [0], [0], [1], [0, 0, 1, 1], [], []>} : vector<8x32xbf16>, vector<32x32xbf16>, vector<8x32xf32> -> vector<8x32xf32>
    %c0_19 = arith.constant 0 : index
    %c0_20 = arith.constant 0 : index
    %33 = vector.load %arg8[%c0_19, %c0_20] : memref<1x32xf32, #tpu.memory_space<vmem>>, vector<1x32xf32>
    %34 = vector.broadcast %33 : vector<1x32xf32> to vector<8x32xf32>
    %35 = arith.addf %32, %34 : vector<8x32xf32>
    %36 = arith.truncf %35 : vector<8x32xf32> to vector<8x32xbf16>
    %c0_21 = arith.constant 0 : index
    %c0_22 = arith.constant 0 : index
    %37 = vector.load %arg22[%c0_21, %c0_22] : memref<8x32xbf16, #tpu.memory_space<vmem>>, vector<8x32xbf16>
    tpu.vector_store %arg22[%c0_21, %c0_22], %36 {strides = array<i32>} : memref<8x32xbf16, #tpu.memory_space<vmem>>, vector<8x32xbf16>,
    %c0_23 = arith.constant 0 : index
    %c0_24 = arith.constant 0 : index
    %38 = vector.load %arg5[%c0_23, %c0_24] : memref<1x32xf32, #tpu.memory_space<vmem>>, vector<1x32xf32>
    %c0_25 = arith.constant 0 : index
    %c0_26 = arith.constant 0 : index
    %39 = vector.load %arg6[%c0_25, %c0_26] : memref<1x32xf32, #tpu.memory_space<vmem>>, vector<1x32xf32>
    %cst_27 = arith.constant dense<0.000000e+00> : vector<8xf32>
    %40 = vector.multi_reduction <add>, %4, %cst_27 [1] : vector<8x32xf32> to vector<8xf32>
    %41 = vector.shape_cast %40 : vector<8xf32> to vector<8x1xf32>
    %cst_28 = arith.constant 3.200000e+01 : f32
    %42 = vector.broadcast %cst_28 : f32 to vector<8x1xf32>
    %43 = arith.divf %41, %42 : vector<8x1xf32>
    %44 = vector.broadcast %43 : vector<8x1xf32> to vector<8x32xf32>
    %45 = arith.subf %4, %44 : vector<8x32xf32>
    %46 = arith.mulf %45, %45 : vector<8x32xf32>
    %cst_29 = arith.constant dense<0.000000e+00> : vector<8xf32>
    %47 = vector.multi_reduction <add>, %46, %cst_29 [1] : vector<8x32xf32> to vector<8xf32>
    %48 = vector.shape_cast %47 : vector<8xf32> to vector<8x1xf32>
    %cst_30 = arith.constant 3.200000e+01 : f32
    %49 = vector.broadcast %cst_30 : f32 to vector<8x1xf32>
    %50 = arith.divf %48, %49 : vector<8x1xf32>
    %cst_31 = arith.constant 9.99999974E-6 : f32
    %51 = vector.broadcast %cst_31 : f32 to vector<8x1xf32>
    %52 = arith.addf %50, %51 : vector<8x1xf32>
    %53 = math.rsqrt %52 : vector<8x1xf32>
    %54 = vector.broadcast %53 : vector<8x1xf32> to vector<8x32xf32>
    %55 = arith.mulf %45, %54 : vector<8x32xf32>
    %56 = vector.broadcast %38 : vector<1x32xf32> to vector<8x32xf32>
    %57 = arith.mulf %55, %56 : vector<8x32xf32>
    %58 = vector.broadcast %39 : vector<1x32xf32> to vector<8x32xf32>
    %59 = arith.addf %57, %58 : vector<8x32xf32>
    %60 = arith.truncf %59 : vector<8x32xf32> to vector<8x32xbf16>
    %c0_32 = arith.constant 0 : index
    %c0_33 = arith.constant 0 : index
    %61 = vector.load %arg9[%c0_32, %c0_33] : memref<32x32xbf16, #tpu.memory_space<vmem>>, vector<32x32xbf16>
    %cst_34 = arith.constant dense<0.000000e+00> : vector<8x32xf32>
    %62 = tpu.matmul %60, %61, %cst_34 {dimension_numbers = #tpu.dot_dimension_numbers<[1], [0], [0], [1], [0, 0, 1, 1], [], []>} : vector<8x32xbf16>, vector<32x32xbf16>, vector<8x32xf32> -> vector<8x32xf32>
    %c0_35 = arith.constant 0 : index
    %c0_36 = arith.constant 0 : index
    %63 = vector.load %arg10[%c0_35, %c0_36] : memref<1x32xf32, #tpu.memory_space<vmem>>, vector<1x32xf32>
    %64 = vector.broadcast %63 : vector<1x32xf32> to vector<8x32xf32>
    %65 = arith.addf %62, %64 : vector<8x32xf32>
    %66 = arith.truncf %65 : vector<8x32xf32> to vector<8x32xbf16>
    %c0_37 = arith.constant 0 : index
    %c0_38 = arith.constant 0 : index
    %67 = vector.load %arg23[%c0_37, %c0_38] : memref<8x32xbf16, #tpu.memory_space<vmem>>, vector<8x32xbf16>
    tpu.vector_store %arg23[%c0_37, %c0_38], %66 {strides = array<i32>} : memref<8x32xbf16, #tpu.memory_space<vmem>>, vector<8x32xbf16>,
    %c0_39 = arith.constant 0 : index
    %c0_40 = arith.constant 0 : index
    %68 = vector.load %arg5[%c0_39, %c0_40] : memref<1x32xf32, #tpu.memory_space<vmem>>, vector<1x32xf32>
    %c0_41 = arith.constant 0 : index
    %c0_42 = arith.constant 0 : index
    %69 = vector.load %arg6[%c0_41, %c0_42] : memref<1x32xf32, #tpu.memory_space<vmem>>, vector<1x32xf32>
    %cst_43 = arith.constant dense<0.000000e+00> : vector<8xf32>
    %70 = vector.multi_reduction <add>, %7, %cst_43 [1] : vector<8x32xf32> to vector<8xf32>
    %71 = vector.shape_cast %70 : vector<8xf32> to vector<8x1xf32>
    %cst_44 = arith.constant 3.200000e+01 : f32
    %72 = vector.broadcast %cst_44 : f32 to vector<8x1xf32>
    %73 = arith.divf %71, %72 : vector<8x1xf32>
    %74 = vector.broadcast %73 : vector<8x1xf32> to vector<8x32xf32>
    %75 = arith.subf %7, %74 : vector<8x32xf32>
    %76 = arith.mulf %75, %75 : vector<8x32xf32>
    %cst_45 = arith.constant dense<0.000000e+00> : vector<8xf32>
    %77 = vector.multi_reduction <add>, %76, %cst_45 [1] : vector<8x32xf32> to vector<8xf32>
    %78 = vector.shape_cast %77 : vector<8xf32> to vector<8x1xf32>
    %cst_46 = arith.constant 3.200000e+01 : f32
    %79 = vector.broadcast %cst_46 : f32 to vector<8x1xf32>
    %80 = arith.divf %78, %79 : vector<8x1xf32>
    %cst_47 = arith.constant 9.99999974E-6 : f32
    %81 = vector.broadcast %cst_47 : f32 to vector<8x1xf32>
    %82 = arith.addf %80, %81 : vector<8x1xf32>
    %83 = math.rsqrt %82 : vector<8x1xf32>
    %84 = vector.broadcast %83 : vector<8x1xf32> to vector<8x32xf32>
    %85 = arith.mulf %75, %84 : vector<8x32xf32>
    %86 = vector.broadcast %68 : vector<1x32xf32> to vector<8x32xf32>
    %87 = arith.mulf %85, %86 : vector<8x32xf32>
    %88 = vector.broadcast %69 : vector<1x32xf32> to vector<8x32xf32>
    %89 = arith.addf %87, %88 : vector<8x32xf32>
    %90 = arith.truncf %89 : vector<8x32xf32> to vector<8x32xbf16>
    %c0_48 = arith.constant 0 : index
    %c0_49 = arith.constant 0 : index
    %91 = vector.load %arg11[%c0_48, %c0_49] : memref<32x32xbf16, #tpu.memory_space<vmem>>, vector<32x32xbf16>
    %cst_50 = arith.constant dense<0.000000e+00> : vector<8x32xf32>
    %92 = tpu.matmul %90, %91, %cst_50 {dimension_numbers = #tpu.dot_dimension_numbers<[1], [0], [0], [1], [0, 0, 1, 1], [], []>} : vector<8x32xbf16>, vector<32x32xbf16>, vector<8x32xf32> -> vector<8x32xf32>
    %c0_51 = arith.constant 0 : index
    %c0_52 = arith.constant 0 : index
    %93 = vector.load %arg12[%c0_51, %c0_52] : memref<1x32xf32, #tpu.memory_space<vmem>>, vector<1x32xf32>
    %94 = vector.broadcast %93 : vector<1x32xf32> to vector<8x32xf32>
    %95 = arith.addf %92, %94 : vector<8x32xf32>
    %96 = arith.truncf %95 : vector<8x32xf32> to vector<8x32xbf16>
    %c0_53 = arith.constant 0 : index
    %c0_54 = arith.constant 0 : index
    %97 = vector.load %arg24[%c0_53, %c0_54] : memref<8x32xbf16, #tpu.memory_space<vmem>>, vector<8x32xbf16>
    tpu.vector_store %arg24[%c0_53, %c0_54], %96 {strides = array<i32>} : memref<8x32xbf16, #tpu.memory_space<vmem>>, vector<8x32xbf16>,
    %c0_55 = arith.constant 0 : index
    %c0_56 = arith.constant 0 : index
    %98 = vector.load %arg22[%c0_55, %c0_56] : memref<8x32xbf16, #tpu.memory_space<vmem>>, vector<8x8xbf16>
    %c0_57 = arith.constant 0 : index
    %c0_58 = arith.constant 0 : index
    %99 = vector.load %arg23[%c0_57, %c0_58] : memref<8x32xbf16, #tpu.memory_space<vmem>>, vector<8x8xbf16>
    %c0_59 = arith.constant 0 : index
    %c0_60 = arith.constant 0 : index
    %100 = vector.load %arg24[%c0_59, %c0_60] : memref<8x32xbf16, #tpu.memory_space<vmem>>, vector<8x8xbf16>
    %cst_61 = arith.constant dense<0.000000e+00> : vector<8x8xf32>
    %101 = tpu.matmul %98, %99, %cst_61 {dimension_numbers = #tpu.dot_dimension_numbers<[1], [1], [0], [0], [0, 0, 1, 0], [], []>} : vector<8x8xbf16>, vector<8x8xbf16>, vector<8x8xf32> -> vector<8x8xf32>
    %cst_62 = arith.constant dense<0xFF800000> : vector<8xf32>
    %102 = vector.multi_reduction <maximumf>, %101, %cst_62 [1] : vector<8x8xf32> to vector<8xf32>
    %103 = vector.shape_cast %102 : vector<8xf32> to vector<8x1xf32>
    %104 = vector.broadcast %103 : vector<8x1xf32> to vector<8x8xf32>
    %105 = arith.subf %101, %104 : vector<8x8xf32>
    %106 = math.exp %105 : vector<8x8xf32>
    %cst_63 = arith.constant dense<0.000000e+00> : vector<8xf32>
    %107 = vector.multi_reduction <add>, %106, %cst_63 [1] : vector<8x8xf32> to vector<8xf32>
    %108 = vector.shape_cast %107 : vector<8xf32> to vector<8x1xf32>
    %109 = tpu.reciprocal %108 {approx = true} : vector<8x1xf32> -> vector<8x1xf32>
    %110 = vector.broadcast %109 : vector<8x1xf32> to vector<8x8xf32>
    %111 = arith.mulf %106, %110 : vector<8x8xf32>
    %112 = arith.truncf %111 : vector<8x8xf32> to vector<8x8xbf16>
    %cst_64 = arith.constant dense<0.000000e+00> : vector<8x8xf32>
    %113 = tpu.matmul %112, %100, %cst_64 {dimension_numbers = #tpu.dot_dimension_numbers<[1], [0], [0], [1], [0, 0, 1, 1], [], []>} : vector<8x8xbf16>, vector<8x8xbf16>, vector<8x8xf32> -> vector<8x8xf32>
    %c0_65 = arith.constant 0 : index
    %c0_66 = arith.constant 0 : index
    %114 = vector.load %arg25[%c0_65, %c0_66] : memref<8x32xf32, #tpu.memory_space<vmem>>, vector<8x8xf32>
    tpu.vector_store %arg25[%c0_65, %c0_66], %113 {strides = array<i32>} : memref<8x32xf32, #tpu.memory_space<vmem>>, vector<8x8xf32>,
    %c0_67 = arith.constant 0 : index
    %c8 = arith.constant 8 : index
    %115 = vector.load %arg22[%c0_67, %c8] : memref<8x32xbf16, #tpu.memory_space<vmem>>, vector<8x8xbf16>
    %c0_68 = arith.constant 0 : index
    %c8_69 = arith.constant 8 : index
    %116 = vector.load %arg23[%c0_68, %c8_69] : memref<8x32xbf16, #tpu.memory_space<vmem>>, vector<8x8xbf16>
    %c0_70 = arith.constant 0 : index
    %c8_71 = arith.constant 8 : index
    %117 = vector.load %arg24[%c0_70, %c8_71] : memref<8x32xbf16, #tpu.memory_space<vmem>>, vector<8x8xbf16>
    %cst_72 = arith.constant dense<0.000000e+00> : vector<8x8xf32>
    %118 = tpu.matmul %115, %116, %cst_72 {dimension_numbers = #tpu.dot_dimension_numbers<[1], [1], [0], [0], [0, 0, 1, 0], [], []>} : vector<8x8xbf16>, vector<8x8xbf16>, vector<8x8xf32> -> vector<8x8xf32>
    %cst_73 = arith.constant dense<0xFF800000> : vector<8xf32>
    %119 = vector.multi_reduction <maximumf>, %118, %cst_73 [1] : vector<8x8xf32> to vector<8xf32>
    %120 = vector.shape_cast %119 : vector<8xf32> to vector<8x1xf32>
    %121 = vector.broadcast %120 : vector<8x1xf32> to vector<8x8xf32>
    %122 = arith.subf %118, %121 : vector<8x8xf32>
    %123 = math.exp %122 : vector<8x8xf32>
    %cst_74 = arith.constant dense<0.000000e+00> : vector<8xf32>
    %124 = vector.multi_reduction <add>, %123, %cst_74 [1] : vector<8x8xf32> to vector<8xf32>
    %125 = vector.shape_cast %124 : vector<8xf32> to vector<8x1xf32>
    %126 = tpu.reciprocal %125 {approx = true} : vector<8x1xf32> -> vector<8x1xf32>
    %127 = vector.broadcast %126 : vector<8x1xf32> to vector<8x8xf32>
    %128 = arith.mulf %123, %127 : vector<8x8xf32>
    %129 = arith.truncf %128 : vector<8x8xf32> to vector<8x8xbf16>
    %cst_75 = arith.constant dense<0.000000e+00> : vector<8x8xf32>
    %130 = tpu.matmul %129, %117, %cst_75 {dimension_numbers = #tpu.dot_dimension_numbers<[1], [0], [0], [1], [0, 0, 1, 1], [], []>} : vector<8x8xbf16>, vector<8x8xbf16>, vector<8x8xf32> -> vector<8x8xf32>
    %c0_76 = arith.constant 0 : index
    %c8_77 = arith.constant 8 : index
    %131 = vector.load %arg25[%c0_76, %c8_77] : memref<8x32xf32, #tpu.memory_space<vmem>>, vector<8x8xf32>
    tpu.vector_store %arg25[%c0_76, %c8_77], %130 {strides = array<i32>} : memref<8x32xf32, #tpu.memory_space<vmem>>, vector<8x8xf32>,
    %c0_78 = arith.constant 0 : index
    %c16 = arith.constant 16 : index
    %132 = vector.load %arg22[%c0_78, %c16] : memref<8x32xbf16, #tpu.memory_space<vmem>>, vector<8x8xbf16>
    %c0_79 = arith.constant 0 : index
    %c16_80 = arith.constant 16 : index
    %133 = vector.load %arg23[%c0_79, %c16_80] : memref<8x32xbf16, #tpu.memory_space<vmem>>, vector<8x8xbf16>
    %c0_81 = arith.constant 0 : index
    %c16_82 = arith.constant 16 : index
    %134 = vector.load %arg24[%c0_81, %c16_82] : memref<8x32xbf16, #tpu.memory_space<vmem>>, vector<8x8xbf16>
    %cst_83 = arith.constant dense<0.000000e+00> : vector<8x8xf32>
    %135 = tpu.matmul %132, %133, %cst_83 {dimension_numbers = #tpu.dot_dimension_numbers<[1], [1], [0], [0], [0, 0, 1, 0], [], []>} : vector<8x8xbf16>, vector<8x8xbf16>, vector<8x8xf32> -> vector<8x8xf32>
    %cst_84 = arith.constant dense<0xFF800000> : vector<8xf32>
    %136 = vector.multi_reduction <maximumf>, %135, %cst_84 [1] : vector<8x8xf32> to vector<8xf32>
    %137 = vector.shape_cast %136 : vector<8xf32> to vector<8x1xf32>
    %138 = vector.broadcast %137 : vector<8x1xf32> to vector<8x8xf32>
    %139 = arith.subf %135, %138 : vector<8x8xf32>
    %140 = math.exp %139 : vector<8x8xf32>
    %cst_85 = arith.constant dense<0.000000e+00> : vector<8xf32>
    %141 = vector.multi_reduction <add>, %140, %cst_85 [1] : vector<8x8xf32> to vector<8xf32>
    %142 = vector.shape_cast %141 : vector<8xf32> to vector<8x1xf32>
    %143 = tpu.reciprocal %142 {approx = true} : vector<8x1xf32> -> vector<8x1xf32>
    %144 = vector.broadcast %143 : vector<8x1xf32> to vector<8x8xf32>
    %145 = arith.mulf %140, %144 : vector<8x8xf32>
    %146 = arith.truncf %145 : vector<8x8xf32> to vector<8x8xbf16>
    %cst_86 = arith.constant dense<0.000000e+00> : vector<8x8xf32>
    %147 = tpu.matmul %146, %134, %cst_86 {dimension_numbers = #tpu.dot_dimension_numbers<[1], [0], [0], [1], [0, 0, 1, 1], [], []>} : vector<8x8xbf16>, vector<8x8xbf16>, vector<8x8xf32> -> vector<8x8xf32>
    %c0_87 = arith.constant 0 : index
    %c16_88 = arith.constant 16 : index
    %148 = vector.load %arg25[%c0_87, %c16_88] : memref<8x32xf32, #tpu.memory_space<vmem>>, vector<8x8xf32>
    tpu.vector_store %arg25[%c0_87, %c16_88], %147 {strides = array<i32>} : memref<8x32xf32, #tpu.memory_space<vmem>>, vector<8x8xf32>,
    %c0_89 = arith.constant 0 : index
    %c24 = arith.constant 24 : index
    %149 = vector.load %arg22[%c0_89, %c24] : memref<8x32xbf16, #tpu.memory_space<vmem>>, vector<8x8xbf16>
    %c0_90 = arith.constant 0 : index
    %c24_91 = arith.constant 24 : index
    %150 = vector.load %arg23[%c0_90, %c24_91] : memref<8x32xbf16, #tpu.memory_space<vmem>>, vector<8x8xbf16>
    %c0_92 = arith.constant 0 : index
    %c24_93 = arith.constant 24 : index
    %151 = vector.load %arg24[%c0_92, %c24_93] : memref<8x32xbf16, #tpu.memory_space<vmem>>, vector<8x8xbf16>
    %cst_94 = arith.constant dense<0.000000e+00> : vector<8x8xf32>
    %152 = tpu.matmul %149, %150, %cst_94 {dimension_numbers = #tpu.dot_dimension_numbers<[1], [1], [0], [0], [0, 0, 1, 0], [], []>} : vector<8x8xbf16>, vector<8x8xbf16>, vector<8x8xf32> -> vector<8x8xf32>
    %cst_95 = arith.constant dense<0xFF800000> : vector<8xf32>
    %153 = vector.multi_reduction <maximumf>, %152, %cst_95 [1] : vector<8x8xf32> to vector<8xf32>
    %154 = vector.shape_cast %153 : vector<8xf32> to vector<8x1xf32>
    %155 = vector.broadcast %154 : vector<8x1xf32> to vector<8x8xf32>
    %156 = arith.subf %152, %155 : vector<8x8xf32>
    %157 = math.exp %156 : vector<8x8xf32>
    %cst_96 = arith.constant dense<0.000000e+00> : vector<8xf32>
    %158 = vector.multi_reduction <add>, %157, %cst_96 [1] : vector<8x8xf32> to vector<8xf32>
    %159 = vector.shape_cast %158 : vector<8xf32> to vector<8x1xf32>
    %160 = tpu.reciprocal %159 {approx = true} : vector<8x1xf32> -> vector<8x1xf32>
    %161 = vector.broadcast %160 : vector<8x1xf32> to vector<8x8xf32>
    %162 = arith.mulf %157, %161 : vector<8x8xf32>
    %163 = arith.truncf %162 : vector<8x8xf32> to vector<8x8xbf16>
    %cst_97 = arith.constant dense<0.000000e+00> : vector<8x8xf32>
    %164 = tpu.matmul %163, %151, %cst_97 {dimension_numbers = #tpu.dot_dimension_numbers<[1], [0], [0], [1], [0, 0, 1, 1], [], []>} : vector<8x8xbf16>, vector<8x8xbf16>, vector<8x8xf32> -> vector<8x8xf32>
    %c0_98 = arith.constant 0 : index
    %c24_99 = arith.constant 24 : index
    %165 = vector.load %arg25[%c0_98, %c24_99] : memref<8x32xf32, #tpu.memory_space<vmem>>, vector<8x8xf32>
    tpu.vector_store %arg25[%c0_98, %c24_99], %164 {strides = array<i32>} : memref<8x32xf32, #tpu.memory_space<vmem>>, vector<8x8xf32>,
    %c0_100 = arith.constant 0 : index
    %c0_101 = arith.constant 0 : index
    %166 = vector.load %arg25[%c0_100, %c0_101] : memref<8x32xf32, #tpu.memory_space<vmem>>, vector<8x32xf32>
    %167 = arith.truncf %166 : vector<8x32xf32> to vector<8x32xbf16>
    %c0_102 = arith.constant 0 : index
    %c0_103 = arith.constant 0 : index
    %168 = vector.load %arg13[%c0_102, %c0_103] : memref<32x32xbf16, #tpu.memory_space<vmem>>, vector<32x32xbf16>
    %cst_104 = arith.constant dense<0.000000e+00> : vector<8x32xf32>
    %169 = tpu.matmul %167, %168, %cst_104 {dimension_numbers = #tpu.dot_dimension_numbers<[1], [0], [0], [1], [0, 0, 1, 1], [], []>} : vector<8x32xbf16>, vector<32x32xbf16>, vector<8x32xf32> -> vector<8x32xf32>
    %c0_105 = arith.constant 0 : index
    %c0_106 = arith.constant 0 : index
    %170 = vector.load %arg14[%c0_105, %c0_106] : memref<1x32xf32, #tpu.memory_space<vmem>>, vector<1x32xf32>
    %171 = vector.broadcast %170 : vector<1x32xf32> to vector<8x32xf32>
    %172 = arith.addf %169, %171 : vector<8x32xf32>
    %173 = arith.addf %1, %172 : vector<8x32xf32>
    %c0_107 = arith.constant 0 : index
    %c0_108 = arith.constant 0 : index
    %174 = vector.load %arg15[%c0_107, %c0_108] : memref<1x32xf32, #tpu.memory_space<vmem>>, vector<1x32xf32>
    %c0_109 = arith.constant 0 : index
    %c0_110 = arith.constant 0 : index
    %175 = vector.load %arg16[%c0_109, %c0_110] : memref<1x32xf32, #tpu.memory_space<vmem>>, vector<1x32xf32>
    %cst_111 = arith.constant dense<0.000000e+00> : vector<8xf32>
    %176 = vector.multi_reduction <add>, %173, %cst_111 [1] : vector<8x32xf32> to vector<8xf32>
    %177 = vector.shape_cast %176 : vector<8xf32> to vector<8x1xf32>
    %cst_112 = arith.constant 3.200000e+01 : f32
    %178 = vector.broadcast %cst_112 : f32 to vector<8x1xf32>
    %179 = arith.divf %177, %178 : vector<8x1xf32>
    %180 = vector.broadcast %179 : vector<8x1xf32> to vector<8x32xf32>
    %181 = arith.subf %173, %180 : vector<8x32xf32>
    %182 = arith.mulf %181, %181 : vector<8x32xf32>
    %cst_113 = arith.constant dense<0.000000e+00> : vector<8xf32>
    %183 = vector.multi_reduction <add>, %182, %cst_113 [1] : vector<8x32xf32> to vector<8xf32>
    %184 = vector.shape_cast %183 : vector<8xf32> to vector<8x1xf32>
    %cst_114 = arith.constant 3.200000e+01 : f32
    %185 = vector.broadcast %cst_114 : f32 to vector<8x1xf32>
    %186 = arith.divf %184, %185 : vector<8x1xf32>
    %cst_115 = arith.constant 9.99999974E-6 : f32
    %187 = vector.broadcast %cst_115 : f32 to vector<8x1xf32>
    %188 = arith.addf %186, %187 : vector<8x1xf32>
    %189 = math.rsqrt %188 : vector<8x1xf32>
    %190 = vector.broadcast %189 : vector<8x1xf32> to vector<8x32xf32>
    %191 = arith.mulf %181, %190 : vector<8x32xf32>
    %192 = vector.broadcast %174 : vector<1x32xf32> to vector<8x32xf32>
    %193 = arith.mulf %191, %192 : vector<8x32xf32>
    %194 = vector.broadcast %175 : vector<1x32xf32> to vector<8x32xf32>
    %195 = arith.addf %193, %194 : vector<8x32xf32>
    %196 = arith.truncf %195 : vector<8x32xf32> to vector<8x32xbf16>
    %c0_116 = arith.constant 0 : index
    %c0_117 = arith.constant 0 : index
    %197 = vector.load %arg17[%c0_116, %c0_117] : memref<32x128xbf16, #tpu.memory_space<vmem>>, vector<32x128xbf16>
    %cst_118 = arith.constant dense<0.000000e+00> : vector<8x128xf32>
    %198 = tpu.matmul %196, %197, %cst_118 {dimension_numbers = #tpu.dot_dimension_numbers<[1], [0], [0], [1], [0, 0, 1, 1], [], []>} : vector<8x32xbf16>, vector<32x128xbf16>, vector<8x128xf32> -> vector<8x128xf32>
    %c0_119 = arith.constant 0 : index
    %c0_120 = arith.constant 0 : index
    %199 = vector.load %arg18[%c0_119, %c0_120] : memref<1x128xf32, #tpu.memory_space<vmem>>, vector<1x128xf32>
    %200 = vector.broadcast %199 : vector<1x128xf32> to vector<8x128xf32>
    %201 = arith.addf %198, %200 : vector<8x128xf32>
    %cst_121 = arith.constant 1.702000e+00 : f32
    %202 = vector.broadcast %cst_121 : f32 to vector<8x128xf32>
    %203 = arith.mulf %202, %201 : vector<8x128xf32>
    %204 = arith.negf %203 : vector<8x128xf32>
    %205 = math.exp %204 : vector<8x128xf32>
    %cst_122 = arith.constant 1.000000e+00 : f32
    %206 = vector.broadcast %cst_122 : f32 to vector<8x128xf32>
    %207 = arith.addf %206, %205 : vector<8x128xf32>
    %208 = arith.divf %206, %207 : vector<8x128xf32>
    %209 = arith.mulf %201, %208 : vector<8x128xf32>
    %210 = arith.truncf %209 : vector<8x128xf32> to vector<8x128xbf16>
    %c0_123 = arith.constant 0 : index
    %c0_124 = arith.constant 0 : index
    %211 = vector.load %arg19[%c0_123, %c0_124] : memref<128x32xbf16, #tpu.memory_space<vmem>>, vector<128x32xbf16>
    %cst_125 = arith.constant dense<0.000000e+00> : vector<8x32xf32>
    %212 = tpu.matmul %210, %211, %cst_125 {dimension_numbers = #tpu.dot_dimension_numbers<[1], [0], [0], [1], [0, 0, 1, 1], [], []>} : vector<8x128xbf16>, vector<128x32xbf16>, vector<8x32xf32> -> vector<8x32xf32>
    %c0_126 = arith.constant 0 : index
    %c0_127 = arith.constant 0 : index
    %213 = vector.load %arg20[%c0_126, %c0_127] : memref<1x32xf32, #tpu.memory_space<vmem>>, vector<1x32xf32>
    %214 = vector.broadcast %213 : vector<1x32xf32> to vector<8x32xf32>
    %215 = arith.addf %212, %214 : vector<8x32xf32>
    %216 = arith.addf %173, %215 : vector<8x32xf32>
    %217 = arith.truncf %216 : vector<8x32xf32> to vector<8x32xbf16>
    %c0_128 = arith.constant 0 : index
    %c0_129 = arith.constant 0 : index
    %c0_130 = arith.constant 0 : index
    %218 = vector.load %arg21[%c0_128, %c0_129, %c0_130] : memref<1x8x32xbf16, #tpu.memory_space<vmem>>, vector<1x8x32xbf16>
    %219 = vector.shape_cast %218 : vector<1x8x32xbf16> to vector<8x32xbf16>
    %220 = vector.shape_cast %217 : vector<8x32xbf16> to vector<1x8x32xbf16>
    tpu.vector_store %arg21[%c0_128, %c0_129, %c0_130], %220 {strides = array<i32>} : memref<1x8x32xbf16, #tpu.memory_space<vmem>>, vector<1x8x32xbf16>,
    return
  }
  func.func @transform_0(%arg0: i32, %arg1: i32) -> (i32, i32, i32) {
    %c0_i32 = arith.constant 0 : i32
    %c0_i32_0 = arith.constant 0 : i32
    return %arg0, %arg1, %c0_i32 : i32, i32, i32
  }
  func.func @transform_1(%arg0: i32, %arg1: i32) -> (i32, i32, i32) {
    %c0_i32 = arith.constant 0 : i32
    %c0_i32_0 = arith.constant 0 : i32
    %c0_i32_1 = arith.constant 0 : i32
    return %arg0, %c0_i32, %c0_i32_0 : i32, i32, i32
  }
  func.func @transform_2(%arg0: i32, %arg1: i32) -> (i32, i32, i32) {
    %c0_i32 = arith.constant 0 : i32
    %c0_i32_0 = arith.constant 0 : i32
    %c0_i32_1 = arith.constant 0 : i32
    return %arg0, %c0_i32, %c0_i32_0 : i32, i32, i32
  }
  func.func @transform_3(%arg0: i32, %arg1: i32) -> (i32, i32) {
    %c0_i32 = arith.constant 0 : i32
    %c0_i32_0 = arith.constant 0 : i32
    %c0_i32_1 = arith.constant 0 : i32
    return %c0_i32, %c0_i32_0 : i32, i32
  }
  func.func @transform_4(%arg0: i32, %arg1: i32) -> (i32, i32) {
    %c0_i32 = arith.constant 0 : i32
    %c0_i32_0 = arith.constant 0 : i32
    %c0_i32_1 = arith.constant 0 : i32
    return %c0_i32, %c0_i32_0 : i32, i32
  }
  func.func @transform_5(%arg0: i32, %arg1: i32) -> (i32, i32) {
    %c0_i32 = arith.constant 0 : i32
    %c0_i32_0 = arith.constant 0 : i32
    %c0_i32_1 = arith.constant 0 : i32
    return %c0_i32, %c0_i32_0 : i32, i32
  }
  func.func @transform_6(%arg0: i32, %arg1: i32) -> (i32, i32) {
    %c0_i32 = arith.constant 0 : i32
    %c0_i32_0 = arith.constant 0 : i32
    %c0_i32_1 = arith.constant 0 : i32
    return %c0_i32, %c0_i32_0 : i32, i32
  }
  func.func @transform_7(%arg0: i32, %arg1: i32) -> (i32, i32) {
    %c0_i32 = arith.constant 0 : i32
    %c0_i32_0 = arith.constant 0 : i32
    %c0_i32_1 = arith.constant 0 : i32
    return %c0_i32, %c0_i32_0 : i32, i32
  }
  func.func @transform_8(%arg0: i32, %arg1: i32) -> (i32, i32) {
    %c0_i32 = arith.constant 0 : i32
    %c0_i32_0 = arith.constant 0 : i32
    %c0_i32_1 = arith.constant 0 : i32
    return %c0_i32, %c0_i32_0 : i32, i32
  }
  func.func @transform_9(%arg0: i32, %arg1: i32) -> (i32, i32) {
    %c0_i32 = arith.constant 0 : i32
    %c0_i32_0 = arith.constant 0 : i32
    %c0_i32_1 = arith.constant 0 : i32
    return %c0_i32, %c0_i32_0 : i32, i32
  }
  func.func @transform_10(%arg0: i32, %arg1: i32) -> (i32, i32) {
    %c0_i32 = arith.constant 0 : i32
    %c0_i32_0 = arith.constant 0 : i32
    %c0_i32_1 = arith.constant 0 : i32
    return %c0_i32, %c0_i32_0 : i32, i32
  }
  func.func @transform_11(%arg0: i32, %arg1: i32) -> (i32, i32) {
    %c0_i32 = arith.constant 0 : i32
    %c0_i32_0 = arith.constant 0 : i32
    %c0_i32_1 = arith.constant 0 : i32
    return %c0_i32, %c0_i32_0 : i32, i32
  }
  func.func @transform_12(%arg0: i32, %arg1: i32) -> (i32, i32) {
    %c0_i32 = arith.constant 0 : i32
    %c0_i32_0 = arith.constant 0 : i32
    %c0_i32_1 = arith.constant 0 : i32
    return %c0_i32, %c0_i32_0 : i32, i32
  }
  func.func @transform_13(%arg0: i32, %arg1: i32) -> (i32, i32) {
    %c0_i32 = arith.constant 0 : i32
    %c0_i32_0 = arith.constant 0 : i32
    %c0_i32_1 = arith.constant 0 : i32
    return %c0_i32, %c0_i32_0 : i32, i32
  }
  func.func @transform_14(%arg0: i32, %arg1: i32) -> (i32, i32) {
    %c0_i32 = arith.constant 0 : i32
    %c0_i32_0 = arith.constant 0 : i32
    %c0_i32_1 = arith.constant 0 : i32
    return %c0_i32, %c0_i32_0 : i32, i32
  }
  func.func @transform_15(%arg0: i32, %arg1: i32) -> (i32, i32) {
    %c0_i32 = arith.constant 0 : i32
    %c0_i32_0 = arith.constant 0 : i32
    %c0_i32_1 = arith.constant 0 : i32
    return %c0_i32, %c0_i32_0 : i32, i32
  }
  func.func @transform_16(%arg0: i32, %arg1: i32) -> (i32, i32) {
    %c0_i32 = arith.constant 0 : i32
    %c0_i32_0 = arith.constant 0 : i32
    %c0_i32_1 = arith.constant 0 : i32
    return %c0_i32, %c0_i32_0 : i32, i32
  }
  func.func @transform_17(%arg0: i32, %arg1: i32) -> (i32, i32) {
    %c0_i32 = arith.constant 0 : i32
    %c0_i32_0 = arith.constant 0 : i32
    %c0_i32_1 = arith.constant 0 : i32
    return %c0_i32, %c0_i32_0 : i32, i32
  }
  func.func @transform_18(%arg0: i32, %arg1: i32) -> (i32, i32) {
    %c0_i32 = arith.constant 0 : i32
    %c0_i32_0 = arith.constant 0 : i32
    %c0_i32_1 = arith.constant 0 : i32
    return %c0_i32, %c0_i32_0 : i32, i32
  }
  func.func @transform_19(%arg0: i32, %arg1: i32) -> (i32, i32, i32) {
    %c0_i32 = arith.constant 0 : i32
    %c0_i32_0 = arith.constant 0 : i32
    return %arg0, %arg1, %c0_i32 : i32, i32, i32
  }
}

module attributes {stable_mosaic.version = 11 : i64} {
  func.func @_cross_block_kernel(%arg0: i32, %arg1: i32, %arg2: memref<1x8x32xbf16, #tpu.memory_space<vmem>>, %arg3: memref<1x8x32xbf16, #tpu.memory_space<vmem>>, %arg4: memref<1x8x32xbf16, #tpu.memory_space<vmem>>, %arg5: memref<1x32xf32, #tpu.memory_space<vmem>>, %arg6: memref<1x32xf32, #tpu.memory_space<vmem>>, %arg7: memref<32x32xbf16, #tpu.memory_space<vmem>>, %arg8: memref<1x32xf32, #tpu.memory_space<vmem>>, %arg9: memref<32x32xbf16, #tpu.memory_space<vmem>>, %arg10: memref<1x32xf32, #tpu.memory_space<vmem>>, %arg11: memref<32x32xbf16, #tpu.memory_space<vmem>>, %arg12: memref<1x32xf32, #tpu.memory_space<vmem>>, %arg13: memref<32x32xbf16, #tpu.memory_space<vmem>>, %arg14: memref<1x32xf32, #tpu.memory_space<vmem>>, %arg15: memref<1x32xf32, #tpu.memory_space<vmem>>, %arg16: memref<1x32xf32, #tpu.memory_space<vmem>>, %arg17: memref<32x128xbf16, #tpu.memory_space<vmem>>, %arg18: memref<1x128xf32, #tpu.memory_space<vmem>>, %arg19: memref<128x32xbf16, #tpu.memory_space<vmem>>, %arg20: memref<1x32xf32, #tpu.memory_space<vmem>>, %arg21: memref<1x8x32xf32, #tpu.memory_space<vmem>>, %arg22: memref<1x8x8xf32, #tpu.memory_space<vmem>>, %arg23: memref<8x32xbf16, #tpu.memory_space<vmem>>, %arg24: memref<8x32xbf16, #tpu.memory_space<vmem>>, %arg25: memref<8x32xbf16, #tpu.memory_space<vmem>>, %arg26: memref<8x32xf32, #tpu.memory_space<vmem>>, %arg27: memref<8x8xf32, #tpu.memory_space<vmem>>) attributes {dimension_semantics = [#tpu.dimension_semantics<parallel>, #tpu.dimension_semantics<parallel>], iteration_bounds = array<i64: 2, 1>, scalar_prefetch = 0 : i64, scratch_operands = 5 : i64, tpu.core_type = #tpu.core_type<tc>, window_params = [{transform_indices = @transform_0, window_bounds = array<i64: 1, 8, 32>}, {transform_indices = @transform_1, window_bounds = array<i64: 1, 8, 32>}, {transform_indices = @transform_2, window_bounds = array<i64: 1, 8, 32>}, {pipeline_mode = #tpu.pipeline_mode<synchronous>, transform_indices = @transform_3, window_bounds = array<i64: 1, 32>}, {pipeline_mode = #tpu.pipeline_mode<synchronous>, transform_indices = @transform_4, window_bounds = array<i64: 1, 32>}, {pipeline_mode = #tpu.pipeline_mode<synchronous>, transform_indices = @transform_5, window_bounds = array<i64: 32, 32>}, {pipeline_mode = #tpu.pipeline_mode<synchronous>, transform_indices = @transform_6, window_bounds = array<i64: 1, 32>}, {pipeline_mode = #tpu.pipeline_mode<synchronous>, transform_indices = @transform_7, window_bounds = array<i64: 32, 32>}, {pipeline_mode = #tpu.pipeline_mode<synchronous>, transform_indices = @transform_8, window_bounds = array<i64: 1, 32>}, {pipeline_mode = #tpu.pipeline_mode<synchronous>, transform_indices = @transform_9, window_bounds = array<i64: 32, 32>}, {pipeline_mode = #tpu.pipeline_mode<synchronous>, transform_indices = @transform_10, window_bounds = array<i64: 1, 32>}, {pipeline_mode = #tpu.pipeline_mode<synchronous>, transform_indices = @transform_11, window_bounds = array<i64: 32, 32>}, {pipeline_mode = #tpu.pipeline_mode<synchronous>, transform_indices = @transform_12, window_bounds = array<i64: 1, 32>}, {pipeline_mode = #tpu.pipeline_mode<synchronous>, transform_indices = @transform_13, window_bounds = array<i64: 1, 32>}, {pipeline_mode = #tpu.pipeline_mode<synchronous>, transform_indices = @transform_14, window_bounds = array<i64: 1, 32>}, {pipeline_mode = #tpu.pipeline_mode<synchronous>, transform_indices = @transform_15, window_bounds = array<i64: 32, 128>}, {pipeline_mode = #tpu.pipeline_mode<synchronous>, transform_indices = @transform_16, window_bounds = array<i64: 1, 128>}, {pipeline_mode = #tpu.pipeline_mode<synchronous>, transform_indices = @transform_17, window_bounds = array<i64: 128, 32>}, {pipeline_mode = #tpu.pipeline_mode<synchronous>, transform_indices = @transform_18, window_bounds = array<i64: 1, 32>}, {transform_indices = @transform_19, window_bounds = array<i64: 1, 8, 32>}, {transform_indices = @transform_20, window_bounds = array<i64: 1, 8, 8>}]} {
    %c0 = arith.constant 0 : index
    %c0_0 = arith.constant 0 : index
    %c0_1 = arith.constant 0 : index
    %0 = vector.load %arg2[%c0, %c0_0, %c0_1] : memref<1x8x32xbf16, #tpu.memory_space<vmem>>, vector<1x8x32xbf16>
    %1 = vector.shape_cast %0 : vector<1x8x32xbf16> to vector<8x32xbf16>
    %2 = arith.extf %1 : vector<8x32xbf16> to vector<8x32xf32>
    %c0_2 = arith.constant 0 : index
    %c0_3 = arith.constant 0 : index
    %c0_4 = arith.constant 0 : index
    %3 = vector.load %arg3[%c0_2, %c0_3, %c0_4] : memref<1x8x32xbf16, #tpu.memory_space<vmem>>, vector<1x8x32xbf16>
    %4 = vector.shape_cast %3 : vector<1x8x32xbf16> to vector<8x32xbf16>
    %5 = arith.extf %4 : vector<8x32xbf16> to vector<8x32xf32>
    %c0_5 = arith.constant 0 : index
    %c0_6 = arith.constant 0 : index
    %c0_7 = arith.constant 0 : index
    %6 = vector.load %arg4[%c0_5, %c0_6, %c0_7] : memref<1x8x32xbf16, #tpu.memory_space<vmem>>, vector<1x8x32xbf16>
    %7 = vector.shape_cast %6 : vector<1x8x32xbf16> to vector<8x32xbf16>
    %8 = arith.extf %7 : vector<8x32xbf16> to vector<8x32xf32>
    %c0_8 = arith.constant 0 : index
    %c0_9 = arith.constant 0 : index
    %9 = vector.load %arg5[%c0_8, %c0_9] : memref<1x32xf32, #tpu.memory_space<vmem>>, vector<1x32xf32>
    %c0_10 = arith.constant 0 : index
    %c0_11 = arith.constant 0 : index
    %10 = vector.load %arg6[%c0_10, %c0_11] : memref<1x32xf32, #tpu.memory_space<vmem>>, vector<1x32xf32>
    %cst = arith.constant dense<0.000000e+00> : vector<8xf32>
    %11 = vector.multi_reduction <add>, %2, %cst [1] : vector<8x32xf32> to vector<8xf32>
    %12 = vector.shape_cast %11 : vector<8xf32> to vector<8x1xf32>
    %cst_12 = arith.constant 3.200000e+01 : f32
    %13 = vector.broadcast %cst_12 : f32 to vector<8x1xf32>
    %14 = arith.divf %12, %13 : vector<8x1xf32>
    %15 = vector.broadcast %14 : vector<8x1xf32> to vector<8x32xf32>
    %16 = arith.subf %2, %15 : vector<8x32xf32>
    %17 = arith.mulf %16, %16 : vector<8x32xf32>
    %cst_13 = arith.constant dense<0.000000e+00> : vector<8xf32>
    %18 = vector.multi_reduction <add>, %17, %cst_13 [1] : vector<8x32xf32> to vector<8xf32>
    %19 = vector.shape_cast %18 : vector<8xf32> to vector<8x1xf32>
    %cst_14 = arith.constant 3.200000e+01 : f32
    %20 = vector.broadcast %cst_14 : f32 to vector<8x1xf32>
    %21 = arith.divf %19, %20 : vector<8x1xf32>
    %cst_15 = arith.constant 9.99999974E-6 : f32
    %22 = vector.broadcast %cst_15 : f32 to vector<8x1xf32>
    %23 = arith.addf %21, %22 : vector<8x1xf32>
    %24 = math.rsqrt %23 : vector<8x1xf32>
    %25 = vector.broadcast %24 : vector<8x1xf32> to vector<8x32xf32>
    %26 = arith.mulf %16, %25 : vector<8x32xf32>
    %27 = vector.broadcast %9 : vector<1x32xf32> to vector<8x32xf32>
    %28 = arith.mulf %26, %27 : vector<8x32xf32>
    %29 = vector.broadcast %10 : vector<1x32xf32> to vector<8x32xf32>
    %30 = arith.addf %28, %29 : vector<8x32xf32>
    %31 = arith.truncf %30 : vector<8x32xf32> to vector<8x32xbf16>
    %c0_16 = arith.constant 0 : index
    %c0_17 = arith.constant 0 : index
    %32 = vector.load %arg7[%c0_16, %c0_17] : memref<32x32xbf16, #tpu.memory_space<vmem>>, vector<32x32xbf16>
    %cst_18 = arith.constant dense<0.000000e+00> : vector<8x32xf32>
    %33 = tpu.matmul %31, %32, %cst_18 {dimension_numbers = #tpu.dot_dimension_numbers<[1], [0], [0], [1], [0, 0, 1, 1], [], []>} : vector<8x32xbf16>, vector<32x32xbf16>, vector<8x32xf32> -> vector<8x32xf32>
    %c0_19 = arith.constant 0 : index
    %c0_20 = arith.constant 0 : index
    %34 = vector.load %arg8[%c0_19, %c0_20] : memref<1x32xf32, #tpu.memory_space<vmem>>, vector<1x32xf32>
    %35 = vector.broadcast %34 : vector<1x32xf32> to vector<8x32xf32>
    %36 = arith.addf %33, %35 : vector<8x32xf32>
    %37 = arith.truncf %36 : vector<8x32xf32> to vector<8x32xbf16>
    %c0_21 = arith.constant 0 : index
    %c0_22 = arith.constant 0 : index
    %38 = vector.load %arg23[%c0_21, %c0_22] : memref<8x32xbf16, #tpu.memory_space<vmem>>, vector<8x32xbf16>
    tpu.vector_store %arg23[%c0_21, %c0_22], %37 {strides = array<i32>} : memref<8x32xbf16, #tpu.memory_space<vmem>>, vector<8x32xbf16>,
    %c0_23 = arith.constant 0 : index
    %c0_24 = arith.constant 0 : index
    %39 = vector.load %arg5[%c0_23, %c0_24] : memref<1x32xf32, #tpu.memory_space<vmem>>, vector<1x32xf32>
    %c0_25 = arith.constant 0 : index
    %c0_26 = arith.constant 0 : index
    %40 = vector.load %arg6[%c0_25, %c0_26] : memref<1x32xf32, #tpu.memory_space<vmem>>, vector<1x32xf32>
    %cst_27 = arith.constant dense<0.000000e+00> : vector<8xf32>
    %41 = vector.multi_reduction <add>, %5, %cst_27 [1] : vector<8x32xf32> to vector<8xf32>
    %42 = vector.shape_cast %41 : vector<8xf32> to vector<8x1xf32>
    %cst_28 = arith.constant 3.200000e+01 : f32
    %43 = vector.broadcast %cst_28 : f32 to vector<8x1xf32>
    %44 = arith.divf %42, %43 : vector<8x1xf32>
    %45 = vector.broadcast %44 : vector<8x1xf32> to vector<8x32xf32>
    %46 = arith.subf %5, %45 : vector<8x32xf32>
    %47 = arith.mulf %46, %46 : vector<8x32xf32>
    %cst_29 = arith.constant dense<0.000000e+00> : vector<8xf32>
    %48 = vector.multi_reduction <add>, %47, %cst_29 [1] : vector<8x32xf32> to vector<8xf32>
    %49 = vector.shape_cast %48 : vector<8xf32> to vector<8x1xf32>
    %cst_30 = arith.constant 3.200000e+01 : f32
    %50 = vector.broadcast %cst_30 : f32 to vector<8x1xf32>
    %51 = arith.divf %49, %50 : vector<8x1xf32>
    %cst_31 = arith.constant 9.99999974E-6 : f32
    %52 = vector.broadcast %cst_31 : f32 to vector<8x1xf32>
    %53 = arith.addf %51, %52 : vector<8x1xf32>
    %54 = math.rsqrt %53 : vector<8x1xf32>
    %55 = vector.broadcast %54 : vector<8x1xf32> to vector<8x32xf32>
    %56 = arith.mulf %46, %55 : vector<8x32xf32>
    %57 = vector.broadcast %39 : vector<1x32xf32> to vector<8x32xf32>
    %58 = arith.mulf %56, %57 : vector<8x32xf32>
    %59 = vector.broadcast %40 : vector<1x32xf32> to vector<8x32xf32>
    %60 = arith.addf %58, %59 : vector<8x32xf32>
    %61 = arith.truncf %60 : vector<8x32xf32> to vector<8x32xbf16>
    %c0_32 = arith.constant 0 : index
    %c0_33 = arith.constant 0 : index
    %62 = vector.load %arg9[%c0_32, %c0_33] : memref<32x32xbf16, #tpu.memory_space<vmem>>, vector<32x32xbf16>
    %cst_34 = arith.constant dense<0.000000e+00> : vector<8x32xf32>
    %63 = tpu.matmul %61, %62, %cst_34 {dimension_numbers = #tpu.dot_dimension_numbers<[1], [0], [0], [1], [0, 0, 1, 1], [], []>} : vector<8x32xbf16>, vector<32x32xbf16>, vector<8x32xf32> -> vector<8x32xf32>
    %c0_35 = arith.constant 0 : index
    %c0_36 = arith.constant 0 : index
    %64 = vector.load %arg10[%c0_35, %c0_36] : memref<1x32xf32, #tpu.memory_space<vmem>>, vector<1x32xf32>
    %65 = vector.broadcast %64 : vector<1x32xf32> to vector<8x32xf32>
    %66 = arith.addf %63, %65 : vector<8x32xf32>
    %67 = arith.truncf %66 : vector<8x32xf32> to vector<8x32xbf16>
    %c0_37 = arith.constant 0 : index
    %c0_38 = arith.constant 0 : index
    %68 = vector.load %arg24[%c0_37, %c0_38] : memref<8x32xbf16, #tpu.memory_space<vmem>>, vector<8x32xbf16>
    tpu.vector_store %arg24[%c0_37, %c0_38], %67 {strides = array<i32>} : memref<8x32xbf16, #tpu.memory_space<vmem>>, vector<8x32xbf16>,
    %c0_39 = arith.constant 0 : index
    %c0_40 = arith.constant 0 : index
    %69 = vector.load %arg5[%c0_39, %c0_40] : memref<1x32xf32, #tpu.memory_space<vmem>>, vector<1x32xf32>
    %c0_41 = arith.constant 0 : index
    %c0_42 = arith.constant 0 : index
    %70 = vector.load %arg6[%c0_41, %c0_42] : memref<1x32xf32, #tpu.memory_space<vmem>>, vector<1x32xf32>
    %cst_43 = arith.constant dense<0.000000e+00> : vector<8xf32>
    %71 = vector.multi_reduction <add>, %8, %cst_43 [1] : vector<8x32xf32> to vector<8xf32>
    %72 = vector.shape_cast %71 : vector<8xf32> to vector<8x1xf32>
    %cst_44 = arith.constant 3.200000e+01 : f32
    %73 = vector.broadcast %cst_44 : f32 to vector<8x1xf32>
    %74 = arith.divf %72, %73 : vector<8x1xf32>
    %75 = vector.broadcast %74 : vector<8x1xf32> to vector<8x32xf32>
    %76 = arith.subf %8, %75 : vector<8x32xf32>
    %77 = arith.mulf %76, %76 : vector<8x32xf32>
    %cst_45 = arith.constant dense<0.000000e+00> : vector<8xf32>
    %78 = vector.multi_reduction <add>, %77, %cst_45 [1] : vector<8x32xf32> to vector<8xf32>
    %79 = vector.shape_cast %78 : vector<8xf32> to vector<8x1xf32>
    %cst_46 = arith.constant 3.200000e+01 : f32
    %80 = vector.broadcast %cst_46 : f32 to vector<8x1xf32>
    %81 = arith.divf %79, %80 : vector<8x1xf32>
    %cst_47 = arith.constant 9.99999974E-6 : f32
    %82 = vector.broadcast %cst_47 : f32 to vector<8x1xf32>
    %83 = arith.addf %81, %82 : vector<8x1xf32>
    %84 = math.rsqrt %83 : vector<8x1xf32>
    %85 = vector.broadcast %84 : vector<8x1xf32> to vector<8x32xf32>
    %86 = arith.mulf %76, %85 : vector<8x32xf32>
    %87 = vector.broadcast %69 : vector<1x32xf32> to vector<8x32xf32>
    %88 = arith.mulf %86, %87 : vector<8x32xf32>
    %89 = vector.broadcast %70 : vector<1x32xf32> to vector<8x32xf32>
    %90 = arith.addf %88, %89 : vector<8x32xf32>
    %91 = arith.truncf %90 : vector<8x32xf32> to vector<8x32xbf16>
    %c0_48 = arith.constant 0 : index
    %c0_49 = arith.constant 0 : index
    %92 = vector.load %arg11[%c0_48, %c0_49] : memref<32x32xbf16, #tpu.memory_space<vmem>>, vector<32x32xbf16>
    %cst_50 = arith.constant dense<0.000000e+00> : vector<8x32xf32>
    %93 = tpu.matmul %91, %92, %cst_50 {dimension_numbers = #tpu.dot_dimension_numbers<[1], [0], [0], [1], [0, 0, 1, 1], [], []>} : vector<8x32xbf16>, vector<32x32xbf16>, vector<8x32xf32> -> vector<8x32xf32>
    %c0_51 = arith.constant 0 : index
    %c0_52 = arith.constant 0 : index
    %94 = vector.load %arg12[%c0_51, %c0_52] : memref<1x32xf32, #tpu.memory_space<vmem>>, vector<1x32xf32>
    %95 = vector.broadcast %94 : vector<1x32xf32> to vector<8x32xf32>
    %96 = arith.addf %93, %95 : vector<8x32xf32>
    %97 = arith.truncf %96 : vector<8x32xf32> to vector<8x32xbf16>
    %c0_53 = arith.constant 0 : index
    %c0_54 = arith.constant 0 : index
    %98 = vector.load %arg25[%c0_53, %c0_54] : memref<8x32xbf16, #tpu.memory_space<vmem>>, vector<8x32xbf16>
    tpu.vector_store %arg25[%c0_53, %c0_54], %97 {strides = array<i32>} : memref<8x32xbf16, #tpu.memory_space<vmem>>, vector<8x32xbf16>,
    %cst_55 = arith.constant 0.000000e+00 : f32
    %99 = vector.broadcast %cst_55 : f32 to vector<8x8xf32>
    %c0_56 = arith.constant 0 : index
    %c0_57 = arith.constant 0 : index
    %100 = vector.load %arg27[%c0_56, %c0_57] : memref<8x8xf32, #tpu.memory_space<vmem>>, vector<8x8xf32>
    tpu.vector_store %arg27[%c0_56, %c0_57], %99 {strides = array<i32>} : memref<8x8xf32, #tpu.memory_space<vmem>>, vector<8x8xf32>,
    %c0_58 = arith.constant 0 : index
    %c0_59 = arith.constant 0 : index
    %101 = vector.load %arg23[%c0_58, %c0_59] : memref<8x32xbf16, #tpu.memory_space<vmem>>, vector<8x8xbf16>
    %c0_60 = arith.constant 0 : index
    %c0_61 = arith.constant 0 : index
    %102 = vector.load %arg24[%c0_60, %c0_61] : memref<8x32xbf16, #tpu.memory_space<vmem>>, vector<8x8xbf16>
    %c0_62 = arith.constant 0 : index
    %c0_63 = arith.constant 0 : index
    %103 = vector.load %arg25[%c0_62, %c0_63] : memref<8x32xbf16, #tpu.memory_space<vmem>>, vector<8x8xbf16>
    %cst_64 = arith.constant dense<0.000000e+00> : vector<8x8xf32>
    %104 = tpu.matmul %101, %102, %cst_64 {dimension_numbers = #tpu.dot_dimension_numbers<[1], [1], [0], [0], [0, 0, 1, 0], [], []>} : vector<8x8xbf16>, vector<8x8xbf16>, vector<8x8xf32> -> vector<8x8xf32>
    %cst_65 = arith.constant dense<0xFF800000> : vector<8xf32>
    %105 = vector.multi_reduction <maximumf>, %104, %cst_65 [1] : vector<8x8xf32> to vector<8xf32>
    %106 = vector.shape_cast %105 : vector<8xf32> to vector<8x1xf32>
    %107 = vector.broadcast %106 : vector<8x1xf32> to vector<8x8xf32>
    %108 = arith.subf %104, %107 : vector<8x8xf32>
    %109 = math.exp %108 : vector<8x8xf32>
    %cst_66 = arith.constant dense<0.000000e+00> : vector<8xf32>
    %110 = vector.multi_reduction <add>, %109, %cst_66 [1] : vector<8x8xf32> to vector<8xf32>
    %111 = vector.shape_cast %110 : vector<8xf32> to vector<8x1xf32>
    %112 = vector.broadcast %111 : vector<8x1xf32> to vector<8x8xf32>
    %113 = arith.divf %109, %112 : vector<8x8xf32>
    %114 = arith.truncf %113 : vector<8x8xf32> to vector<8x8xbf16>
    %cst_67 = arith.constant dense<0.000000e+00> : vector<8x8xf32>
    %115 = tpu.matmul %114, %103, %cst_67 {dimension_numbers = #tpu.dot_dimension_numbers<[1], [0], [0], [1], [0, 0, 1, 1], [], []>} : vector<8x8xbf16>, vector<8x8xbf16>, vector<8x8xf32> -> vector<8x8xf32>
    %c0_68 = arith.constant 0 : index
    %c0_69 = arith.constant 0 : index
    %116 = vector.load %arg26[%c0_68, %c0_69] : memref<8x32xf32, #tpu.memory_space<vmem>>, vector<8x8xf32>
    tpu.vector_store %arg26[%c0_68, %c0_69], %115 {strides = array<i32>} : memref<8x32xf32, #tpu.memory_space<vmem>>, vector<8x8xf32>,
    %c0_70 = arith.constant 0 : index
    %c0_71 = arith.constant 0 : index
    %117 = vector.load %arg27[%c0_70, %c0_71] : memref<8x8xf32, #tpu.memory_space<vmem>>, vector<8x8xf32>
    %118 = arith.addf %117, %113 : vector<8x8xf32>
    %c0_72 = arith.constant 0 : index
    %c0_73 = arith.constant 0 : index
    %119 = vector.load %arg27[%c0_72, %c0_73] : memref<8x8xf32, #tpu.memory_space<vmem>>, vector<8x8xf32>
    tpu.vector_store %arg27[%c0_72, %c0_73], %118 {strides = array<i32>} : memref<8x8xf32, #tpu.memory_space<vmem>>, vector<8x8xf32>,
    %c0_74 = arith.constant 0 : index
    %c8 = arith.constant 8 : index
    %120 = vector.load %arg23[%c0_74, %c8] : memref<8x32xbf16, #tpu.memory_space<vmem>>, vector<8x8xbf16>
    %c0_75 = arith.constant 0 : index
    %c8_76 = arith.constant 8 : index
    %121 = vector.load %arg24[%c0_75, %c8_76] : memref<8x32xbf16, #tpu.memory_space<vmem>>, vector<8x8xbf16>
    %c0_77 = arith.constant 0 : index
    %c8_78 = arith.constant 8 : index
    %122 = vector.load %arg25[%c0_77, %c8_78] : memref<8x32xbf16, #tpu.memory_space<vmem>>, vector<8x8xbf16>
    %cst_79 = arith.constant dense<0.000000e+00> : vector<8x8xf32>
    %123 = tpu.matmul %120, %121, %cst_79 {dimension_numbers = #tpu.dot_dimension_numbers<[1], [1], [0], [0], [0, 0, 1, 0], [], []>} : vector<8x8xbf16>, vector<8x8xbf16>, vector<8x8xf32> -> vector<8x8xf32>
    %cst_80 = arith.constant dense<0xFF800000> : vector<8xf32>
    %124 = vector.multi_reduction <maximumf>, %123, %cst_80 [1] : vector<8x8xf32> to vector<8xf32>
    %125 = vector.shape_cast %124 : vector<8xf32> to vector<8x1xf32>
    %126 = vector.broadcast %125 : vector<8x1xf32> to vector<8x8xf32>
    %127 = arith.subf %123, %126 : vector<8x8xf32>
    %128 = math.exp %127 : vector<8x8xf32>
    %cst_81 = arith.constant dense<0.000000e+00> : vector<8xf32>
    %129 = vector.multi_reduction <add>, %128, %cst_81 [1] : vector<8x8xf32> to vector<8xf32>
    %130 = vector.shape_cast %129 : vector<8xf32> to vector<8x1xf32>
    %131 = vector.broadcast %130 : vector<8x1xf32> to vector<8x8xf32>
    %132 = arith.divf %128, %131 : vector<8x8xf32>
    %133 = arith.truncf %132 : vector<8x8xf32> to vector<8x8xbf16>
    %cst_82 = arith.constant dense<0.000000e+00> : vector<8x8xf32>
    %134 = tpu.matmul %133, %122, %cst_82 {dimension_numbers = #tpu.dot_dimension_numbers<[1], [0], [0], [1], [0, 0, 1, 1], [], []>} : vector<8x8xbf16>, vector<8x8xbf16>, vector<8x8xf32> -> vector<8x8xf32>
    %c0_83 = arith.constant 0 : index
    %c8_84 = arith.constant 8 : index
    %135 = vector.load %arg26[%c0_83, %c8_84] : memref<8x32xf32, #tpu.memory_space<vmem>>, vector<8x8xf32>
    tpu.vector_store %arg26[%c0_83, %c8_84], %134 {strides = array<i32>} : memref<8x32xf32, #tpu.memory_space<vmem>>, vector<8x8xf32>,
    %c0_85 = arith.constant 0 : index
    %c0_86 = arith.constant 0 : index
    %136 = vector.load %arg27[%c0_85, %c0_86] : memref<8x8xf32, #tpu.memory_space<vmem>>, vector<8x8xf32>
    %137 = arith.addf %136, %132 : vector<8x8xf32>
    %c0_87 = arith.constant 0 : index
    %c0_88 = arith.constant 0 : index
    %138 = vector.load %arg27[%c0_87, %c0_88] : memref<8x8xf32, #tpu.memory_space<vmem>>, vector<8x8xf32>
    tpu.vector_store %arg27[%c0_87, %c0_88], %137 {strides = array<i32>} : memref<8x8xf32, #tpu.memory_space<vmem>>, vector<8x8xf32>,
    %c0_89 = arith.constant 0 : index
    %c16 = arith.constant 16 : index
    %139 = vector.load %arg23[%c0_89, %c16] : memref<8x32xbf16, #tpu.memory_space<vmem>>, vector<8x8xbf16>
    %c0_90 = arith.constant 0 : index
    %c16_91 = arith.constant 16 : index
    %140 = vector.load %arg24[%c0_90, %c16_91] : memref<8x32xbf16, #tpu.memory_space<vmem>>, vector<8x8xbf16>
    %c0_92 = arith.constant 0 : index
    %c16_93 = arith.constant 16 : index
    %141 = vector.load %arg25[%c0_92, %c16_93] : memref<8x32xbf16, #tpu.memory_space<vmem>>, vector<8x8xbf16>
    %cst_94 = arith.constant dense<0.000000e+00> : vector<8x8xf32>
    %142 = tpu.matmul %139, %140, %cst_94 {dimension_numbers = #tpu.dot_dimension_numbers<[1], [1], [0], [0], [0, 0, 1, 0], [], []>} : vector<8x8xbf16>, vector<8x8xbf16>, vector<8x8xf32> -> vector<8x8xf32>
    %cst_95 = arith.constant dense<0xFF800000> : vector<8xf32>
    %143 = vector.multi_reduction <maximumf>, %142, %cst_95 [1] : vector<8x8xf32> to vector<8xf32>
    %144 = vector.shape_cast %143 : vector<8xf32> to vector<8x1xf32>
    %145 = vector.broadcast %144 : vector<8x1xf32> to vector<8x8xf32>
    %146 = arith.subf %142, %145 : vector<8x8xf32>
    %147 = math.exp %146 : vector<8x8xf32>
    %cst_96 = arith.constant dense<0.000000e+00> : vector<8xf32>
    %148 = vector.multi_reduction <add>, %147, %cst_96 [1] : vector<8x8xf32> to vector<8xf32>
    %149 = vector.shape_cast %148 : vector<8xf32> to vector<8x1xf32>
    %150 = vector.broadcast %149 : vector<8x1xf32> to vector<8x8xf32>
    %151 = arith.divf %147, %150 : vector<8x8xf32>
    %152 = arith.truncf %151 : vector<8x8xf32> to vector<8x8xbf16>
    %cst_97 = arith.constant dense<0.000000e+00> : vector<8x8xf32>
    %153 = tpu.matmul %152, %141, %cst_97 {dimension_numbers = #tpu.dot_dimension_numbers<[1], [0], [0], [1], [0, 0, 1, 1], [], []>} : vector<8x8xbf16>, vector<8x8xbf16>, vector<8x8xf32> -> vector<8x8xf32>
    %c0_98 = arith.constant 0 : index
    %c16_99 = arith.constant 16 : index
    %154 = vector.load %arg26[%c0_98, %c16_99] : memref<8x32xf32, #tpu.memory_space<vmem>>, vector<8x8xf32>
    tpu.vector_store %arg26[%c0_98, %c16_99], %153 {strides = array<i32>} : memref<8x32xf32, #tpu.memory_space<vmem>>, vector<8x8xf32>,
    %c0_100 = arith.constant 0 : index
    %c0_101 = arith.constant 0 : index
    %155 = vector.load %arg27[%c0_100, %c0_101] : memref<8x8xf32, #tpu.memory_space<vmem>>, vector<8x8xf32>
    %156 = arith.addf %155, %151 : vector<8x8xf32>
    %c0_102 = arith.constant 0 : index
    %c0_103 = arith.constant 0 : index
    %157 = vector.load %arg27[%c0_102, %c0_103] : memref<8x8xf32, #tpu.memory_space<vmem>>, vector<8x8xf32>
    tpu.vector_store %arg27[%c0_102, %c0_103], %156 {strides = array<i32>} : memref<8x8xf32, #tpu.memory_space<vmem>>, vector<8x8xf32>,
    %c0_104 = arith.constant 0 : index
    %c24 = arith.constant 24 : index
    %158 = vector.load %arg23[%c0_104, %c24] : memref<8x32xbf16, #tpu.memory_space<vmem>>, vector<8x8xbf16>
    %c0_105 = arith.constant 0 : index
    %c24_106 = arith.constant 24 : index
    %159 = vector.load %arg24[%c0_105, %c24_106] : memref<8x32xbf16, #tpu.memory_space<vmem>>, vector<8x8xbf16>
    %c0_107 = arith.constant 0 : index
    %c24_108 = arith.constant 24 : index
    %160 = vector.load %arg25[%c0_107, %c24_108] : memref<8x32xbf16, #tpu.memory_space<vmem>>, vector<8x8xbf16>
    %cst_109 = arith.constant dense<0.000000e+00> : vector<8x8xf32>
    %161 = tpu.matmul %158, %159, %cst_109 {dimension_numbers = #tpu.dot_dimension_numbers<[1], [1], [0], [0], [0, 0, 1, 0], [], []>} : vector<8x8xbf16>, vector<8x8xbf16>, vector<8x8xf32> -> vector<8x8xf32>
    %cst_110 = arith.constant dense<0xFF800000> : vector<8xf32>
    %162 = vector.multi_reduction <maximumf>, %161, %cst_110 [1] : vector<8x8xf32> to vector<8xf32>
    %163 = vector.shape_cast %162 : vector<8xf32> to vector<8x1xf32>
    %164 = vector.broadcast %163 : vector<8x1xf32> to vector<8x8xf32>
    %165 = arith.subf %161, %164 : vector<8x8xf32>
    %166 = math.exp %165 : vector<8x8xf32>
    %cst_111 = arith.constant dense<0.000000e+00> : vector<8xf32>
    %167 = vector.multi_reduction <add>, %166, %cst_111 [1] : vector<8x8xf32> to vector<8xf32>
    %168 = vector.shape_cast %167 : vector<8xf32> to vector<8x1xf32>
    %169 = vector.broadcast %168 : vector<8x1xf32> to vector<8x8xf32>
    %170 = arith.divf %166, %169 : vector<8x8xf32>
    %171 = arith.truncf %170 : vector<8x8xf32> to vector<8x8xbf16>
    %cst_112 = arith.constant dense<0.000000e+00> : vector<8x8xf32>
    %172 = tpu.matmul %171, %160, %cst_112 {dimension_numbers = #tpu.dot_dimension_numbers<[1], [0], [0], [1], [0, 0, 1, 1], [], []>} : vector<8x8xbf16>, vector<8x8xbf16>, vector<8x8xf32> -> vector<8x8xf32>
    %c0_113 = arith.constant 0 : index
    %c24_114 = arith.constant 24 : index
    %173 = vector.load %arg26[%c0_113, %c24_114] : memref<8x32xf32, #tpu.memory_space<vmem>>, vector<8x8xf32>
    tpu.vector_store %arg26[%c0_113, %c24_114], %172 {strides = array<i32>} : memref<8x32xf32, #tpu.memory_space<vmem>>, vector<8x8xf32>,
    %c0_115 = arith.constant 0 : index
    %c0_116 = arith.constant 0 : index
    %174 = vector.load %arg27[%c0_115, %c0_116] : memref<8x8xf32, #tpu.memory_space<vmem>>, vector<8x8xf32>
    %175 = arith.addf %174, %170 : vector<8x8xf32>
    %c0_117 = arith.constant 0 : index
    %c0_118 = arith.constant 0 : index
    %176 = vector.load %arg27[%c0_117, %c0_118] : memref<8x8xf32, #tpu.memory_space<vmem>>, vector<8x8xf32>
    tpu.vector_store %arg27[%c0_117, %c0_118], %175 {strides = array<i32>} : memref<8x8xf32, #tpu.memory_space<vmem>>, vector<8x8xf32>,
    %c0_119 = arith.constant 0 : index
    %c0_120 = arith.constant 0 : index
    %177 = vector.load %arg26[%c0_119, %c0_120] : memref<8x32xf32, #tpu.memory_space<vmem>>, vector<8x32xf32>
    %178 = arith.truncf %177 : vector<8x32xf32> to vector<8x32xbf16>
    %c0_121 = arith.constant 0 : index
    %c0_122 = arith.constant 0 : index
    %179 = vector.load %arg13[%c0_121, %c0_122] : memref<32x32xbf16, #tpu.memory_space<vmem>>, vector<32x32xbf16>
    %cst_123 = arith.constant dense<0.000000e+00> : vector<8x32xf32>
    %180 = tpu.matmul %178, %179, %cst_123 {dimension_numbers = #tpu.dot_dimension_numbers<[1], [0], [0], [1], [0, 0, 1, 1], [], []>} : vector<8x32xbf16>, vector<32x32xbf16>, vector<8x32xf32> -> vector<8x32xf32>
    %c0_124 = arith.constant 0 : index
    %c0_125 = arith.constant 0 : index
    %181 = vector.load %arg14[%c0_124, %c0_125] : memref<1x32xf32, #tpu.memory_space<vmem>>, vector<1x32xf32>
    %182 = vector.broadcast %181 : vector<1x32xf32> to vector<8x32xf32>
    %183 = arith.addf %180, %182 : vector<8x32xf32>
    %184 = arith.addf %2, %183 : vector<8x32xf32>
    %c0_126 = arith.constant 0 : index
    %c0_127 = arith.constant 0 : index
    %185 = vector.load %arg15[%c0_126, %c0_127] : memref<1x32xf32, #tpu.memory_space<vmem>>, vector<1x32xf32>
    %c0_128 = arith.constant 0 : index
    %c0_129 = arith.constant 0 : index
    %186 = vector.load %arg16[%c0_128, %c0_129] : memref<1x32xf32, #tpu.memory_space<vmem>>, vector<1x32xf32>
    %cst_130 = arith.constant dense<0.000000e+00> : vector<8xf32>
    %187 = vector.multi_reduction <add>, %184, %cst_130 [1] : vector<8x32xf32> to vector<8xf32>
    %188 = vector.shape_cast %187 : vector<8xf32> to vector<8x1xf32>
    %cst_131 = arith.constant 3.200000e+01 : f32
    %189 = vector.broadcast %cst_131 : f32 to vector<8x1xf32>
    %190 = arith.divf %188, %189 : vector<8x1xf32>
    %191 = vector.broadcast %190 : vector<8x1xf32> to vector<8x32xf32>
    %192 = arith.subf %184, %191 : vector<8x32xf32>
    %193 = arith.mulf %192, %192 : vector<8x32xf32>
    %cst_132 = arith.constant dense<0.000000e+00> : vector<8xf32>
    %194 = vector.multi_reduction <add>, %193, %cst_132 [1] : vector<8x32xf32> to vector<8xf32>
    %195 = vector.shape_cast %194 : vector<8xf32> to vector<8x1xf32>
    %cst_133 = arith.constant 3.200000e+01 : f32
    %196 = vector.broadcast %cst_133 : f32 to vector<8x1xf32>
    %197 = arith.divf %195, %196 : vector<8x1xf32>
    %cst_134 = arith.constant 9.99999974E-6 : f32
    %198 = vector.broadcast %cst_134 : f32 to vector<8x1xf32>
    %199 = arith.addf %197, %198 : vector<8x1xf32>
    %200 = math.rsqrt %199 : vector<8x1xf32>
    %201 = vector.broadcast %200 : vector<8x1xf32> to vector<8x32xf32>
    %202 = arith.mulf %192, %201 : vector<8x32xf32>
    %203 = vector.broadcast %185 : vector<1x32xf32> to vector<8x32xf32>
    %204 = arith.mulf %202, %203 : vector<8x32xf32>
    %205 = vector.broadcast %186 : vector<1x32xf32> to vector<8x32xf32>
    %206 = arith.addf %204, %205 : vector<8x32xf32>
    %207 = arith.truncf %206 : vector<8x32xf32> to vector<8x32xbf16>
    %c0_135 = arith.constant 0 : index
    %c0_136 = arith.constant 0 : index
    %208 = vector.load %arg17[%c0_135, %c0_136] : memref<32x128xbf16, #tpu.memory_space<vmem>>, vector<32x128xbf16>
    %cst_137 = arith.constant dense<0.000000e+00> : vector<8x128xf32>
    %209 = tpu.matmul %207, %208, %cst_137 {dimension_numbers = #tpu.dot_dimension_numbers<[1], [0], [0], [1], [0, 0, 1, 1], [], []>} : vector<8x32xbf16>, vector<32x128xbf16>, vector<8x128xf32> -> vector<8x128xf32>
    %c0_138 = arith.constant 0 : index
    %c0_139 = arith.constant 0 : index
    %210 = vector.load %arg18[%c0_138, %c0_139] : memref<1x128xf32, #tpu.memory_space<vmem>>, vector<1x128xf32>
    %211 = vector.broadcast %210 : vector<1x128xf32> to vector<8x128xf32>
    %212 = arith.addf %209, %211 : vector<8x128xf32>
    %cst_140 = arith.constant 1.702000e+00 : f32
    %213 = vector.broadcast %cst_140 : f32 to vector<8x128xf32>
    %214 = arith.mulf %213, %212 : vector<8x128xf32>
    %215 = arith.negf %214 : vector<8x128xf32>
    %216 = math.exp %215 : vector<8x128xf32>
    %cst_141 = arith.constant 1.000000e+00 : f32
    %217 = vector.broadcast %cst_141 : f32 to vector<8x128xf32>
    %218 = arith.addf %217, %216 : vector<8x128xf32>
    %219 = arith.divf %217, %218 : vector<8x128xf32>
    %220 = arith.mulf %212, %219 : vector<8x128xf32>
    %221 = arith.truncf %220 : vector<8x128xf32> to vector<8x128xbf16>
    %c0_142 = arith.constant 0 : index
    %c0_143 = arith.constant 0 : index
    %222 = vector.load %arg19[%c0_142, %c0_143] : memref<128x32xbf16, #tpu.memory_space<vmem>>, vector<128x32xbf16>
    %cst_144 = arith.constant dense<0.000000e+00> : vector<8x32xf32>
    %223 = tpu.matmul %221, %222, %cst_144 {dimension_numbers = #tpu.dot_dimension_numbers<[1], [0], [0], [1], [0, 0, 1, 1], [], []>} : vector<8x128xbf16>, vector<128x32xbf16>, vector<8x32xf32> -> vector<8x32xf32>
    %c0_145 = arith.constant 0 : index
    %c0_146 = arith.constant 0 : index
    %224 = vector.load %arg20[%c0_145, %c0_146] : memref<1x32xf32, #tpu.memory_space<vmem>>, vector<1x32xf32>
    %225 = vector.broadcast %224 : vector<1x32xf32> to vector<8x32xf32>
    %226 = arith.addf %223, %225 : vector<8x32xf32>
    %227 = arith.addf %184, %226 : vector<8x32xf32>
    %c0_147 = arith.constant 0 : index
    %c0_148 = arith.constant 0 : index
    %c0_149 = arith.constant 0 : index
    %228 = vector.load %arg21[%c0_147, %c0_148, %c0_149] : memref<1x8x32xf32, #tpu.memory_space<vmem>>, vector<1x8x32xf32>
    %229 = vector.shape_cast %228 : vector<1x8x32xf32> to vector<8x32xf32>
    %230 = vector.shape_cast %227 : vector<8x32xf32> to vector<1x8x32xf32>
    tpu.vector_store %arg21[%c0_147, %c0_148, %c0_149], %230 {strides = array<i32>} : memref<1x8x32xf32, #tpu.memory_space<vmem>>, vector<1x8x32xf32>,
    %c0_150 = arith.constant 0 : index
    %c0_151 = arith.constant 0 : index
    %231 = vector.load %arg27[%c0_150, %c0_151] : memref<8x8xf32, #tpu.memory_space<vmem>>, vector<8x8xf32>
    %cst_152 = arith.constant 2.500000e-01 : f32
    %232 = vector.broadcast %cst_152 : f32 to vector<8x8xf32>
    %233 = arith.mulf %231, %232 : vector<8x8xf32>
    %c0_153 = arith.constant 0 : index
    %c0_154 = arith.constant 0 : index
    %c0_155 = arith.constant 0 : index
    %234 = vector.load %arg22[%c0_153, %c0_154, %c0_155] : memref<1x8x8xf32, #tpu.memory_space<vmem>>, vector<1x8x8xf32>
    %235 = vector.shape_cast %234 : vector<1x8x8xf32> to vector<8x8xf32>
    %236 = vector.shape_cast %233 : vector<8x8xf32> to vector<1x8x8xf32>
    tpu.vector_store %arg22[%c0_153, %c0_154, %c0_155], %236 {strides = array<i32>} : memref<1x8x8xf32, #tpu.memory_space<vmem>>, vector<1x8x8xf32>,
    return
  }
  func.func @transform_0(%arg0: i32, %arg1: i32) -> (i32, i32, i32) {
    %c0_i32 = arith.constant 0 : i32
    %c0_i32_0 = arith.constant 0 : i32
    return %arg0, %arg1, %c0_i32 : i32, i32, i32
  }
  func.func @transform_1(%arg0: i32, %arg1: i32) -> (i32, i32, i32) {
    %c0_i32 = arith.constant 0 : i32
    %c0_i32_0 = arith.constant 0 : i32
    %c0_i32_1 = arith.constant 0 : i32
    return %arg0, %c0_i32, %c0_i32_0 : i32, i32, i32
  }
  func.func @transform_2(%arg0: i32, %arg1: i32) -> (i32, i32, i32) {
    %c0_i32 = arith.constant 0 : i32
    %c0_i32_0 = arith.constant 0 : i32
    %c0_i32_1 = arith.constant 0 : i32
    return %arg0, %c0_i32, %c0_i32_0 : i32, i32, i32
  }
  func.func @transform_3(%arg0: i32, %arg1: i32) -> (i32, i32) {
    %c0_i32 = arith.constant 0 : i32
    %c0_i32_0 = arith.constant 0 : i32
    %c0_i32_1 = arith.constant 0 : i32
    return %c0_i32, %c0_i32_0 : i32, i32
  }
  func.func @transform_4(%arg0: i32, %arg1: i32) -> (i32, i32) {
    %c0_i32 = arith.constant 0 : i32
    %c0_i32_0 = arith.constant 0 : i32
    %c0_i32_1 = arith.constant 0 : i32
    return %c0_i32, %c0_i32_0 : i32, i32
  }
  func.func @transform_5(%arg0: i32, %arg1: i32) -> (i32, i32) {
    %c0_i32 = arith.constant 0 : i32
    %c0_i32_0 = arith.constant 0 : i32
    %c0_i32_1 = arith.constant 0 : i32
    return %c0_i32, %c0_i32_0 : i32, i32
  }
  func.func @transform_6(%arg0: i32, %arg1: i32) -> (i32, i32) {
    %c0_i32 = arith.constant 0 : i32
    %c0_i32_0 = arith.constant 0 : i32
    %c0_i32_1 = arith.constant 0 : i32
    return %c0_i32, %c0_i32_0 : i32, i32
  }
  func.func @transform_7(%arg0: i32, %arg1: i32) -> (i32, i32) {
    %c0_i32 = arith.constant 0 : i32
    %c0_i32_0 = arith.constant 0 : i32
    %c0_i32_1 = arith.constant 0 : i32
    return %c0_i32, %c0_i32_0 : i32, i32
  }
  func.func @transform_8(%arg0: i32, %arg1: i32) -> (i32, i32) {
    %c0_i32 = arith.constant 0 : i32
    %c0_i32_0 = arith.constant 0 : i32
    %c0_i32_1 = arith.constant 0 : i32
    return %c0_i32, %c0_i32_0 : i32, i32
  }
  func.func @transform_9(%arg0: i32, %arg1: i32) -> (i32, i32) {
    %c0_i32 = arith.constant 0 : i32
    %c0_i32_0 = arith.constant 0 : i32
    %c0_i32_1 = arith.constant 0 : i32
    return %c0_i32, %c0_i32_0 : i32, i32
  }
  func.func @transform_10(%arg0: i32, %arg1: i32) -> (i32, i32) {
    %c0_i32 = arith.constant 0 : i32
    %c0_i32_0 = arith.constant 0 : i32
    %c0_i32_1 = arith.constant 0 : i32
    return %c0_i32, %c0_i32_0 : i32, i32
  }
  func.func @transform_11(%arg0: i32, %arg1: i32) -> (i32, i32) {
    %c0_i32 = arith.constant 0 : i32
    %c0_i32_0 = arith.constant 0 : i32
    %c0_i32_1 = arith.constant 0 : i32
    return %c0_i32, %c0_i32_0 : i32, i32
  }
  func.func @transform_12(%arg0: i32, %arg1: i32) -> (i32, i32) {
    %c0_i32 = arith.constant 0 : i32
    %c0_i32_0 = arith.constant 0 : i32
    %c0_i32_1 = arith.constant 0 : i32
    return %c0_i32, %c0_i32_0 : i32, i32
  }
  func.func @transform_13(%arg0: i32, %arg1: i32) -> (i32, i32) {
    %c0_i32 = arith.constant 0 : i32
    %c0_i32_0 = arith.constant 0 : i32
    %c0_i32_1 = arith.constant 0 : i32
    return %c0_i32, %c0_i32_0 : i32, i32
  }
  func.func @transform_14(%arg0: i32, %arg1: i32) -> (i32, i32) {
    %c0_i32 = arith.constant 0 : i32
    %c0_i32_0 = arith.constant 0 : i32
    %c0_i32_1 = arith.constant 0 : i32
    return %c0_i32, %c0_i32_0 : i32, i32
  }
  func.func @transform_15(%arg0: i32, %arg1: i32) -> (i32, i32) {
    %c0_i32 = arith.constant 0 : i32
    %c0_i32_0 = arith.constant 0 : i32
    %c0_i32_1 = arith.constant 0 : i32
    return %c0_i32, %c0_i32_0 : i32, i32
  }
  func.func @transform_16(%arg0: i32, %arg1: i32) -> (i32, i32) {
    %c0_i32 = arith.constant 0 : i32
    %c0_i32_0 = arith.constant 0 : i32
    %c0_i32_1 = arith.constant 0 : i32
    return %c0_i32, %c0_i32_0 : i32, i32
  }
  func.func @transform_17(%arg0: i32, %arg1: i32) -> (i32, i32) {
    %c0_i32 = arith.constant 0 : i32
    %c0_i32_0 = arith.constant 0 : i32
    %c0_i32_1 = arith.constant 0 : i32
    return %c0_i32, %c0_i32_0 : i32, i32
  }
  func.func @transform_18(%arg0: i32, %arg1: i32) -> (i32, i32) {
    %c0_i32 = arith.constant 0 : i32
    %c0_i32_0 = arith.constant 0 : i32
    %c0_i32_1 = arith.constant 0 : i32
    return %c0_i32, %c0_i32_0 : i32, i32
  }
  func.func @transform_19(%arg0: i32, %arg1: i32) -> (i32, i32, i32) {
    %c0_i32 = arith.constant 0 : i32
    %c0_i32_0 = arith.constant 0 : i32
    return %arg0, %arg1, %c0_i32 : i32, i32, i32
  }
  func.func @transform_20(%arg0: i32, %arg1: i32) -> (i32, i32, i32) {
    %c0_i32 = arith.constant 0 : i32
    %c0_i32_0 = arith.constant 0 : i32
    return %arg0, %arg1, %c0_i32 : i32, i32, i32
  }
}

</mosaic_0001>

<bundles_post_ra>
// kernel: cross_transformer.2
= control target key start
LH: loop header
LB: loop body
LE: loop exit
PB: predicated region body
PF: predicated region fallthrough
CT: control target
= control target key end

     0   :  { %s2281_s30 = smov 0   ;;  %s2283_s20 = smov 0   ;;  %s2539_s0 = inlined_call_operand.vmem [shape: f32[2,8,32], index: 0, kind: input, shape index: {}]   ;;  %s2540_s1 = inlined_call_operand.vmem [shape: bf16[2,8,32], index: 1, kind: input, shape index: {}]   ;;  %s2541_s2 = inlined_call_operand.vmem [shape: bf16[2,8,32], index: 2, kind: input, shape index: {}]   ;;  %s2542_s3 = inlined_call_operand.vmem [shape: f32[1,32], index: 3, kind: input, shape index: {}]   ;;  %s2543_s4 = inlined_call_operand.vmem [shape: f32[1,32], index: 4, kind: input, shape index: {}]   ;;  %s2544_s5 = inlined_call_operand.vmem [shape: bf16[32,32], index: 5, kind: input, shape index: {}]   ;;  %s2545_s6 = inlined_call_operand.vmem [shape: f32[1,32], index: 6, kind: input, shape index: {}]   ;;  %s2546_s7 = inlined_call_operand.vmem [shape: bf16[32,32], index: 7, kind: input, shape index: {}]   ;;  %s2547_s8 = inlined_call_operand.vmem [shape: f32[1,32], index: 8, kind: input, shape index: {}]   ;;  %s2548_s9 = inlined_call_operand.vmem [shape: bf16[32,32], index: 9, kind: input, shape index: {}]   ;;  %s2549_s10 = inlined_call_operand.vmem [shape: f32[1,32], index: 10, kind: input, shape index: {}]   ;;  %s2550_s11 = inlined_call_operand.vmem [shape: bf16[32,32], index: 11, kind: input, shape index: {}]   ;;  %s2551_s12 = inlined_call_operand.vmem [shape: f32[1,32], index: 12, kind: input, shape index: {}]   ;;  %s2552_s13 = inlined_call_operand.vmem [shape: f32[1,32], index: 13, kind: input, shape index: {}]   ;;  %s2553_s14 = inlined_call_operand.vmem [shape: f32[1,32], index: 14, kind: input, shape index: {}]   ;;  %s2554_s15 = inlined_call_operand.vmem [shape: bf16[32,128], index: 15, kind: input, shape index: {}]   ;;  %s2555_s16 = inlined_call_operand.vmem [shape: f32[1,128], index: 16, kind: input, shape index: {}]   ;;  %s2556_s17 = inlined_call_operand.vmem [shape: bf16[128,32], index: 17, kind: input, shape index: {}]   ;;  %s2557_s18 = inlined_call_operand.vmem [shape: f32[1,32], index: 18, kind: input, shape index: {}]   ;;  %s2558_s19 = inlined_call_operand.vmem [shape: bf16[2,8,32], index: 19, kind: output, shape index: {}]  }
   0x1   :  { %2559 = sst [smem:[#allocation6_spill]] %s2539_s0  ;;  %s2279_s0 = smov 0  }
   0x2   :  { %2560 = sst [smem:[#allocation7_spill]] %s2540_s1 }
   0x3   :  { %2561 = sst [smem:[#allocation8_spill]] %s2541_s2 }
   0x4   :  { %2562 = sst [smem:[#allocation9_spill]] %s2542_s3 }
   0x5 LB: > { %s41_s21 = sadd.s32 1, %s2165_s30  ;;  %p1850_p0 = scmp.ge.s32.totalorder %s2169_s20, 1  ;;  %s2169_s20 = sphi %s2283_s20, %s29_s20   ;;  %s2165_s30 = sphi %s2281_s30, %s2568_s30   ;;  %s2161_s0 = sphi %s2279_s0, %s2567_s0  }
   0x6   : > { %p43_p1 = scmp.ge.s32.totalorder %s41_s21, 2  ;;  %p573_p2 = scmp.lt.s32.totalorder %s2169_s20, 3 }
   0x8   : > { %s2570_s21 = smov (%p43_p1, %s41_s21), 0  ;;  %p574_p3 = pnand %p1850_p0, %p573_p2 }
   0x9   : > { %p641_p4 = scmp.lt.s32.totalorder (!%p574_p3), %s2161_s0, 1  ;;  %vm671_vm0 = vcmask (!%p574_p3), 261120   ;;  %s2563_s24 = sld [smem:[#allocation6_spill]] (!%p574_p3)  ;;  %v2092_v15 = vld [vmem:[%s2544_s5] sm:$0xff] (!%p574_p3)   ;;  %v2171_v16 = vmov (!%p574_p3), 0.0   ;;  %v2093_v17 = vld [vmem:[%s2544_s5 + $0x8] sm:$0xff] (!%p574_p3)  }
   0xa   : > { %577 = sbr.rel (%p574_p3) target bundleno = 2606 (0xa2e), region = 96  ;;  %s2564_s27 = sld [smem:[#allocation7_spill]] (!%p574_p3)  ;;  %1952 = vmatprep.subr.bf16.mxu0 (!%p574_p3), %v2171_v16  ;;  %1976 = vmatprep.subr.bf16.mxu1 (!%p574_p3), %v2171_v16  ;;  %vm2172_vm1 = vmmov (!%p574_p3), 0   ;;  %v2346_v30 = vld [vmem:[%s2543_s4] ss:$0 sm:$0xff] (!%p574_p3)  ;;  %v2095_v38 = vld [vmem:[%s2546_s7 + $0x8] sm:$0xff] (!%p574_p3)  }
   0xb   : > { %1953 = vmatpush3.bf16.msra.mxu0 (!%p574_p3), %v2092_v15  ;;  %1956 = vmatprep.mubr.msk.bf16.mxu0 (!%p574_p3), %vm2172_vm1, %v2171_v16  ;;  %v2094_v35 = vld [vmem:[%s2546_s7] sm:$0xff] (!%p574_p3)   ;;  %vm768_vm2 = vcmask (!%p574_p3), 257024   ;;  %s2174_s29 = smov (!%p574_p3), 104   ;;  %vm969_vm3 = vcmask (!%p574_p3), 64512   ;;  %vm1031_vm4 = vcmask (!%p574_p3), 1043456   ;;  %s2176_s26 = smov (!%p574_p3), 8  }
   0xc   : > { %1954 = vmatprep.subr.bf16.mxu0 (!%p574_p3), %v2171_v16  ;;  %1978 = vmatprep.mubr.msk.bf16.mxu1 (!%p574_p3), %vm2172_vm1, %v2171_v16  ;;  %v1857_v41 = vld [vmem:[%s2545_s6] ss:$0 sm:$0xff] (!%p574_p3)  ;;  %s2178_s2 = smov (!%p574_p3), 24   ;;  %vm1202_vm5 = vcmask (!%p574_p3), 130112   ;;  %vm1330_vm6 = vcmask (!%p574_p3), 195712   ;;  %vm1458_vm7 = vcmask (!%p574_p3), 261312  }
   0xd   : > { %v1863_v48 = vld [vmem:[%s2547_s8] ss:$0 sm:$0xff] (!%p574_p3) }
   0xf   : > { %1955 = vmatpush3.bf16.msra.mxu0 (!%p574_p3), %v2093_v17 }
  0x10   : > { %1960 = vmatprep.subr.bf16.mxu0 (!%p574_p3), %v2171_v16 }
  0x11   : > { %s2572_s0 = smov (!%p641_p4, %s2161_s0), 1 }
  0x12   : > { %s1851_s1 = sshll.u32 %s2572_s0, 3  ;;  %s2297_s22 = sshll.u32 %s2572_s0, 2 }
  0x13   : > { %s647_s25 = scalar_lea.vmem %s2563_s24, %s1851_s1  ;;  %s651_s28 = scalar_lea.vmem %s2564_s27, %s2297_s22 }
  0x14   : > { %v2306_v0 = vld [vmem:[%s647_s25] sm:$0xff]  ;;  %s2565_s25 = sld [smem:[#allocation8_spill]]  ;;  %s2175_s0 = smov 112  }
  0x15   : > { %v665_v1 = vld [vmem:[%s651_s28] sm:$0xf]  ;;  %v672_v2 = vsel %vm671_vm0, %v2306_v0, 0.0  ;;  %s2566_s28 = sld [smem:[#allocation9_spill]]  ;;  %s2177_s27 = smov 16  }
  0x16   : > { %v666_v3 = vunpack.c.l.bf16 %v665_v1  ;;  %673 = vadd.xlane.f32.xlu0 %v672_v2 }
  0x18   : > { %v772_v4 = vsel %vm671_vm0, %v666_v3, 0.0 }
  0x1a   : > { %773 = vadd.xlane.f32.xlu0 %v772_v4  ;;  %s655_s3 = scalar_lea.vmem %s2565_s25, %s2297_s22 }
  0x1b   : > { %v2332_v18 = vld [vmem:[%s655_s3] sm:$0xf] }
  0x1c   : > { %v668_v19 = vunpack.c.l.bf16 %v2332_v18  ;;  %v2341_v28 = vld [vmem:[%s2566_s28] ss:$0 sm:$0xff]  ;;  %s2173_s28 = smov 120  }
  0x1e   : > { %v870_v20 = vsel %vm671_vm0, %v668_v19, 0.0 }
  0x1f   : > { %871 = vadd.xlane.f32.xlu0 %v870_v20 }
  0xa3   : > { %v674_v5 = vpop.xlane.xlu0 %673 }
  0xa4   : > { %v676_v6 = vmul.f32 0.03125, %v674_v5 }
  0xa6   : > { %v677_v7 = vsub.f32 %v2306_v0, %v676_v6  ;;  %v2102_v6 = vld [vmem:[%s2548_s9] sm:$0xff]  }
  0xa7   : > { %v774_v8 = vpop.xlane.xlu0 %773 }
  0xa8   : > { %v775_v9 = vmul.f32 0.03125, %v774_v8  ;;  %v678_v10 = vmul.f32 %v677_v7, %v677_v7 }
  0xaa   : > { %v776_v11 = vsub.f32 %v666_v3, %v775_v9  ;;  %v679_v12 = vsel %vm671_vm0, %v678_v10, 0.0 }
  0xab   : > { %680 = vadd.xlane.f32.xlu1 %v679_v12 }
  0xac   : > { %v777_v13 = vmul.f32 %v776_v11, %v776_v11  ;;  %v872_v1 = vpop.xlane.xlu0 %871 }
  0xad   : > { %v873_v2 = vmul.f32 0.03125, %v872_v1 }
  0xae   : > { %v778_v14 = vsel %vm671_vm0, %v777_v13, 0.0 }
  0xaf   : > { %779 = vadd.xlane.f32.xlu1 %v778_v14  ;;  %v874_v3 = vsub.f32 %v668_v19, %v873_v2 }
  0xb1   : > { %v875_v4 = vmul.f32 %v874_v3, %v874_v3 }
  0xb3   : > { %v876_v5 = vsel %vm671_vm0, %v875_v4, 0.0 }
 0x138   : > { %v681_v21 = vpop.xlane.xlu1 %680 }
 0x139   : > { %v682_v22 = vmul.f32 0.03125, %v681_v21 }
 0x13b   : > { %v683_v23 = vadd.f32 1e-05, %v682_v22 }
 0x13c   : > { %v780_v24 = vpop.xlane.xlu1 %779 }
 0x13d   : > { %2119 = vrsqrt.f32 %v683_v23  ;;  %v781_v25 = vmul.f32 0.03125, %v780_v24 }
 0x13f   : > { %v782_v26 = vadd.f32 1e-05, %v781_v25 }
 0x141   : > { %2121 = vrsqrt.f32 %v782_v26 }
 0x147   : > { %v2120_v27 = vpop.eup %2119 }
 0x148   : > { %v685_v29 = vmul.f32 %v2120_v27, %v677_v7  ;;  %v2103_v7 = vld [vmem:[%s2548_s9 + $0x8] sm:$0xff]  }
 0x14a   : > { %v692_v31 = vmul.f32 %v2341_v28, %v685_v29 }
 0x14b   : > { %v2122_v32 = vpop.eup %2121 }
 0x14c   : > { %v784_v33 = vmul.f32 %v2122_v32, %v776_v11  ;;  %v699_v34 = vadd.f32 %v2346_v30, %v692_v31 }
 0x14e   : > { %v700_v36 = vpack.c.bf16 %v699_v34, %v699_v34  ;;  %v791_v37 = vmul.f32 %v2341_v28, %v784_v33 }
 0x150   : > { %1957 = vmatmul.mubr.msk.bf16.vlgmr.msra.gmra.mrb[0].mxu0 %vm671_vm0, %v700_v36  ;;  %v798_v39 = vadd.f32 %v2346_v30, %v791_v37 }
 0x151   : > { %1961 = vmatpush3.bf16.msra.mxu0 %v2094_v35  ;;  %1964 = vmatprep.mubr.msk.bf16.mxu0 %vm2172_vm1, %v2171_v16 }
 0x152   : > { %1962 = vmatprep.subr.bf16.mxu0 %v2171_v16  ;;  %v799_v40 = vpack.c.bf16 %v798_v39, %v798_v39 }
 0x155   : > { %1963 = vmatpush3.bf16.msra.mxu0 %v2095_v38 }
 0x156   : > { %1968 = vmatprep.subr.bf16.mxu0 %v2171_v16 }
 0x158   : > { %1965 = vmatmul.mubr.msk.bf16.vlgmr.msra.gmra.mrb[4].mxu0 %vm671_vm0, %v799_v40 }
 0x159   : > { %1972 = vmatprep.mubr.msk.bf16.mxu0 %vm2172_vm1, %v2171_v16  ;;  %1969 = vmatpush3.bf16.msra.mxu0 %v2102_v6 }
 0x15a   : > { %1970 = vmatprep.subr.bf16.mxu0 %v2171_v16 }
 0x15d   : > { %1971 = vmatpush3.bf16.msra.mxu0 %v2103_v7 }
 0x15e   : > { %1982 = vmatprep.subr.bf16.mxu0 %v2171_v16 }
 0x223   : > { %v761_v42 = vpop.f32.mrb[0].mxu0 }
 0x224   : > { %v762_v43 = vadd.f32 %v1857_v41, %v761_v42  ;;  %v1958_v44 = vpop.f32.mrb[1].mxu0 }
 0x225   : > { %v764_v45 = vpop.f32.mrb[2].mxu0 }
 0x226   : > { %v767_v46 = vpack.c.bf16 %v762_v43, %v762_v43  ;;  %v1959_v47 = vpop.f32.mrb[3].mxu0 }
 0x228   : > { %769 = vst.msk [vmem:[#allocation2] sm:$0xf] %vm768_vm2, %v767_v46 }
 0x22b   : > { %v860_v49 = vpop.f32.mrb[4].mxu0 }
 0x22c   : > { %v861_v50 = vadd.f32 %v1863_v48, %v860_v49  ;;  %v1966_v51 = vpop.f32.mrb[5].mxu0 }
 0x22d   : > { %v863_v52 = vpop.f32.mrb[6].mxu0  ;;  %v1869_v51 = vld [vmem:[%s2549_s10] ss:$0 sm:$0xff] }
 0x22e   : > { %v866_v53 = vpack.c.bf16 %v861_v50, %v861_v50  ;;  %v1967_v54 = vpop.f32.mrb[7].mxu0 }
 0x22f   : > { %v2096_v55 = vld [vmem:[#allocation2] ss:$0 sps:$4 sm:$0xff]  }
 0x230   : > { %867 = vst.msk [vmem:[#allocation3] sm:$0xf] %vm768_vm2, %v866_v53  ;;  %1082 = vrot.lane.b32.xlu0 %v2096_v55, %s2173_s28  ;;  %v2097_v56 = vld [vmem:[#allocation2] ss:$0 sps:$4 sm:$0xff]  }
 0x231   : > { %v966_v61 = vld [vmem:[#allocation2] sm:$0xf] }
 0x232   : > { %v2100_v62 = vld [vmem:[#allocation2] ss:$0 sps:$4 sm:$0xff]  }
 0x234   : > { %1338 = vrot.lane.b32.xlu0 %v2097_v56, %s2174_s29 }
 0x237   : > { %v967_v57 = vld [vmem:[#allocation3] sm:$0xf] }
 0x238   : > { %v2098_v58 = vld [vmem:[#allocation3] ss:$0 sps:$4 sm:$0xff]   ;;  %v974_v59 = vsel %vm969_vm3, %v967_v57, 0 }
 0x239   : > { %1977 = vmatpush3.bf16.xpose.msra.mxu1 %v974_v59  ;;  %1087 = vrot.lane.b32.xlu1 %v2098_v58, %s2173_s28  ;;  %v2099_v60 = vld [vmem:[#allocation3] ss:$0 sps:$4 sm:$0xff]  }
 0x23a   : > { %1988 = vmatprep.subr.bf16.mxu1 %v2171_v16  ;;  %v2101_v63 = vld [vmem:[#allocation3] ss:$0 sps:$4 sm:$0xff]  }
 0x23d   : > { %1215 = vrot.lane.b32.xlu1 %v2099_v60, %s2175_s0 }
 0x240   : > { %1979 = vmatmul.mubr.msk.bf16.vlgmr.msra.gmra.mrb[0].mxu1 %vm969_vm3, %v966_v61 }
 0x241   : > { %1210 = vrot.lane.b32.xlu1 %v2100_v62, %s2175_s0  ;;  %1990 = vmatprep.mubr.msk.bf16.mxu1 %vm2172_vm1, %v2171_v16 }
 0x245   : > { %1343 = vrot.lane.b32.xlu1 %v2101_v63, %s2174_s29 }
 0x269   : > { %877 = vadd.xlane.f32.xlu1 %v876_v5 }
 0x2a2   : > { %v1083_v11 = vpop.permute.xlu0 %1082 }
 0x2a6   : > { %v1339_v17 = vpop.permute.xlu0 %1338 }
 0x2ab   : > { %v1088_v8 = vpop.permute.xlu1 %1087 }
 0x2ac   : > { %v1093_v9 = vsel %vm969_vm3, %v1088_v8, 0 }
 0x2ad   : > { %1989 = vmatpush3.bf16.xpose.msra.mxu1 %v1093_v9 }
 0x2ae   : > { %2000 = vmatprep.subr.bf16.mxu1 %v2171_v16 }
 0x2af   : > { %v1216_v10 = vpop.permute.xlu1 %1215 }
 0x2b0   : > { %v1221_v13 = vsel %vm969_vm3, %v1216_v10, 0 }
 0x2b3   : > { %v1211_v12 = vpop.permute.xlu1 %1210 }
 0x2b4   : > { %1991 = vmatmul.mubr.msk.bf16.vlgmr.msra.gmra.mrb[4].mxu1 %vm969_vm3, %v1083_v11 }
 0x2b5   : > { %2001 = vmatpush3.bf16.xpose.msra.mxu1 %v1221_v13  ;;  %2002 = vmatprep.mubr.msk.bf16.mxu1 %vm2172_vm1, %v2171_v16 }
 0x2b6   : > { %2012 = vmatprep.subr.bf16.mxu1 %v2171_v16 }
 0x2b7   : > { %v1344_v14 = vpop.permute.xlu1 %1343 }
 0x2b8   : > { %v1349_v15 = vsel %vm969_vm3, %v1344_v14, 0 }
 0x2bc   : > { %2003 = vmatmul.mubr.msk.bf16.vlgmr.msra.gmra.mrb[8].mxu1 %vm969_vm3, %v1211_v12 }
 0x2bd   : > { %2013 = vmatpush3.bf16.xpose.msra.mxu1 %v1349_v15  ;;  %2014 = vmatprep.mubr.msk.bf16.mxu1 %vm2172_vm1, %v2171_v16 }
 0x2be   : > { %2024 = vmatprep.subr.bf16.mxu1 %v2171_v16 }
 0x2c4   : > { %2015 = vmatmul.mubr.msk.bf16.vlgmr.msra.gmra.mrb[12].mxu1 %vm969_vm3, %v1339_v17 }
 0x2c5   : > { %2028 = vmatprep.mubr.msk.bf16.mxu1 %vm2172_vm1, %v2171_v16 }
 0x2f6   : > { %v878_v18 = vpop.xlane.xlu1 %877 }
 0x2f7   : > { %v879_v19 = vmul.f32 0.03125, %v878_v18 }
 0x2f9   : > { %v880_v20 = vadd.f32 1e-05, %v879_v19 }
 0x2fb   : > { %2123 = vrsqrt.f32 %v880_v20 }
 0x305   : > { %v2124_v21 = vpop.eup %2123 }
 0x306   : > { %v882_v22 = vmul.f32 %v2124_v21, %v874_v3 }
 0x308   : > { %v889_v23 = vmul.f32 %v2341_v28, %v882_v22 }
 0x30a   : > { %v896_v24 = vadd.f32 %v2346_v30, %v889_v23 }
 0x30c   : > { %v897_v25 = vpack.c.bf16 %v896_v24, %v896_v24 }
 0x30e   : > { %1973 = vmatmul.mubr.msk.bf16.vlgmr.msra.gmra.mrb[8].mxu0 %vm671_vm0, %v897_v25 }
 0x30f   : > { %1984 = vmatprep.mubr.msk.bf16.mxu0 %vm2172_vm1, %v2171_v16 }
 0x313   : > { %v1010_v26 = vpop.f32.mrb[0].mxu1 }
 0x314   : > { %v1980_v27 = vpop.f32.mrb[1].mxu1  ;;  %v1016_v29 = vsel %vm969_vm3, %v1010_v26, -inf }
 0x315   : > { %1017 = vmax.xlane.f32.xlu0 %v1016_v29  ;;  %v1013_v31 = vpop.f32.mrb[2].mxu1 }
 0x316   : > { %v1981_v32 = vpop.f32.mrb[3].mxu1 }
 0x387   : > { %v1129_v33 = vpop.f32.mrb[4].mxu1 }
 0x388   : > { %v1992_v34 = vpop.f32.mrb[5].mxu1  ;;  %v1135_v35 = vsel %vm969_vm3, %v1129_v33, -inf }
 0x389   : > { %1136 = vmax.xlane.f32.xlu0 %v1135_v35  ;;  %v1132_v28 = vpop.f32.mrb[6].mxu1 }
 0x38a   : > { %v1993_v30 = vpop.f32.mrb[7].mxu1 }
 0x38f   : > { %v1257_v36 = vpop.f32.mrb[8].mxu1 }
 0x390   : > { %v2004_v37 = vpop.f32.mrb[9].mxu1  ;;  %v1263_v38 = vsel %vm969_vm3, %v1257_v36, -inf }
 0x391   : > { %1264 = vmax.xlane.f32.xlu0 %v1263_v38  ;;  %v1260_v39 = vpop.f32.mrb[10].mxu1 }
 0x392   : > { %v2005_v40 = vpop.f32.mrb[11].mxu1 }
 0x397   : > { %v1385_v41 = vpop.f32.mrb[12].mxu1 }
 0x398   : > { %v2016_v42 = vpop.f32.mrb[13].mxu1  ;;  %v1391_v43 = vsel %vm969_vm3, %v1385_v41, -inf }
 0x399   : > { %1392 = vmax.xlane.f32.xlu1 %v1391_v43  ;;  %v1388_v44 = vpop.f32.mrb[14].mxu1 }
 0x39a   : > { %v2017_v45 = vpop.f32.mrb[15].mxu1 }
 0x3a2   : > { %v1018_v46 = vpop.xlane.xlu0 %1017 }
 0x3a3   : > { %v1019_v47 = vsub.f32 %v1010_v26, %v1018_v46 }
 0x3a5   : > { %v1020_v48 = vmul.f32 1.442695, %v1019_v47 }
 0x3a7   : > { %2125 = vpow2.f32 %v1020_v48 }
 0x3b1   : > { %v2126_v49 = vpop.eup %2125 }
 0x3b2   : > { %v1022_v50 = vsel %vm969_vm3, %v2126_v49, 0.0 }
 0x3b3   : > { %1023 = vadd.xlane.f32.xlu0 %v1022_v50  ;;  %v2107_v50 = vld [vmem:[%s2550_s11] sm:$0xff]  }
 0x3b4   : > { %2025 = vmatpush3.bf16.msra.mxu1 %v2107_v50 }
 0x3b5   : > { %2026 = vmatprep.subr.bf16.mxu1 %v2171_v16 }
 0x3e1   : > { %v958_v52 = vpop.f32.mrb[8].mxu0 }
 0x3e2   : > { %v959_v53 = vadd.f32 %v1869_v51, %v958_v52  ;;  %v1974_v54 = vpop.f32.mrb[9].mxu0  ;;  %v2108_v51 = vld [vmem:[%s2550_s11 + $0x8] sm:$0xff]  }
 0x3e3   : > { %v961_v55 = vpop.f32.mrb[10].mxu0  ;;  %2027 = vmatpush3.bf16.msra.mxu1 %v2108_v51 }
 0x3e4   : > { %v964_v56 = vpack.c.bf16 %v959_v53, %v959_v53  ;;  %v1975_v57 = vpop.f32.mrb[11].mxu0  ;;  %2040 = vmatprep.subr.bf16.mxu1 %v2171_v16 }
 0x3e6   : > { %965 = vst.msk [vmem:[#allocation4] sm:$0xf] %vm768_vm2, %v964_v56 }
 0x3ed   : > { %v968_v58 = vld [vmem:[#allocation4] sm:$0xf] }
 0x3ee   : > { %v1033_v59 = vsel %vm1031_vm4, %v968_v58, 0  ;;  %v2104_v7 = vld [vmem:[#allocation4] ss:$0 sps:$4 sm:$0xff]  }
 0x3ef   : > { %1983 = vmatpush3.bf16.msra.mxu0 %v1033_v59  ;;  %v2105_v10 = vld [vmem:[#allocation4] ss:$0 sps:$4 sm:$0xff]  }
 0x3f0   : > { %1994 = vmatprep.subr.bf16.mxu0 %v2171_v16  ;;  %v2106_v19 = vld [vmem:[#allocation4] ss:$0 sps:$4 sm:$0xff]  }
 0x416   : > { %v1137_v60 = vpop.xlane.xlu0 %1136 }
 0x417   : > { %v1138_v61 = vsub.f32 %v1129_v33, %v1137_v60 }
 0x419   : > { %v1139_v62 = vmul.f32 1.442695, %v1138_v61  ;;  %v1890_v61 = vld [vmem:[%s2551_s12] ss:$0 sm:$0xff] }
 0x41b   : > { %2127 = vpow2.f32 %v1139_v62 }
 0x41e   : > { %v1265_v63 = vpop.xlane.xlu0 %1264 }
 0x41f   : > { %v1266_v1 = vsub.f32 %v1257_v36, %v1265_v63 }
 0x421   : > { %v1267_v2 = vmul.f32 1.442695, %v1266_v1 }
 0x423   : > { %2129 = vpow2.f32 %v1267_v2 }
 0x425   : > { %v2128_v3 = vpop.eup %2127 }
 0x426   : > { %v1141_v4 = vsel %vm969_vm3, %v2128_v3, 0.0  ;;  %v1393_v9 = vpop.xlane.xlu1 %1392 }
 0x427   : > { %1142 = vadd.xlane.f32.xlu1 %v1141_v4  ;;  %v1394_v11 = vsub.f32 %v1385_v41, %v1393_v9 }
 0x429   : > { %v1395_v12 = vmul.f32 1.442695, %v1394_v11  ;;  %v2109_v11 = vld [vmem:[%s2554_s15] sm:$0xff]  }
 0x42d   : > { %v2130_v5 = vpop.eup %2129 }
 0x42e   : > { %v1269_v6 = vsel %vm969_vm3, %v2130_v5, 0.0 }
 0x42f   : > { %1270 = vadd.xlane.f32.xlu0 %v1269_v6 }
 0x438   : > { %1278 = vrot.lane.b32.xlu1 %v2104_v7, %s2175_s0 }
 0x440   : > { %v1024_v8 = vpop.xlane.xlu0 %1023 }
 0x441   : > { %2131 = vrcp.f32 %v1024_v8 }
 0x442   : > { %2133 = vpow2.f32 %v1395_v12 }
 0x445   : > { %1150 = vrot.lane.b32.xlu0 %v2105_v10, %s2173_s28 }
 0x44b   : > { %v2132_v13 = vpop.eup %2131 }
 0x44c   : > { %v1026_v14 = vmul.f32 %v2132_v13, %v2126_v49  ;;  %v2134_v17 = vpop.eup %2133 }
 0x44d   : > { %v1397_v18 = vsel %vm969_vm3, %v2134_v17, 0.0 }
 0x44e   : > { %v1027_v15 = vpack.c.bf16 %v1026_v14, %v1026_v14 }
 0x450   : > { %1985 = vmatmul.mubr.msk.bf16.vlgmr.msra.gmra.mrb[12].mxu0 %vm969_vm3, %v1027_v15 }
 0x451   : > { %1996 = vmatprep.mubr.msk.bf16.mxu0 %vm2172_vm1, %v2171_v16 }
 0x45c   : > { %1398 = vadd.xlane.f32.xlu1 %v1397_v18 }
 0x46d   : > { %1406 = vrot.lane.b32.xlu1 %v2106_v19, %s2174_s29  ;;  %v1895_v19 = vld [vmem:[%s2553_s14] ss:$0 sm:$0xff] }
 0x4b4   : > { %v1143_v20 = vpop.xlane.xlu1 %1142 }
 0x4b5   : > { %2135 = vrcp.f32 %v1143_v20 }
 0x4b8   : > { %v1279_v26 = vpop.permute.xlu1 %1278 }
 0x4b9   : > { %v1284_v29 = vsel %vm1031_vm4, %v1279_v26, 0  ;;  %v2114_v26 = vld [vmem:[%s2556_s17 + $0x18] sm:$0xff]  }
 0x4bc   : > { %v1271_v21 = vpop.xlane.xlu0 %1270 }
 0x4bd   : > { %2137 = vrcp.f32 %v1271_v21 }
 0x4bf   : > { %v2136_v22 = vpop.eup %2135 }
 0x4c0   : > { %v1145_v23 = vmul.f32 %v2136_v22, %v2128_v3  ;;  %v1151_v24 = vpop.permute.xlu0 %1150 }
 0x4c1   : > { %v1156_v25 = vsel %vm1031_vm4, %v1151_v24, 0  ;;  %v2112_v24 = vld [vmem:[%s2556_s17 + $0x8] sm:$0xff]  }
 0x4c2   : > { %1995 = vmatpush3.bf16.msra.mxu0 %v1156_v25  ;;  %v1146_v27 = vpack.c.bf16 %v1145_v23, %v1145_v23  ;;  %v2111_v23 = vld [vmem:[%s2556_s17] sm:$0xff]   ;;  %v2113_v25 = vld [vmem:[%s2556_s17 + $0x10] sm:$0xff]  }
 0x4c3   : > { %2006 = vmatprep.subr.bf16.mxu0 %v2171_v16 }
 0x4c5   : > { %1997 = vmatmul.mubr.msk.bf16.vlgmr.msra.gmra.mrb[16].mxu0 %vm969_vm3, %v1146_v27  ;;  %v2115_v27 = vld [vmem:[%s2556_s17 + $0x20] sm:$0xff]  }
 0x4c6   : > { %2007 = vmatpush3.bf16.msra.mxu0 %v1284_v29  ;;  %2008 = vmatprep.mubr.msk.bf16.mxu0 %vm2172_vm1, %v2171_v16  ;;  %v2116_v29 = vld [vmem:[%s2556_s17 + $0x28] sm:$0xff]  }
 0x4c7   : > { %v2138_v31 = vpop.eup %2137  ;;  %2018 = vmatprep.subr.bf16.mxu0 %v2171_v16 }
 0x4c8   : > { %v1273_v32 = vmul.f32 %v2138_v31, %v2130_v5  ;;  %v2117_v31 = vld [vmem:[%s2556_s17 + $0x30] sm:$0xff]  }
 0x4ca   : > { %v1274_v33 = vpack.c.bf16 %v1273_v32, %v1273_v32  ;;  %v2118_v32 = vld [vmem:[%s2556_s17 + $0x38] sm:$0xff]  }
 0x4cd   : > { %2009 = vmatmul.mubr.msk.bf16.vlgmr.msra.gmra.mrb[20].mxu0 %vm969_vm3, %v1274_v33  ;;  %v1896_v33 = vld [vmem:[%s2555_s16] ss:$0 sm:$0xff] }
 0x4ce   : > { %2020 = vmatprep.mubr.msk.bf16.mxu0 %vm2172_vm1, %v2171_v16 }
 0x4e9   : > { %v1399_v34 = vpop.xlane.xlu1 %1398 }
 0x4ea   : > { %2139 = vrcp.f32 %v1399_v34 }
 0x4ed   : > { %v1407_v35 = vpop.permute.xlu1 %1406 }
 0x4ee   : > { %v1412_v28 = vsel %vm1031_vm4, %v1407_v35, 0 }
 0x4ef   : > { %2019 = vmatpush3.bf16.msra.mxu0 %v1412_v28 }
 0x4f0   : > { %2032 = vmatprep.subr.bf16.mxu0 %v2171_v16 }
 0x4f4   : > { %v2140_v30 = vpop.eup %2139 }
 0x4f5   : > { %v1401_v36 = vmul.f32 %v2140_v30, %v2134_v17  ;;  %v1894_v17 = vld [vmem:[%s2552_s13] ss:$0 sm:$0xff] }
 0x4f7   : > { %v1402_v37 = vpack.c.bf16 %v1401_v36, %v1401_v36 }
 0x4f9   : > { %2021 = vmatmul.mubr.msk.bf16.vlgmr.msra.gmra.mrb[24].mxu0 %vm969_vm3, %v1402_v37 }
 0x4fa   : > { %2036 = vmatprep.mubr.msk.bf16.mxu0 %vm2172_vm1, %v2171_v16  ;;  %2033 = vmatpush3.bf16.msra.mxu0 %v2109_v11 }
 0x4fb   : > { %2034 = vmatprep.subr.bf16.mxu0 %v2171_v16 }
 0x523   : > { %v1069_v38 = vpop.f32.mrb[12].mxu0 }
 0x524   : > { %1075 = vst.msk [vmem:[#allocation5] sm:$0xff] %vm969_vm3, %v1069_v38  ;;  %v1986_v39 = vpop.f32.mrb[13].mxu0 }
 0x525   : > { %v1072_v40 = vpop.f32.mrb[14].mxu0 }
 0x526   : > { %v1987_v41 = vpop.f32.mrb[15].mxu0 }
 0x598   : > { %v1192_v42 = vpop.f32.mrb[16].mxu0 }
 0x599   : > { %1199 = vrot.lane.b32.xlu1 %v1192_v42, %s2176_s26  ;;  %v1998_v43 = vpop.f32.mrb[17].mxu0 }
 0x59a   : > { %v1195_v44 = vpop.f32.mrb[18].mxu0  ;;  %v1901_v43 = vld [vmem:[%s2557_s18] ss:$0 sm:$0xff] }
 0x59b   : > { %v1999_v45 = vpop.f32.mrb[19].mxu0 }
 0x5a0   : > { %v1320_v46 = vpop.f32.mrb[20].mxu0 }
 0x5a1   : > { %1327 = vrot.lane.b32.xlu0 %v1320_v46, %s2177_s27  ;;  %v2010_v47 = vpop.f32.mrb[21].mxu0 }
 0x5a2   : > { %v1323_v48 = vpop.f32.mrb[22].mxu0 }
 0x5a3   : > { %v2011_v49 = vpop.f32.mrb[23].mxu0 }
 0x5cc   : > { %v1448_v52 = vpop.f32.mrb[24].mxu0 }
 0x5cd   : > { %1455 = vrot.lane.b32.xlu1 %v1448_v52, %s2178_s2  ;;  %v2022_v53 = vpop.f32.mrb[25].mxu0  ;;  %s662_s2 = scalar_lea.vmem %s2558_s19, %s2297_s22 }
 0x5ce   : > { %v1451_v54 = vpop.f32.mrb[26].mxu0 }
 0x5cf   : > { %v2023_v55 = vpop.f32.mrb[27].mxu0 }
 0x60b   : > { %v1200_v56 = vpop.permute.xlu1 %1199 }
 0x60c   : > { %1203 = vst.msk [vmem:[#allocation5] sm:$0xff] %vm1202_vm5, %v1200_v56 }
 0x613   : > { %v1328_v57 = vpop.permute.xlu0 %1327 }
 0x614   : > { %1331 = vst.msk [vmem:[#allocation5] sm:$0xff] %vm1330_vm6, %v1328_v57 }
 0x63f   : > { %v1456_v58 = vpop.permute.xlu1 %1455 }
 0x640   : > { %1459 = vst.msk [vmem:[#allocation5] sm:$0xff] %vm1458_vm7, %v1456_v58 }
 0x647   : > { %v1460_v59 = vld [vmem:[#allocation5] sm:$0xff] }
 0x648   : > { %v1461_v60 = vpack.c.bf16 %v1460_v59, %v1460_v59 }
 0x64a   : > { %2029 = vmatmul.mubr.msk.bf16.vlgmr.msra.gmra.mrb[16].mxu1 %vm671_vm0, %v1461_v60 }
 0x64b   : > { %2056 = vmatprep.mubr.msk.bf16.mxu1 %vm2172_vm1, %v2171_v16  ;;  %2041 = vmatpush3.bf16.msra.mxu1 %v2111_v23 }
 0x64c   : > { %2042 = vmatprep.subr.bf16.mxu1 %v2171_v16 }
 0x64f   : > { %2043 = vmatpush3.bf16.msra.mxu1 %v2112_v24 }
 0x650   : > { %2044 = vmatprep.subr.bf16.mxu1 %v2171_v16 }
 0x653   : > { %2045 = vmatpush3.bf16.msra.mxu1 %v2113_v25 }
 0x654   : > { %2046 = vmatprep.subr.bf16.mxu1 %v2171_v16 }
 0x657   : > { %2047 = vmatpush3.bf16.msra.mxu1 %v2114_v26 }
 0x658   : > { %2048 = vmatprep.subr.bf16.mxu1 %v2171_v16 }
 0x65b   : > { %2049 = vmatpush3.bf16.msra.mxu1 %v2115_v27 }
 0x65c   : > { %2050 = vmatprep.subr.bf16.mxu1 %v2171_v16 }
 0x65f   : > { %2051 = vmatpush3.bf16.msra.mxu1 %v2116_v29 }
 0x660   : > { %2052 = vmatprep.subr.bf16.mxu1 %v2171_v16 }
 0x663   : > { %2053 = vmatpush3.bf16.msra.mxu1 %v2117_v31 }
 0x664   : > { %2054 = vmatprep.subr.bf16.mxu1 %v2171_v16 }
 0x667   : > { %2055 = vmatpush3.bf16.msra.mxu1 %v2118_v32 }
 0x71d   : > { %v1522_v62 = vpop.f32.mrb[16].mxu1 }
 0x71e   : > { %v1523_v63 = vadd.f32 %v1890_v61, %v1522_v62  ;;  %v2030_v1 = vpop.f32.mrb[17].mxu1 }
 0x71f   : > { %v1525_v2 = vpop.f32.mrb[18].mxu1 }
 0x720   : > { %v2467_v3 = vadd.f32 %v1523_v63, %v2306_v0  ;;  %v2031_v4 = vpop.f32.mrb[19].mxu1  ;;  %v2110_v0 = vld [vmem:[%s2554_s15 + $0x8] sm:$0xff]  }
 0x721   : > { %2035 = vmatpush3.bf16.msra.mxu0 %v2110_v0 }
 0x722   : > { %v1531_v5 = vsel %vm671_vm0, %v2467_v3, 0.0 }
 0x723   : > { %1532 = vadd.xlane.f32.xlu0 %v1531_v5 }
 0x7b0   : > { %v1533_v6 = vpop.xlane.xlu0 %1532 }
 0x7b1   : > { %v1534_v7 = vmul.f32 0.03125, %v1533_v6 }
 0x7b3   : > { %v1535_v8 = vsub.f32 %v2467_v3, %v1534_v7 }
 0x7b5   : > { %v1536_v9 = vmul.f32 %v1535_v8, %v1535_v8 }
 0x7b7   : > { %v1537_v10 = vsel %vm671_vm0, %v1536_v9, 0.0 }
 0x7b8   : > { %1538 = vadd.xlane.f32.xlu1 %v1537_v10 }
 0x845   : > { %v1539_v12 = vpop.xlane.xlu1 %1538 }
 0x846   : > { %v1540_v13 = vmul.f32 0.03125, %v1539_v12 }
 0x848   : > { %v1541_v14 = vadd.f32 1e-05, %v1540_v13 }
 0x84a   : > { %2141 = vrsqrt.f32 %v1541_v14 }
 0x854   : > { %v2142_v15 = vpop.eup %2141 }
 0x855   : > { %v1543_v18 = vmul.f32 %v2142_v15, %v1535_v8 }
 0x857   : > { %v1550_v20 = vmul.f32 %v1894_v17, %v1543_v18 }
 0x859   : > { %v1557_v21 = vadd.f32 %v1895_v19, %v1550_v20 }
 0x85b   : > { %v1558_v22 = vpack.c.bf16 %v1557_v21, %v1557_v21 }
 0x85d   : > { %2037 = vmatmul.mubr.msk.bf16.vlgmr.msra.gmra.mrb[28].mxu0 %vm671_vm0, %v1558_v22 }
 0x930   : > { %v1619_v34 = vpop.f32.mrb[28].mxu0 }
 0x931   : > { %v1620_v35 = vadd.f32 %v1896_v33, %v1619_v34  ;;  %v2038_v28 = vpop.f32.mrb[29].mxu0 }
 0x932   : > { %v1622_v30 = vpop.f32.mrb[30].mxu0 }
 0x933   : > { %v1900_v36 = vmul.f32 -1.702, %v1620_v35  ;;  %v2039_v37 = vpop.f32.mrb[31].mxu0 }
 0x935   : > { %v1627_v38 = vmul.f32 1.442695, %v1900_v36 }
 0x937   : > { %2143 = vpow2.f32 %v1627_v38 }
 0x941   : > { %v2144_v39 = vpop.eup %2143 }
 0x942   : > { %v1629_v16 = vadd.f32 1.0, %v2144_v39 }
 0x944   : > { %2145 = vrcp.f32 %v1629_v16 }
 0x94e   : > { %v2146_v40 = vpop.eup %2145 }
 0x94f   : > { %v1632_v41 = vmul.f32 %v2146_v40, %v1620_v35 }
 0x951   : > { %v1633_v42 = vpack.c.bf16 %v1632_v41, %v1632_v41 }
 0x953   : > { %2057 = vmatmul.mubr.bf16.vlgmr.msra.gmra.mrb[20].mxu1 %v1633_v42 }
 0xa26   : > { %v1739_v44 = vpop.f32.mrb[20].mxu1 }
 0xa27   : > { %v1740_v45 = vadd.f32 %v1901_v43, %v1739_v44  ;;  %v2058_v46 = vpop.f32.mrb[21].mxu1 }
 0xa28   : > { %v1742_v47 = vpop.f32.mrb[22].mxu1 }
 0xa29   : > { %v1745_v48 = vadd.f32 %v1740_v45, %v2467_v3  ;;  %v2059_v49 = vpop.f32.mrb[23].mxu1 }
 0xa2b   : > { %v1746_v50 = vpack.c.bf16 %v1745_v48, %v1745_v48 }
 0xa2d   : > { %1747 = vst.msk [vmem:[%s662_s2] sm:$0xf] %vm768_vm2, %v1746_v50 }
 0xa2e PF: > { %s29_s20 = sadd.s32 1, %s2169_s20   ;;  %s2567_s0 = smov %s2165_s30 }
 0xa2f   : > { %p26_p5 = scmp.ge.s32.totalorder %s29_s20, 4   ;;  %s2568_s30 = smov %s2570_s21 }
 0xa31   :  { %28 = sbr.rel (!%p26_p5) target bundleno = 5 (0x5), region = 132 }

// kernel: cross_transformer.3
= control target key start
LH: loop header
LB: loop body
LE: loop exit
PB: predicated region body
PF: predicated region fallthrough
CT: control target
= control target key end

     0   :  { %s2914_s0 = inlined_call_operand.vmem [shape: bf16[2,8,32], index: 0, kind: input, shape index: {}]   ;;  %s2915_s1 = inlined_call_operand.vmem [shape: bf16[2,8,32], index: 1, kind: input, shape index: {}]   ;;  %s2916_s2 = inlined_call_operand.vmem [shape: bf16[2,8,32], index: 2, kind: input, shape index: {}]   ;;  %s2917_s3 = inlined_call_operand.vmem [shape: f32[1,32], index: 3, kind: input, shape index: {}]   ;;  %s2918_s4 = inlined_call_operand.vmem [shape: f32[1,32], index: 4, kind: input, shape index: {}]   ;;  %s2919_s5 = inlined_call_operand.vmem [shape: bf16[32,32], index: 5, kind: input, shape index: {}]   ;;  %s2920_s6 = inlined_call_operand.vmem [shape: f32[1,32], index: 6, kind: input, shape index: {}]   ;;  %s2921_s7 = inlined_call_operand.vmem [shape: bf16[32,32], index: 7, kind: input, shape index: {}]   ;;  %s2922_s8 = inlined_call_operand.vmem [shape: f32[1,32], index: 8, kind: input, shape index: {}]   ;;  %s2923_s9 = inlined_call_operand.vmem [shape: bf16[32,32], index: 9, kind: input, shape index: {}]   ;;  %s2924_s10 = inlined_call_operand.vmem [shape: f32[1,32], index: 10, kind: input, shape index: {}]   ;;  %s2925_s11 = inlined_call_operand.vmem [shape: bf16[32,32], index: 11, kind: input, shape index: {}]   ;;  %s2926_s12 = inlined_call_operand.vmem [shape: f32[1,32], index: 12, kind: input, shape index: {}]   ;;  %s2927_s13 = inlined_call_operand.vmem [shape: f32[1,32], index: 13, kind: input, shape index: {}]   ;;  %s2928_s14 = inlined_call_operand.vmem [shape: f32[1,32], index: 14, kind: input, shape index: {}]   ;;  %s2929_s15 = inlined_call_operand.vmem [shape: bf16[32,128], index: 15, kind: input, shape index: {}]   ;;  %s2930_s16 = inlined_call_operand.vmem [shape: f32[1,128], index: 16, kind: input, shape index: {}]   ;;  %s2931_s17 = inlined_call_operand.vmem [shape: bf16[128,32], index: 17, kind: input, shape index: {}]   ;;  %s2932_s18 = inlined_call_operand.vmem [shape: f32[1,32], index: 18, kind: input, shape index: {}]   ;;  %s2933_s19 = inlined_call_operand.hbm [shape: f32[2,8,32], index: 19, kind: output, shape index: {0}]   ;;  %s2934_s20 = inlined_call_operand.hbm [shape: f32[2,8,8], index: 20, kind: output, shape index: {1}]  }
   0x1   :  { %2943 = sst [smem:[#allocation18_spill]] %s2914_s0 }
   0x2   :  { %2944 = sst [smem:[#allocation19_spill]] %s2915_s1 }
   0x3   :  { %2945 = sst [smem:[#allocation20_spill]] %s2916_s2 }
   0x4   :  { %2946 = sst [smem:[#allocation21_spill]] %s2917_s3 }
   0x5   :  { %2947 = sst [smem:[#allocation22_spill]] %s2918_s4 }
   0x6   :  { %2948 = sst [smem:[#allocation23_spill]] %s2919_s5 }
   0x7   :  { %2949 = sst [smem:[#allocation24_spill]] %s2920_s6 }
   0x8   :  { %26 = vsyncpa [#allocation8], 0 }
   0x9   :  { %28 = vsyncpa [#allocation8 + $0x1], 0 }
   0xa   :  { %29 = vsyncpa [#allocation10], 0 }
   0xb   :  { %31 = vsyncpa [#allocation10 + $0x1], 0  ;;  %s2529_s1 = smov 0   ;;  %s2531_s22 = smov 0  }
   0xc   :  { %s2533_s23 = smov 0   ;;  %s2535_s24 = smov 0  }
   0xd   :  { %s2537_s2 = smov 0   ;;  %s2539_s25 = smov 0  }
   0xe LB: > { %2950 = sst [smem:[#allocation13_spill]] %s2392_s1  ;;  %s1960_s3 = sadd.s32 4294967295, %s2412_s25   ;;  %s2412_s25 = sphi %s2539_s25, %s37_s25   ;;  %s2408_s2 = sphi %s2537_s2, %s2970_s2   ;;  %s2404_s24 = sphi %s2535_s24, %s2969_s24   ;;  %s2400_s23 = sphi %s2533_s23, %s2973_s23   ;;  %s2396_s22 = sphi %s2531_s22, %s2972_s22   ;;  %s2392_s1 = sphi %s2529_s1, %s2971_s1  }
   0xf   : > { %2951 = sst [smem:[#allocation14_spill]] %s2408_s2  ;;  %s1961_s26 = sadd.s32 4294967294, %s2412_s25  }
  0x10   : > { %2952 = sst [smem:[#allocation15_spill]] %s2412_s25  ;;  %s49_s27 = sadd.s32 1, %s2408_s2 }
  0x11   : > { %s474_s28 = sadd.s32 1, %s2400_s23  ;;  %p51_p0 = scmp.ge.s32.totalorder %s49_s27, 2 }
  0x12   : > { %p484_p1 = scmp.ne.s32.totalorder %s2400_s23, %s2396_s22  ;;  %p485_p2 = scmp.eq.s32.totalorder %s1960_s3, 1 }
  0x13   : > { %p490_p3 = scmp.ne.s32.totalorder %s2396_s22, %s2392_s1  ;;  %s2975_s27 = smov (%p51_p0, %s49_s27), 0 }
  0x14   : > { %2953 = sst [smem:[#allocation16_spill]] %s2975_s27  ;;  %p2569_p4 = por %p485_p2, %p484_p1 }
  0x15   : > { %p491_p5 = scmp.eq.s32.totalorder %s1961_s26, 1  ;;  %s469_s29 = ssub.s32 %s2408_s2, %s2975_s27 }
  0x16   : > { %p1964_p6 = scmp.ge.s32.totalorder %s2412_s25, 1  ;;  %p472_p7 = scmp.eq.s32.totalorder %s469_s29, 0 }
  0x17   : > { %p2576_p8 = por %p491_p5, %p490_p3  ;;  %p609_p9 = scmp.lt.s32.totalorder %s2412_s25, 3 }
  0x18   : > { %s2582_s0 = scalar_select %p472_p7, %s2400_s23, %s474_s28  }
  0x19   : > { %s2955_s30 = scalar_select %p2576_p8, 1, 0 }
  0x1a   : > { %p610_p10 = pnand %p1964_p6, %p609_p9 }
  0x1b   : > { %2956 = sst [smem:[#allocation17_spill]] %s2955_s30  ;;  %p682_p11 = scmp.lt.s32.totalorder (!%p610_p10), %s2404_s24, 1  ;;  %vm706_vm0 = vcmask (!%p610_p10), 261120   ;;  %v2414_v17 = vmov (!%p610_p10), 0.0   ;;  %vm2415_vm1 = vmmov (!%p610_p10), 0   ;;  %v2249_v36 = vld [vmem:[%s2921_s7] sm:$0xff] (!%p610_p10)  }
  0x1c   : > { %613 = sbr.rel (%p610_p10) target bundleno = 2638 (0xa4e), region = 96  ;;  %s2957_s27 = sld [smem:[#allocation18_spill]] (!%p610_p10)  ;;  %2071 = vmatprep.subr.bf16.mxu0 (!%p610_p10), %v2414_v17  ;;  %2095 = vmatprep.subr.bf16.mxu1 (!%p610_p10), %v2414_v17  ;;  %v2250_v39 = vld [vmem:[%s2921_s7 + $0x8] sm:$0xff] (!%p610_p10)   ;;  %vm1001_vm2 = vcmask (!%p610_p10), 64512   ;;  %vm803_vm3 = vcmask (!%p610_p10), 257024   ;;  %vm1067_vm4 = vcmask (!%p610_p10), 1043456  }
  0x1d   : > { %s2958_s25 = sld [smem:[#allocation19_spill]] (!%p610_p10)  ;;  %s2959_s5 = sld [smem:[#allocation23_spill]] (!%p610_p10)  ;;  %2075 = vmatprep.mubr.msk.bf16.mxu0 (!%p610_p10), %vm2415_vm1, %v2414_v17  ;;  %2097 = vmatprep.mubr.msk.bf16.mxu1 (!%p610_p10), %vm2415_vm1, %v2414_v17  ;;  %1002 = vst.msk [vmem:[#allocation6] sm:$0xff] (!%p610_p10), %vm1001_vm2, %v2414_v17  ;;  %v1978_v49 = vld [vmem:[%s2922_s8] ss:$0 sm:$0xff] (!%p610_p10)  ;;  %vm1241_vm5 = vcmask (!%p610_p10), 130112  }
  0x1e   : > { %s2960_s26 = sld [smem:[#allocation20_spill]] (!%p610_p10)  ;;  %s2961_s1 = sld [smem:[#allocation21_spill]] (!%p610_p10)  ;;  %vm1372_vm6 = vcmask (!%p610_p10), 195712   ;;  %vm1503_vm7 = vcmask (!%p610_p10), 261312  }
  0x1f   : > { %s2963_s6 = sld [smem:[#allocation24_spill]] (!%p610_p10)  ;;  %s2418_s30 = smov (!%p610_p10), 112  }
  0x23   : > { %s683_s21 = scalar_select %p682_p11, %s2404_s24, 1  ;;  %v2247_v16 = vld [vmem:[%s2959_s5] sm:$0xff]   ;;  %v2248_v18 = vld [vmem:[%s2959_s5 + $0x8] sm:$0xff]  }
  0x24   : > { %2072 = vmatpush3.bf16.msra.mxu0 %v2247_v16  ;;  %v2631_v29 = vld [vmem:[%s2961_s1] ss:$0 sm:$0xff]  ;;  %s2421_s1 = smov 24  }
  0x25   : > { %s2586_s3 = sshll.u32 %s683_s21, 2  ;;  %2073 = vmatprep.subr.bf16.mxu0 %v2414_v17  ;;  %v1972_v42 = vld [vmem:[%s2963_s6] ss:$0 sm:$0xff]  ;;  %s2420_s21 = smov 16  }
  0x26   : > { %s688_s2 = scalar_lea.vmem %s2957_s27, %s2586_s3  ;;  %s692_s28 = scalar_lea.vmem %s2958_s25, %s2586_s3 }
  0x27   : > { %v698_v0 = vld [vmem:[%s688_s2] sm:$0xf]  ;;  %s696_s29 = scalar_lea.vmem %s2960_s26, %s2586_s3  ;;  %s2962_s27 = sld [smem:[#allocation22_spill]] }
  0x28   : > { %v700_v1 = vld [vmem:[%s692_s28] sm:$0xf]  ;;  %v2596_v2 = vunpack.c.l.bf16 %v698_v0  ;;  %2074 = vmatpush3.bf16.msra.mxu0 %v2248_v18  ;;  %s2416_s25 = smov 120   ;;  %s2748_s2 = sand.u32 1, %s2396_s22  }
  0x29   : > { %v701_v3 = vunpack.c.l.bf16 %v700_v1  ;;  %2079 = vmatprep.subr.bf16.mxu0 %v2414_v17  ;;  %v2622_v19 = vld [vmem:[%s696_s29] sm:$0xf]  ;;  %s1804_s29 = scalar_lea.sflag [#allocation10], %s2748_s2  ;;  %s2422_s3 = smov [#allocation9]  }
  0x2a   : > { %v707_v4 = vsel %vm706_vm0, %v2596_v2, 0.0  ;;  %v703_v20 = vunpack.c.l.bf16 %v2622_v19  ;;  %s2306_s5 = sshll.u32 %s2422_s3, 4  ;;  %s2307_s5 = int_to_ptr.vmem [resolvable:$false] %s2306_s5 }
  0x2b   : > { %v807_v5 = vsel %vm706_vm0, %v701_v3, 0.0  ;;  %708 = vadd.xlane.f32.xlu0 %v707_v4  ;;  %s2308_s6 = scalar_lea.vmem %s2307_s5, 256 }
  0x2c   : > { %v905_v21 = vsel %vm706_vm0, %v703_v20, 0.0 }
  0x2d   : > { %v2636_v31 = vld [vmem:[%s2962_s27] ss:$0 sm:$0xff]  ;;  %s2417_s27 = smov 104  }
  0x2f   : > { %808 = vadd.xlane.f32.xlu0 %v807_v5 }
  0x33   : > { %906 = vadd.xlane.f32.xlu0 %v905_v21 }
  0xb8   : > { %v709_v6 = vpop.xlane.xlu0 %708 }
  0xb9   : > { %v711_v7 = vmul.f32 0.03125, %v709_v6 }
  0xbb   : > { %v712_v8 = vsub.f32 %v2596_v2, %v711_v7  ;;  %v2257_v7 = vld [vmem:[%s2923_s9] sm:$0xff]  }
  0xbc   : > { %v809_v9 = vpop.xlane.xlu0 %808 }
  0xbd   : > { %v810_v10 = vmul.f32 0.03125, %v809_v9  ;;  %v713_v11 = vmul.f32 %v712_v8, %v712_v8 }
  0xbf   : > { %v811_v12 = vsub.f32 %v701_v3, %v810_v10  ;;  %v714_v13 = vsel %vm706_vm0, %v713_v11, 0.0 }
  0xc0   : > { %715 = vadd.xlane.f32.xlu1 %v714_v13  ;;  %v907_v1 = vpop.xlane.xlu0 %906 }
  0xc1   : > { %v812_v14 = vmul.f32 %v811_v12, %v811_v12  ;;  %v908_v3 = vmul.f32 0.03125, %v907_v1 }
  0xc3   : > { %v813_v15 = vsel %vm706_vm0, %v812_v14, 0.0  ;;  %v909_v4 = vsub.f32 %v703_v20, %v908_v3 }
  0xc4   : > { %814 = vadd.xlane.f32.xlu1 %v813_v15 }
  0xc5   : > { %v910_v5 = vmul.f32 %v909_v4, %v909_v4 }
  0xc7   : > { %v911_v6 = vsel %vm706_vm0, %v910_v5, 0.0 }
 0x14d   : > { %v716_v22 = vpop.xlane.xlu1 %715 }
 0x14e   : > { %v717_v23 = vmul.f32 0.03125, %v716_v22 }
 0x150   : > { %v718_v24 = vadd.f32 1e-05, %v717_v23 }
 0x151   : > { %v815_v25 = vpop.xlane.xlu1 %814 }
 0x152   : > { %2274 = vrsqrt.f32 %v718_v24  ;;  %v816_v26 = vmul.f32 0.03125, %v815_v25 }
 0x154   : > { %v817_v27 = vadd.f32 1e-05, %v816_v26 }
 0x156   : > { %2276 = vrsqrt.f32 %v817_v27 }
 0x15c   : > { %v2275_v28 = vpop.eup %2274 }
 0x15d   : > { %v720_v30 = vmul.f32 %v2275_v28, %v712_v8  ;;  %v2258_v8 = vld [vmem:[%s2923_s9 + $0x8] sm:$0xff]  }
 0x15f   : > { %v727_v32 = vmul.f32 %v2631_v29, %v720_v30 }
 0x160   : > { %v2277_v33 = vpop.eup %2276 }
 0x161   : > { %v819_v34 = vmul.f32 %v2277_v33, %v811_v12  ;;  %v734_v35 = vadd.f32 %v2636_v31, %v727_v32 }
 0x163   : > { %v735_v37 = vpack.c.bf16 %v734_v35, %v734_v35  ;;  %v826_v38 = vmul.f32 %v2631_v29, %v819_v34 }
 0x165   : > { %2076 = vmatmul.mubr.msk.bf16.vlgmr.msra.gmra.mrb[0].mxu0 %vm706_vm0, %v735_v37  ;;  %v833_v40 = vadd.f32 %v2636_v31, %v826_v38 }
 0x166   : > { %2080 = vmatpush3.bf16.msra.mxu0 %v2249_v36  ;;  %2083 = vmatprep.mubr.msk.bf16.mxu0 %vm2415_vm1, %v2414_v17 }
 0x167   : > { %2081 = vmatprep.subr.bf16.mxu0 %v2414_v17  ;;  %v834_v41 = vpack.c.bf16 %v833_v40, %v833_v40 }
 0x16a   : > { %2082 = vmatpush3.bf16.msra.mxu0 %v2250_v39 }
 0x16b   : > { %2087 = vmatprep.subr.bf16.mxu0 %v2414_v17 }
 0x16d   : > { %2084 = vmatmul.mubr.msk.bf16.vlgmr.msra.gmra.mrb[4].mxu0 %vm706_vm0, %v834_v41 }
 0x16e   : > { %2091 = vmatprep.mubr.msk.bf16.mxu0 %vm2415_vm1, %v2414_v17  ;;  %2088 = vmatpush3.bf16.msra.mxu0 %v2257_v7 }
 0x16f   : > { %2089 = vmatprep.subr.bf16.mxu0 %v2414_v17 }
 0x172   : > { %2090 = vmatpush3.bf16.msra.mxu0 %v2258_v8 }
 0x173   : > { %2101 = vmatprep.subr.bf16.mxu0 %v2414_v17 }
 0x238   : > { %v796_v43 = vpop.f32.mrb[0].mxu0 }
 0x239   : > { %v797_v44 = vadd.f32 %v1972_v42, %v796_v43  ;;  %v2077_v45 = vpop.f32.mrb[1].mxu0 }
 0x23a   : > { %v799_v46 = vpop.f32.mrb[2].mxu0 }
 0x23b   : > { %v802_v47 = vpack.c.bf16 %v797_v44, %v797_v44  ;;  %v2078_v48 = vpop.f32.mrb[3].mxu0 }
 0x23d   : > { %804 = vst.msk [vmem:[#allocation2] sm:$0xf] %vm803_vm3, %v802_v47 }
 0x240   : > { %v895_v50 = vpop.f32.mrb[4].mxu0 }
 0x241   : > { %v896_v51 = vadd.f32 %v1978_v49, %v895_v50  ;;  %v2085_v52 = vpop.f32.mrb[5].mxu0 }
 0x242   : > { %v898_v53 = vpop.f32.mrb[6].mxu0  ;;  %v1984_v52 = vld [vmem:[%s2924_s10] ss:$0 sm:$0xff] }
 0x243   : > { %v901_v54 = vpack.c.bf16 %v896_v51, %v896_v51  ;;  %v2086_v55 = vpop.f32.mrb[7].mxu0 }
 0x244   : > { %v2251_v56 = vld [vmem:[#allocation2] ss:$0 sps:$4 sm:$0xff]  }
 0x245   : > { %902 = vst.msk [vmem:[#allocation3] sm:$0xf] %vm803_vm3, %v901_v54  ;;  %1121 = vrot.lane.b32.xlu0 %v2251_v56, %s2416_s25  ;;  %v2252_v57 = vld [vmem:[#allocation2] ss:$0 sps:$4 sm:$0xff]  }
 0x246   : > { %v1003_v62 = vld [vmem:[#allocation2] sm:$0xf] }
 0x247   : > { %v2255_v63 = vld [vmem:[#allocation2] ss:$0 sps:$4 sm:$0xff]  }
 0x249   : > { %1383 = vrot.lane.b32.xlu0 %v2252_v57, %s2417_s27 }
 0x24c   : > { %v1004_v58 = vld [vmem:[#allocation3] sm:$0xf] }
 0x24d   : > { %v2253_v59 = vld [vmem:[#allocation3] ss:$0 sps:$4 sm:$0xff]   ;;  %v1010_v60 = vsel %vm1001_vm2, %v1004_v58, 0 }
 0x24e   : > { %2096 = vmatpush3.bf16.xpose.msra.mxu1 %v1010_v60  ;;  %1126 = vrot.lane.b32.xlu1 %v2253_v59, %s2416_s25  ;;  %v2254_v61 = vld [vmem:[#allocation3] ss:$0 sps:$4 sm:$0xff]  }
 0x24f   : > { %2107 = vmatprep.subr.bf16.mxu1 %v2414_v17  ;;  %v2256_v0 = vld [vmem:[#allocation3] ss:$0 sps:$4 sm:$0xff]  }
 0x252   : > { %1257 = vrot.lane.b32.xlu1 %v2254_v61, %s2418_s30 }
 0x255   : > { %2098 = vmatmul.mubr.msk.bf16.vlgmr.msra.gmra.mrb[0].mxu1 %vm1001_vm2, %v1003_v62 }
 0x256   : > { %1252 = vrot.lane.b32.xlu1 %v2255_v63, %s2418_s30  ;;  %2109 = vmatprep.mubr.msk.bf16.mxu1 %vm2415_vm1, %v2414_v17 }
 0x25a   : > { %1388 = vrot.lane.b32.xlu1 %v2256_v0, %s2417_s27 }
 0x27e   : > { %912 = vadd.xlane.f32.xlu1 %v911_v6 }
 0x2b7   : > { %v1122_v12 = vpop.permute.xlu0 %1121 }
 0x2bb   : > { %v1384_v18 = vpop.permute.xlu0 %1383 }
 0x2c0   : > { %v1127_v9 = vpop.permute.xlu1 %1126 }
 0x2c1   : > { %v1132_v10 = vsel %vm1001_vm2, %v1127_v9, 0 }
 0x2c2   : > { %2108 = vmatpush3.bf16.xpose.msra.mxu1 %v1132_v10 }
 0x2c3   : > { %2119 = vmatprep.subr.bf16.mxu1 %v2414_v17 }
 0x2c4   : > { %v1258_v11 = vpop.permute.xlu1 %1257 }
 0x2c5   : > { %v1263_v14 = vsel %vm1001_vm2, %v1258_v11, 0 }
 0x2c8   : > { %v1253_v13 = vpop.permute.xlu1 %1252 }
 0x2c9   : > { %2110 = vmatmul.mubr.msk.bf16.vlgmr.msra.gmra.mrb[4].mxu1 %vm1001_vm2, %v1122_v12 }
 0x2ca   : > { %2120 = vmatpush3.bf16.xpose.msra.mxu1 %v1263_v14  ;;  %2121 = vmatprep.mubr.msk.bf16.mxu1 %vm2415_vm1, %v2414_v17 }
 0x2cb   : > { %2131 = vmatprep.subr.bf16.mxu1 %v2414_v17 }
 0x2cc   : > { %v1389_v15 = vpop.permute.xlu1 %1388 }
 0x2cd   : > { %v1394_v16 = vsel %vm1001_vm2, %v1389_v15, 0  ;;  %v1112_v15 = vld [vmem:[#allocation6] sm:$0xff] }
 0x2d1   : > { %2122 = vmatmul.mubr.msk.bf16.vlgmr.msra.gmra.mrb[8].mxu1 %vm1001_vm2, %v1253_v13 }
 0x2d2   : > { %2132 = vmatpush3.bf16.xpose.msra.mxu1 %v1394_v16  ;;  %2133 = vmatprep.mubr.msk.bf16.mxu1 %vm2415_vm1, %v2414_v17 }
 0x2d3   : > { %2143 = vmatprep.subr.bf16.mxu1 %v2414_v17 }
 0x2d9   : > { %2134 = vmatmul.mubr.msk.bf16.vlgmr.msra.gmra.mrb[12].mxu1 %vm1001_vm2, %v1384_v18 }
 0x2da   : > { %2147 = vmatprep.mubr.msk.bf16.mxu1 %vm2415_vm1, %v2414_v17 }
 0x30b   : > { %v913_v19 = vpop.xlane.xlu1 %912 }
 0x30c   : > { %v914_v20 = vmul.f32 0.03125, %v913_v19 }
 0x30e   : > { %v915_v21 = vadd.f32 1e-05, %v914_v20 }
 0x310   : > { %2278 = vrsqrt.f32 %v915_v21 }
 0x31a   : > { %v2279_v22 = vpop.eup %2278 }
 0x31b   : > { %v917_v23 = vmul.f32 %v2279_v22, %v909_v4 }
 0x31d   : > { %v924_v24 = vmul.f32 %v2631_v29, %v917_v23 }
 0x31f   : > { %v931_v25 = vadd.f32 %v2636_v31, %v924_v24 }
 0x321   : > { %v932_v26 = vpack.c.bf16 %v931_v25, %v931_v25 }
 0x323   : > { %2092 = vmatmul.mubr.msk.bf16.vlgmr.msra.gmra.mrb[8].mxu0 %vm706_vm0, %v932_v26 }
 0x324   : > { %2103 = vmatprep.mubr.msk.bf16.mxu0 %vm2415_vm1, %v2414_v17 }
 0x328   : > { %v1046_v27 = vpop.f32.mrb[0].mxu1 }
 0x329   : > { %v2099_v28 = vpop.f32.mrb[1].mxu1  ;;  %v1052_v30 = vsel %vm1001_vm2, %v1046_v27, -inf }
 0x32a   : > { %1053 = vmax.xlane.f32.xlu0 %v1052_v30  ;;  %v1049_v32 = vpop.f32.mrb[2].mxu1 }
 0x32b   : > { %v2100_v33 = vpop.f32.mrb[3].mxu1 }
 0x39c   : > { %v1168_v34 = vpop.f32.mrb[4].mxu1 }
 0x39d   : > { %v2111_v35 = vpop.f32.mrb[5].mxu1  ;;  %v1174_v36 = vsel %vm1001_vm2, %v1168_v34, -inf }
 0x39e   : > { %1175 = vmax.xlane.f32.xlu0 %v1174_v36  ;;  %v1171_v29 = vpop.f32.mrb[6].mxu1 }
 0x39f   : > { %v2112_v31 = vpop.f32.mrb[7].mxu1 }
 0x3a4   : > { %v1299_v37 = vpop.f32.mrb[8].mxu1 }
 0x3a5   : > { %v2123_v38 = vpop.f32.mrb[9].mxu1  ;;  %v1305_v39 = vsel %vm1001_vm2, %v1299_v37, -inf }
 0x3a6   : > { %1306 = vmax.xlane.f32.xlu0 %v1305_v39  ;;  %v1302_v40 = vpop.f32.mrb[10].mxu1 }
 0x3a7   : > { %v2124_v41 = vpop.f32.mrb[11].mxu1 }
 0x3ac   : > { %v1430_v42 = vpop.f32.mrb[12].mxu1 }
 0x3ad   : > { %v2135_v43 = vpop.f32.mrb[13].mxu1  ;;  %v1436_v44 = vsel %vm1001_vm2, %v1430_v42, -inf }
 0x3ae   : > { %1437 = vmax.xlane.f32.xlu1 %v1436_v44  ;;  %v1433_v45 = vpop.f32.mrb[14].mxu1 }
 0x3af   : > { %v2136_v46 = vpop.f32.mrb[15].mxu1 }
 0x3b7   : > { %v1054_v47 = vpop.xlane.xlu0 %1053 }
 0x3b8   : > { %v1055_v48 = vsub.f32 %v1046_v27, %v1054_v47 }
 0x3ba   : > { %v1056_v49 = vmul.f32 1.442695, %v1055_v48 }
 0x3bc   : > { %2280 = vpow2.f32 %v1056_v49 }
 0x3c6   : > { %v2281_v50 = vpop.eup %2280 }
 0x3c7   : > { %v1058_v51 = vsel %vm1001_vm2, %v2281_v50, 0.0 }
 0x3c8   : > { %1059 = vadd.xlane.f32.xlu0 %v1058_v51 }
 0x3f6   : > { %v993_v53 = vpop.f32.mrb[8].mxu0 }
 0x3f7   : > { %v994_v54 = vadd.f32 %v1984_v52, %v993_v53  ;;  %v2093_v55 = vpop.f32.mrb[9].mxu0 }
 0x3f8   : > { %v996_v56 = vpop.f32.mrb[10].mxu0 }
 0x3f9   : > { %v999_v57 = vpack.c.bf16 %v994_v54, %v994_v54  ;;  %v2094_v58 = vpop.f32.mrb[11].mxu0 }
 0x3fb   : > { %1000 = vst.msk [vmem:[#allocation4] sm:$0xf] %vm803_vm3, %v999_v57 }
 0x402   : > { %v1005_v59 = vld [vmem:[#allocation4] sm:$0xf] }
 0x403   : > { %v1069_v60 = vsel %vm1067_vm4, %v1005_v59, 0  ;;  %v2259_v8 = vld [vmem:[#allocation4] ss:$0 sps:$4 sm:$0xff]  }
 0x404   : > { %2102 = vmatpush3.bf16.msra.mxu0 %v1069_v60  ;;  %v2260_v11 = vld [vmem:[#allocation4] ss:$0 sps:$4 sm:$0xff]  }
 0x405   : > { %2113 = vmatprep.subr.bf16.mxu0 %v2414_v17  ;;  %v2261_v22 = vld [vmem:[#allocation4] ss:$0 sps:$4 sm:$0xff]  }
 0x42b   : > { %v1176_v61 = vpop.xlane.xlu0 %1175 }
 0x42c   : > { %v1177_v62 = vsub.f32 %v1168_v34, %v1176_v61  ;;  %v2262_v61 = vld [vmem:[%s2925_s11] sm:$0xff]  }
 0x42d   : > { %2144 = vmatpush3.bf16.msra.mxu1 %v2262_v61 }
 0x42e   : > { %v1178_v63 = vmul.f32 1.442695, %v1177_v62  ;;  %v2263_v62 = vld [vmem:[%s2925_s11 + $0x8] sm:$0xff]   ;;  %2145 = vmatprep.subr.bf16.mxu1 %v2414_v17 }
 0x430   : > { %2282 = vpow2.f32 %v1178_v63 }
 0x431   : > { %2146 = vmatpush3.bf16.msra.mxu1 %v2263_v62 }
 0x432   : > { %2159 = vmatprep.subr.bf16.mxu1 %v2414_v17 }
 0x433   : > { %v1307_v0 = vpop.xlane.xlu0 %1306 }
 0x434   : > { %v1308_v1 = vsub.f32 %v1299_v37, %v1307_v0 }
 0x436   : > { %v1309_v3 = vmul.f32 1.442695, %v1308_v1 }
 0x438   : > { %2284 = vpow2.f32 %v1309_v3 }
 0x43a   : > { %v2283_v4 = vpop.eup %2282 }
 0x43b   : > { %v1180_v5 = vsel %vm1001_vm2, %v2283_v4, 0.0  ;;  %v1438_v10 = vpop.xlane.xlu1 %1437 }
 0x43c   : > { %1181 = vadd.xlane.f32.xlu1 %v1180_v5  ;;  %v1439_v12 = vsub.f32 %v1430_v42, %v1438_v10 }
 0x43e   : > { %v1440_v13 = vmul.f32 1.442695, %v1439_v12 }
 0x442   : > { %v2285_v6 = vpop.eup %2284 }
 0x443   : > { %v1311_v7 = vsel %vm1001_vm2, %v2285_v6, 0.0 }
 0x444   : > { %1312 = vadd.xlane.f32.xlu0 %v1311_v7 }
 0x44d   : > { %1320 = vrot.lane.b32.xlu1 %v2259_v8, %s2418_s30  ;;  %s2419_s30 = smov 8  }
 0x455   : > { %v1060_v9 = vpop.xlane.xlu0 %1059 }
 0x456   : > { %2286 = vrcp.f32 %v1060_v9  ;;  %v2005_v9 = vld [vmem:[%s2926_s12] ss:$0 sm:$0xff] }
 0x457   : > { %2288 = vpow2.f32 %v1440_v13 }
 0x45a   : > { %1189 = vrot.lane.b32.xlu0 %v2260_v11, %s2416_s25  ;;  %s2941_s25 = sshll.u32 %s2748_s2, 3 }
 0x460   : > { %v2287_v14 = vpop.eup %2286 }
 0x461   : > { %v1062_v16 = vmul.f32 %v2287_v14, %v2281_v50  ;;  %v2289_v20 = vpop.eup %2288 }
 0x462   : > { %v1442_v21 = vsel %vm1001_vm2, %v2289_v20, 0.0 }
 0x463   : > { %v1113_v18 = vadd.f32 %v1112_v15, %v1062_v16  ;;  %v1063_v19 = vpack.c.bf16 %v1062_v16, %v1062_v16 }
 0x465   : > { %1114 = vst.msk [vmem:[#allocation6] sm:$0xff] %vm1001_vm2, %v1113_v18  ;;  %2104 = vmatmul.mubr.msk.bf16.vlgmr.msra.gmra.mrb[12].mxu0 %vm1001_vm2, %v1063_v19 }
 0x466   : > { %2115 = vmatprep.mubr.msk.bf16.mxu0 %vm2415_vm1, %v2414_v17 }
 0x46c   : > { %v1243_v28 = vld [vmem:[#allocation6] sm:$0xff] }
 0x471   : > { %1443 = vadd.xlane.f32.xlu1 %v1442_v21 }
 0x482   : > { %1451 = vrot.lane.b32.xlu1 %v2261_v22, %s2417_s27  ;;  %s2753_s27 = scalar_lea.vmem [#allocation9], %s2941_s25  ;;  %s2942_s25 = sshll.u32 %s2404_s24, 7 }
 0x483   : > { %s1832_s26 = sshll.u32 %s2753_s27, 4  ;;  %s1833_s26 = int_to_ptr.vmem [resolvable:$true] %s1832_s26 }
 0x484   : > { %s2302_s28 = scalar_lea.vmem %s1833_s26, 128  ;;  %p2309_p1 = scmp.lt.s32.totalorder %s1833_s26, %s2307_s5 }
 0x485   : > { %p2303_p12 = scmp.ne.s32.totalorder %s1833_s26, %s2302_s28  ;;  %p2310_p2 = scmp.lt.s32.totalorder %s2308_s6, %s2302_s28 }
 0x487   : > { %p2304_p13 = pnand %p2303_p12, %p2569_p4  ;;  %p2311_p3 = por %p2310_p2, %p2309_p1 }
 0x489   : > { %p2305_p0 = pneg %p2304_p13 }
 0x48b   : > { %p2312_p5 = pnand %p2311_p3, %p2305_p0 }
 0x4c9   : > { %v1182_v23 = vpop.xlane.xlu1 %1181 }
 0x4ca   : > { %2290 = vrcp.f32 %v1182_v23  ;;  %v2264_v23 = vld [vmem:[%s2929_s15] sm:$0xff]  }
 0x4cd   : > { %v1321_v33 = vpop.permute.xlu1 %1320 }
 0x4ce   : > { %v1326_v35 = vsel %vm1067_vm4, %v1321_v33, 0 }
 0x4d1   : > { %v1313_v24 = vpop.xlane.xlu0 %1312 }
 0x4d2   : > { %2292 = vrcp.f32 %v1313_v24 }
 0x4d4   : > { %v2291_v25 = vpop.eup %2290 }
 0x4d5   : > { %v1184_v26 = vmul.f32 %v2291_v25, %v2283_v4  ;;  %v1190_v27 = vpop.permute.xlu0 %1189 }
 0x4d6   : > { %v1195_v30 = vsel %vm1067_vm4, %v1190_v27, 0 }
 0x4d7   : > { %v1244_v32 = vadd.f32 %v1243_v28, %v1184_v26  ;;  %2114 = vmatpush3.bf16.msra.mxu0 %v1195_v30  ;;  %v1185_v34 = vpack.c.bf16 %v1184_v26, %v1184_v26  ;;  %v2009_v28 = vld [vmem:[%s2927_s13] ss:$0 sm:$0xff] }
 0x4d8   : > { %2125 = vmatprep.subr.bf16.mxu0 %v2414_v17 }
 0x4d9   : > { %1245 = vst.msk [vmem:[#allocation6] sm:$0xff] %vm1001_vm2, %v1244_v32  ;;  %v2010_v32 = vld [vmem:[%s2928_s14] ss:$0 sm:$0xff] }
 0x4da   : > { %2116 = vmatmul.mubr.msk.bf16.vlgmr.msra.gmra.mrb[16].mxu0 %vm1001_vm2, %v1185_v34 }
 0x4db   : > { %2126 = vmatpush3.bf16.msra.mxu0 %v1326_v35  ;;  %2127 = vmatprep.mubr.msk.bf16.mxu0 %vm2415_vm1, %v2414_v17 }
 0x4dc   : > { %v2293_v36 = vpop.eup %2292  ;;  %2137 = vmatprep.subr.bf16.mxu0 %v2414_v17 }
 0x4dd   : > { %v1315_v29 = vmul.f32 %v2293_v36, %v2285_v6  ;;  %v2266_v36 = vld [vmem:[%s2931_s17] sm:$0xff]  }
 0x4df   : > { %v1316_v31 = vpack.c.bf16 %v1315_v29, %v1315_v29 }
 0x4e0   : > { %v1374_v37 = vld [vmem:[#allocation6] sm:$0xff] }
 0x4e1   : > { %v1375_v38 = vadd.f32 %v1374_v37, %v1315_v29  ;;  %v2267_v29 = vld [vmem:[%s2931_s17 + $0x8] sm:$0xff]   ;;  %v2269_v37 = vld [vmem:[%s2931_s17 + $0x18] sm:$0xff]  }
 0x4e2   : > { %2128 = vmatmul.mubr.msk.bf16.vlgmr.msra.gmra.mrb[20].mxu0 %vm1001_vm2, %v1316_v31  ;;  %v2268_v31 = vld [vmem:[%s2931_s17 + $0x10] sm:$0xff]  }
 0x4e3   : > { %1376 = vst.msk [vmem:[#allocation6] sm:$0xff] %vm1001_vm2, %v1375_v38  ;;  %2139 = vmatprep.mubr.msk.bf16.mxu0 %vm2415_vm1, %v2414_v17  ;;  %v2270_v38 = vld [vmem:[%s2931_s17 + $0x20] sm:$0xff]  }
 0x4ea   : > { %v1505_v44 = vld [vmem:[#allocation6] sm:$0xff] }
 0x4fe   : > { %v1444_v39 = vpop.xlane.xlu1 %1443 }
 0x4ff   : > { %2294 = vrcp.f32 %v1444_v39  ;;  %v2271_v39 = vld [vmem:[%s2931_s17 + $0x28] sm:$0xff]  }
 0x502   : > { %v1452_v40 = vpop.permute.xlu1 %1451 }
 0x503   : > { %v1457_v41 = vsel %vm1067_vm4, %v1452_v40, 0  ;;  %v2272_v40 = vld [vmem:[%s2931_s17 + $0x30] sm:$0xff]  }
 0x504   : > { %2138 = vmatpush3.bf16.msra.mxu0 %v1457_v41  ;;  %v2273_v41 = vld [vmem:[%s2931_s17 + $0x38] sm:$0xff]  }
 0x505   : > { %2151 = vmatprep.subr.bf16.mxu0 %v2414_v17 }
 0x509   : > { %v2295_v42 = vpop.eup %2294 }
 0x50a   : > { %v1446_v43 = vmul.f32 %v2295_v42, %v2289_v20  ;;  %v2011_v42 = vld [vmem:[%s2930_s16] ss:$0 sm:$0xff] }
 0x50c   : > { %v1506_v45 = vadd.f32 %v1505_v44, %v1446_v43  ;;  %v1447_v46 = vpack.c.bf16 %v1446_v43, %v1446_v43 }
 0x50e   : > { %1507 = vst.msk [vmem:[#allocation6] sm:$0xff] %vm1001_vm2, %v1506_v45  ;;  %2140 = vmatmul.mubr.msk.bf16.vlgmr.msra.gmra.mrb[24].mxu0 %vm1001_vm2, %v1447_v46 }
 0x50f   : > { %2155 = vmatprep.mubr.msk.bf16.mxu0 %vm2415_vm1, %v2414_v17  ;;  %2152 = vmatpush3.bf16.msra.mxu0 %v2264_v23 }
 0x510   : > { %2153 = vmatprep.subr.bf16.mxu0 %v2414_v17 }
 0x515   : > { %v1795_v47 = vld [vmem:[#allocation6] sm:$0xff] }
 0x516   : > { %v1796_v48 = vmul.f32 0.25, %v1795_v47 }
 0x518   : > { %1797 = vst.msk [vmem:[%s2753_s27] sm:$0xff] %vm1001_vm2, %v1796_v48 }
 0x538   : > { %v1105_v49 = vpop.f32.mrb[12].mxu0 }
 0x539   : > { %1111 = vst.msk [vmem:[#allocation5] sm:$0xff] %vm1001_vm2, %v1105_v49  ;;  %v2105_v50 = vpop.f32.mrb[13].mxu0 }
 0x53a   : > { %v1108_v51 = vpop.f32.mrb[14].mxu0 }
 0x53b   : > { %v2106_v52 = vpop.f32.mrb[15].mxu0 }
 0x5ad   : > { %v1231_v53 = vpop.f32.mrb[16].mxu0 }
 0x5ae   : > { %1238 = vrot.lane.b32.xlu1 %v1231_v53, %s2419_s30  ;;  %v2117_v54 = vpop.f32.mrb[17].mxu0 }
 0x5af   : > { %v1234_v55 = vpop.f32.mrb[18].mxu0 }
 0x5b0   : > { %v2118_v56 = vpop.f32.mrb[19].mxu0 }
 0x5b5   : > { %v1362_v57 = vpop.f32.mrb[20].mxu0 }
 0x5b6   : > { %1369 = vrot.lane.b32.xlu0 %v1362_v57, %s2420_s21  ;;  %v2129_v58 = vpop.f32.mrb[21].mxu0  ;;  %s2833_s21 = scalar_lea.hbm %s2934_s20, %s2942_s25 }
 0x5b7   : > { %v1365_v59 = vpop.f32.mrb[22].mxu0 }
 0x5b8   : > { %v2130_v60 = vpop.f32.mrb[23].mxu0 }
 0x5e1   : > { %v1493_v63 = vpop.f32.mrb[24].mxu0 }
 0x5e2   : > { %1500 = vrot.lane.b32.xlu1 %v1493_v63, %s2421_s1  ;;  %v2141_v0 = vpop.f32.mrb[25].mxu0 }
 0x5e3   : > { %v1496_v1 = vpop.f32.mrb[26].mxu0 }
 0x5e4   : > { %v2142_v3 = vpop.f32.mrb[27].mxu0 }
 0x620   : > { %v1239_v4 = vpop.permute.xlu1 %1238 }
 0x621   : > { %1242 = vst.msk [vmem:[#allocation5] sm:$0xff] %vm1241_vm5, %v1239_v4 }
 0x628   : > { %v1370_v5 = vpop.permute.xlu0 %1369 }
 0x629   : > { %1373 = vst.msk [vmem:[#allocation5] sm:$0xff] %vm1372_vm6, %v1370_v5 }
 0x654   : > { %v1501_v6 = vpop.permute.xlu1 %1500 }
 0x655   : > { %1504 = vst.msk [vmem:[#allocation5] sm:$0xff] %vm1503_vm7, %v1501_v6 }
 0x65c   : > { %v1508_v7 = vld [vmem:[#allocation5] sm:$0xff] }
 0x65d   : > { %v1509_v8 = vpack.c.bf16 %v1508_v7, %v1508_v7 }
 0x65f   : > { %2148 = vmatmul.mubr.msk.bf16.vlgmr.msra.gmra.mrb[16].mxu1 %vm706_vm0, %v1509_v8 }
 0x660   : > { %2175 = vmatprep.mubr.msk.bf16.mxu1 %vm2415_vm1, %v2414_v17  ;;  %2160 = vmatpush3.bf16.msra.mxu1 %v2266_v36 }
 0x661   : > { %2161 = vmatprep.subr.bf16.mxu1 %v2414_v17 }
 0x664   : > { %2162 = vmatpush3.bf16.msra.mxu1 %v2267_v29 }
 0x665   : > { %2163 = vmatprep.subr.bf16.mxu1 %v2414_v17 }
 0x668   : > { %2164 = vmatpush3.bf16.msra.mxu1 %v2268_v31 }
 0x669   : > { %2165 = vmatprep.subr.bf16.mxu1 %v2414_v17 }
 0x66c   : > { %2166 = vmatpush3.bf16.msra.mxu1 %v2269_v37 }
 0x66d   : > { %2167 = vmatprep.subr.bf16.mxu1 %v2414_v17 }
 0x670   : > { %2168 = vmatpush3.bf16.msra.mxu1 %v2270_v38 }
 0x671   : > { %2169 = vmatprep.subr.bf16.mxu1 %v2414_v17 }
 0x674   : > { %2170 = vmatpush3.bf16.msra.mxu1 %v2271_v39 }
 0x675   : > { %2171 = vmatprep.subr.bf16.mxu1 %v2414_v17 }
 0x678   : > { %2172 = vmatpush3.bf16.msra.mxu1 %v2272_v40 }
 0x679   : > { %2173 = vmatprep.subr.bf16.mxu1 %v2414_v17 }
 0x67c   : > { %2174 = vmatpush3.bf16.msra.mxu1 %v2273_v41 }
 0x732   : > { %v1570_v10 = vpop.f32.mrb[16].mxu1 }
 0x733   : > { %v1571_v11 = vadd.f32 %v2005_v9, %v1570_v10  ;;  %v2149_v12 = vpop.f32.mrb[17].mxu1 }
 0x734   : > { %v1573_v13 = vpop.f32.mrb[18].mxu1 }
 0x735   : > { %v2773_v14 = vadd.f32 %v1571_v11, %v2596_v2  ;;  %v2150_v15 = vpop.f32.mrb[19].mxu1  ;;  %v2265_v2 = vld [vmem:[%s2929_s15 + $0x8] sm:$0xff]  }
 0x736   : > { %2154 = vmatpush3.bf16.msra.mxu0 %v2265_v2 }
 0x737   : > { %v1579_v16 = vsel %vm706_vm0, %v2773_v14, 0.0 }
 0x738   : > { %1580 = vadd.xlane.f32.xlu0 %v1579_v16 }
 0x7c5   : > { %v1581_v18 = vpop.xlane.xlu0 %1580 }
 0x7c6   : > { %v1582_v19 = vmul.f32 0.03125, %v1581_v18 }
 0x7c8   : > { %v1583_v20 = vsub.f32 %v2773_v14, %v1582_v19 }
 0x7ca   : > { %v1584_v21 = vmul.f32 %v1583_v20, %v1583_v20 }
 0x7cc   : > { %v1585_v22 = vsel %vm706_vm0, %v1584_v21, 0.0 }
 0x7cd   : > { %1586 = vadd.xlane.f32.xlu1 %v1585_v22 }
 0x85a   : > { %v1587_v24 = vpop.xlane.xlu1 %1586 }
 0x85b   : > { %v1588_v25 = vmul.f32 0.03125, %v1587_v24 }
 0x85d   : > { %v1589_v26 = vadd.f32 1e-05, %v1588_v25 }
 0x85f   : > { %2296 = vrsqrt.f32 %v1589_v26 }
 0x869   : > { %v2297_v27 = vpop.eup %2296 }
 0x86a   : > { %v1591_v30 = vmul.f32 %v2297_v27, %v1583_v20 }
 0x86c   : > { %v1598_v33 = vmul.f32 %v2009_v28, %v1591_v30 }
 0x86e   : > { %v1605_v34 = vadd.f32 %v2010_v32, %v1598_v33 }
 0x870   : > { %v1606_v35 = vpack.c.bf16 %v1605_v34, %v1605_v34 }
 0x872   : > { %2156 = vmatmul.mubr.msk.bf16.vlgmr.msra.gmra.mrb[28].mxu0 %vm706_vm0, %v1606_v35 }
 0x945   : > { %v1667_v43 = vpop.f32.mrb[28].mxu0 }
 0x946   : > { %v1668_v44 = vadd.f32 %v2011_v42, %v1667_v43  ;;  %v2157_v45 = vpop.f32.mrb[29].mxu0 }
 0x947   : > { %v1670_v46 = vpop.f32.mrb[30].mxu0 }
 0x948   : > { %v2015_v47 = vmul.f32 -1.702, %v1668_v44  ;;  %v2158_v48 = vpop.f32.mrb[31].mxu0 }
 0x94a   : > { %v1675_v17 = vmul.f32 1.442695, %v2015_v47 }
 0x94c   : > { %2298 = vpow2.f32 %v1675_v17 }
 0x956   : > { %v2299_v49 = vpop.eup %2298 }
 0x957   : > { %v1677_v50 = vadd.f32 1.0, %v2299_v49 }
 0x959   : > { %2300 = vrcp.f32 %v1677_v50 }
 0x963   : > { %v2301_v51 = vpop.eup %2300 }
 0x964   : > { %v1680_v52 = vmul.f32 %v2301_v51, %v1668_v44 }
 0x966   : > { %v1681_v53 = vpack.c.bf16 %v1680_v52, %v1680_v52 }
 0x968   : > { %2176 = vmatmul.mubr.bf16.vlgmr.msra.gmra.mrb[20].mxu1 %v1681_v53 }
 0x969   : > { %2315 = shalt.err (!%p2312_p5)
}
 0x96a   : > { %s2316_s27 = scalar_lea.hbm %s2833_s21, 128  ;;  %s2320_s3 = scalar_lea.hbm %s2934_s20, 256 }
 0x96b   : > { %p2317_p6 = scmp.ne.s32.totalorder %s2833_s21, %s2316_s27  ;;  %p2321_p10 = scmp.lt.u32.totalorder %s2833_s21, %s2934_s20 }
 0x96c   : > { %p2322_p11 = scmp.lt.u32.totalorder %s2320_s3, %s2316_s27  ;;  %p2324_p13 = scmp.lt.u32.totalorder %s2316_s27, %s2833_s21 }
 0x96d   : > { %p2318_p7 = pnand %p2317_p6, %p2569_p4 }
 0x96e   : > { %p2323_p12 = por %p2322_p11, %p2321_p10 }
 0x96f   : > { %p2319_p9 = pneg %p2318_p7 }
 0x970   : > { %p2325_p0 = por %p2324_p13, %p2323_p12 }
 0x972   : > { %p2326_p1 = pnand %p2325_p0, %p2319_p9 }
 0x974   : > { %2329 = shalt.err (!%p2326_p1)
}
 0x975   : > { %2180 = dma.vmem_to_hbm [thread:$0]  (%p2569_p4), %s1833_s26, 128, %s2833_s21, %s1804_s29   ;;  %v2016_v54 = vld [vmem:[%s2932_s18] ss:$0 sm:$0xff] }
 0x976   : > { %s2964_s25 = sshll.u32 %s2748_s2, 3  ;;  %s2965_s27 = sshll.u32 %s2404_s24, 7 }
 0x977   : > { %s674_s1 = scalar_lea.vmem [#allocation7], %s2964_s25  ;;  %s2865_s21 = scalar_lea.hbm %s2933_s19, %s2965_s27 }
 0x978   : > { %s1818_s30 = sshll.u32 %s674_s1, 4  ;;  %s1799_s26 = scalar_lea.sflag [#allocation8], %s2748_s2  ;;  %s2867_s30 = int_to_ptr.vmem [resolvable:$true] %s1818_s30 }
 0x979   : > { %s2330_s29 = scalar_lea.vmem %s2867_s30, 128  ;;  %s2423_s6 = smov [#allocation7]  }
 0x97a   : > { %p2331_p2 = scmp.ne.s32.totalorder %s2867_s30, %s2330_s29  ;;  %s2334_s24 = sshll.u32 %s2423_s6, 4  ;;  %s2335_s24 = int_to_ptr.vmem [resolvable:$false] %s2334_s24 }
 0x97b   : > { %s2336_s28 = scalar_lea.vmem %s2335_s24, 256  ;;  %p2337_p6 = scmp.lt.s32.totalorder %s2867_s30, %s2335_s24 }
 0x97c   : > { %p2332_p3 = pnand %p2331_p2, %p2569_p4  ;;  %p2338_p7 = scmp.lt.s32.totalorder %s2336_s28, %s2330_s29 }
 0x97e   : > { %p2333_p5 = pneg %p2332_p3  ;;  %p2339_p9 = por %p2338_p7, %p2337_p6 }
 0x980   : > { %p2340_p10 = pnand %p2339_p9, %p2333_p5 }
 0xa3b   : > { %v1787_v55 = vpop.f32.mrb[20].mxu1 }
 0xa3c   : > { %v1788_v56 = vadd.f32 %v2016_v54, %v1787_v55  ;;  %v2177_v57 = vpop.f32.mrb[21].mxu1 }
 0xa3d   : > { %v1790_v58 = vpop.f32.mrb[22].mxu1 }
 0xa3e   : > { %v1793_v59 = vadd.f32 %v1788_v56, %v2773_v14  ;;  %v2178_v60 = vpop.f32.mrb[23].mxu1 }
 0xa40   : > { %1794 = vst.msk [vmem:[%s674_s1] sm:$0xff] %vm706_vm0, %v1793_v59 }
 0xa41   : > { %2343 = shalt.err (!%p2340_p10)
}
 0xa42   : > { %s2344_s2 = scalar_lea.hbm %s2865_s21, 128  ;;  %s2348_s27 = scalar_lea.hbm %s2933_s19, 256 }
 0xa43   : > { %p2345_p11 = scmp.ne.s32.totalorder %s2865_s21, %s2344_s2  ;;  %p2349_p0 = scmp.lt.u32.totalorder %s2865_s21, %s2933_s19 }
 0xa44   : > { %p2350_p1 = scmp.lt.u32.totalorder %s2348_s27, %s2344_s2  ;;  %p2352_p3 = scmp.lt.u32.totalorder %s2344_s2, %s2865_s21 }
 0xa45   : > { %p2346_p12 = pnand %p2345_p11, %p2569_p4 }
 0xa46   : > { %p2351_p2 = por %p2350_p1, %p2349_p0 }
 0xa47   : > { %p2347_p13 = pneg %p2346_p12 }
 0xa48   : > { %p2353_p5 = por %p2352_p3, %p2351_p2 }
 0xa4a   : > { %p2354_p6 = pnand %p2353_p5, %p2347_p13 }
 0xa4c   : > { %2357 = shalt.err (!%p2354_p6)
}
 0xa4d   : > { %2179 = dma.vmem_to_hbm [thread:$0]  (%p2569_p4), %s2867_s30, 128, %s2865_s21, %s1799_s26  }
 0xa4e PF: > { %s2966_s29 = sld [smem:[#allocation15_spill]]  ;;  %s2967_s6 = sld [smem:[#allocation13_spill]] }
 0xa54   : > { %p2190_p7 = scmp.ge.s32.totalorder %s2966_s29, 2  ;;  %s1844_s28 = sand.u32 1, %s2967_s6  }
 0xa55   : > { %s1845_s25 = scalar_lea.sflag [#allocation8], %s1844_s28 }
 0xa56   : > { %p2184_p9 = pnand %p2190_p7, %p2576_p8 }
 0xa58   : > { %2383 = dma.done.wait (!%p2184_p9), %s1845_s25, 128  }
 0xa59   : > { %2385 = vsyncadd (!%p2184_p9), %s1845_s25, 4294967168  ;;  %s1854_s2 = scalar_lea.sflag [#allocation10], %s1844_s28 }
 0xa5a   : > { %2387 = dma.done.wait (!%p2184_p9), %s1854_s2, 128  }
 0xa5b   : > { %2389 = vsyncadd (!%p2184_p9), %s1854_s2, 4294967168  ;;  %s37_s25 = sadd.s32 1, %s2966_s29   ;;  %s2969_s24 = sld [smem:[#allocation14_spill]] }
 0xa5c   : > { %p34_p10 = scmp.ge.s32.totalorder %s37_s25, 4   ;;  %s2970_s2 = sld [smem:[#allocation16_spill]] }
 0xa5d   : > { %s2971_s1 = smov %s2396_s22  ;;  %s2972_s22 = smov %s2400_s23 }
 0xa5e   : > { %s2973_s23 = smov %s2582_s0  ;;  %36 = sbr.rel (!%p34_p10) target bundleno = 14 (0xe), region = 154 }
 0xa65   :  { %1859 = vsyncpa [#allocation8], 1 }
 0xa66   :  { %1861 = vsyncpa [#allocation8 + $0x1], 1 }
 0xa67   :  { %1862 = vsyncpa [#allocation10], 1 }
 0xa68   :  { %1864 = vsyncpa [#allocation10 + $0x1], 1 }

</bundles_post_ra>
